<compile_context>
chip_gen: v6e
topology: v6e:2x2x1
jax: 0.10.0
libtpu: 0.0.40
codegen_flags: <defaults>
</compile_context>

<pallas_src>
import jax
import jax.numpy as jnp
from jax.experimental import pallas as pl
from jax.experimental.pallas import tpu as pltpu


# ----------------------------------------------------------------------------
# Model configuration (small deterministic example consistent with the module)
# ----------------------------------------------------------------------------
NTYPES = ("user", "item")                       # node types
N_NODES = {"user": 16, "item": 8}               # nodes per type
FEAT_DIMS = {"user": 12, "item": 20}            # raw feature dims per type
CANONICAL_ETYPES = (
    ("user", "follows", "user"),
    ("user", "buys", "item"),
    ("item", "bought_by", "user"),
)
EMBED, HIDDEN, OUT_DIM = 16, 32, 16
NUM_HIDDEN_LAYERS = 1                           # -> 3 HeteroGraphConv layers total
_LN_EPS = 1e-5                                  # python float (no traced-const capture)

LAYER_DIMS = [(EMBED, HIDDEN)] + [(HIDDEN, HIDDEN)] * NUM_HIDDEN_LAYERS + [(HIDDEN, OUT_DIM)]
N_LAYERS = len(LAYER_DIMS)

NU, NI = N_NODES["user"], N_NODES["item"]
NTOT = NU + NI                                  # packed node axis: user rows then item rows
ROW_SLICES = {"user": (0, NU), "item": (NU, NTOT)}


def _round8(n):
    return ((n + 7) // 8) * 8


# Packed slab geometry (all offsets are Python ints, sublane-aligned multiples of 8)
W_COLS = max([EMBED] + [3 * d for pair in LAYER_DIMS for d in pair])      # 96
HL_K = FEAT_DIMS["user"] + FEAT_DIMS["item"] + 2                          # feats + 2 bias cols
HL_K_PAD = _round8(HL_K)                                                  # 40


def _weight_layout():
    """Row ranges of each weight block inside the single packed weight slab."""
    layout, off = {}, 0
    layout["hl"] = (off, HL_K_PAD)
    off += HL_K_PAD
    for l, (din, _) in enumerate(LAYER_DIMS):
        for kind in ("wp", "ws", "wn"):
            layout[(l, kind)] = (off, din)
            off += din
    return layout, off


def _adj_layout():
    offs, off = {}, 0
    for (_, et, dt) in CANONICAL_ETYPES:
        offs[et] = off
        off += N_NODES[dt]
    return offs, off


MAX_NS = max(N_NODES[st] for (st, _, _) in CANONICAL_ETYPES)              # 16
ADJ_OFFS, ADJ_ROWS = _adj_layout()                                        # rows = 40


# ----------------------------------------------------------------------------
# Fused Pallas kernel: HeteroLinear + all layers x all relations, all in VMEM.
# ----------------------------------------------------------------------------
def _make_kernel():
    layout, _ = _weight_layout()

    def kernel(feat_ref, w_ref, vec_ref, adj_ref, out_ref):
        # Whole-array loads of the small packed slabs (one DMA each via BlockSpec).
        vecs = vec_ref[...]                     # [4*N_LAYERS, W_COLS] f32  bp/bias/gamma/beta
        adjm = adj_ref[...]                     # [ADJ_ROWS, MAX_NS]   f32  {0,1}
        feat = feat_ref[...]                    # [NTOT, HL_K_PAD]     bf16 (bias cols folded)

        # ---- HeteroLinear: one block-packed MXU matmul serves both ntypes ----
        r0, nr = layout["hl"]
        h = jnp.dot(feat, w_ref[r0:r0 + nr, :EMBED],
                    preferred_element_type=jnp.float32)                  # [NTOT, EMBED]

        # ---- stacked HeteroGraphConv / SAGEConv('pool') -----------------------
        for l, (din, dout) in enumerate(LAYER_DIMS):
            apply_relu = l != N_LAYERS - 1      # last layer: activation=None
            hb = h.astype(jnp.bfloat16)         # bf16 at the MXU, f32 accumulation

            rp, _ = layout[(l, "wp")]
            rs, _ = layout[(l, "ws")]
            rn, _ = layout[(l, "wn")]
            wp_all = w_ref[rp:rp + din, :]      # [din, W_COLS] = [wp_e0 | wp_e1 | wp_e2 | 0]
            ws_all = w_ref[rs:rs + din, :]      # [din, W_COLS] = [ws_e0 | ws_e1 | ws_e2 | 0]
            wn_all = w_ref[rn:rn + din, :]      # [din, W_COLS] = [wn_e0 | wn_e1 | wn_e2 | 0]

            # Batched pool projection + batched self projection: ONE MXU push each
            # for all three relations (lane-filled N=W_COLS instead of 3x small N).
            bp_all = vecs[4 * l:4 * l + 1, :]                            # [1, W_COLS]
            pooled = jnp.maximum(
                jnp.dot(hb, wp_all, preferred_element_type=jnp.float32) + bp_all, 0.0)
            self_all = jnp.dot(hb, ws_all, preferred_element_type=jnp.float32)

            acc = {}
            for e, (stype, etype, dtype) in enumerate(CANONICAL_ETYPES):
                s0, s1 = ROW_SLICES[stype]
                d0, d1 = ROW_SLICES[dtype]
                ns, nd = s1 - s0, d1 - d0

                pooled_e = pooled[s0:s1, e * din:(e + 1) * din]          # [ns, din] (>= 0)
                a0 = ADJ_OFFS[etype]
                adj_e = adjm[a0:a0 + nd, :ns]                            # [nd, ns] in {0,1}

                # Max-pool aggregation: exact because pooled_e is post-ReLU (>= 0)
                # and adj is 0/1, so max_s(adj * pooled) equals DGL's masked max,
                # including the zero fill for destinations with no in-neighbors.
                # TODO(synk): tile this over source chunks (running max) for large
                #             graphs; the [nd, ns, din] temporary only fits at toy size.
                neigh = jnp.max(adj_e[:, :, None] * pooled_e[None, :, :], axis=1)

                # dst@Ws (from the batched matmul above) + neigh@Wn + bias:
                # two accumulated matmuls instead of a lane-axis concat + one matmul.
                rst = (self_all[d0:d1, e * dout:(e + 1) * dout]
                       + jnp.dot(neigh.astype(jnp.bfloat16),
                                 wn_all[:, e * dout:(e + 1) * dout],
                                 preferred_element_type=jnp.float32)
                       + vecs[4 * l + 1:4 * l + 2, e * dout:(e + 1) * dout])
                if apply_relu:
                    rst = jnp.maximum(rst, 0.0)

                # LayerNorm (per-etype, before the HeteroGraphConv sum), all in f32.
                mean = jnp.mean(rst, axis=-1, keepdims=True)
                var = jnp.mean((rst - mean) ** 2, axis=-1, keepdims=True)
                rst = (rst - mean) * jax.lax.rsqrt(var + _LN_EPS)
                rst = (rst * vecs[4 * l + 2:4 * l + 3, e * dout:(e + 1) * dout]
                       + vecs[4 * l + 3:4 * l + 4, e * dout:(e + 1) * dout])

                # HeteroGraphConv aggregate='sum' per destination ntype.
                acc[dtype] = rst if dtype not in acc else acc[dtype] + rst

            h = jnp.concatenate([acc[nt] for nt in NTYPES], axis=0)      # repack [NTOT, dout]

        out_ref[...] = h                                                 # [NTOT, OUT_DIM] f32

    return kernel


# ----------------------------------------------------------------------------
# Host-side packing (pure layout plumbing: a handful of lane-dense slabs)
# ----------------------------------------------------------------------------
def _pack_feats(node_feats):
    fu, fi = FEAT_DIMS["user"], FEAT_DIMS["item"]
    f = jnp.zeros((NTOT, HL_K_PAD), jnp.float32)
    f = f.at[:NU, :fu].set(node_feats["user"])
    f = f.at[NU:, fu:fu + fi].set(node_feats["item"])
    f = f.at[:NU, fu + fi].set(1.0)         # user bias indicator column
    f = f.at[NU:, fu + fi + 1].set(1.0)     # item bias indicator column
    return f.astype(jnp.bfloat16)


def _pack_weights(params):
    layout, n_rows = _weight_layout()
    w = jnp.zeros((n_rows, W_COLS), jnp.float32)

    wu, bu = params["hl"]["user"]
    wi, bi = params["hl"]["item"]
    hl = jnp.concatenate([wu, wi, bu, bi], axis=0)              # [HL_K, EMBED] block-packed + bias
    r0, _ = layout["hl"]
    w = w.at[r0:r0 + hl.shape[0], :EMBED].set(hl)

    for l, (din, _) in enumerate(LAYER_DIMS):
        lp = params["layers"][l]
        wp = jnp.concatenate([lp[et]["wp"] for (_, et, _) in CANONICAL_ETYPES], axis=1)
        ws = jnp.concatenate([lp[et]["ws"] for (_, et, _) in CANONICAL_ETYPES], axis=1)
        wn = jnp.concatenate([lp[et]["wn"] for (_, et, _) in CANONICAL_ETYPES], axis=1)
        for kind, mat in (("wp", wp), ("ws", ws), ("wn", wn)):
            r0, _ = layout[(l, kind)]
            w = w.at[r0:r0 + din, :mat.shape[1]].set(mat)
    return w.astype(jnp.bfloat16)


def _pack_vecs(params):
    v = jnp.zeros((4 * N_LAYERS, W_COLS), jnp.float32)
    for l, (din, dout) in enumerate(LAYER_DIMS):
        lp = params["layers"][l]
        bp = jnp.concatenate([lp[et]["bp"] for (_, et, _) in CANONICAL_ETYPES], axis=1)
        bias = jnp.concatenate([lp[et]["bias"] for (_, et, _) in CANONICAL_ETYPES], axis=1)
        gamma = jnp.concatenate([lp[et]["gamma"] for (_, et, _) in CANONICAL_ETYPES], axis=1)
        beta = jnp.concatenate([lp[et]["beta"] for (_, et, _) in CANONICAL_ETYPES], axis=1)
        v = v.at[4 * l + 0, :3 * din].set(bp[0])
        v = v.at[4 * l + 1, :3 * dout].set(bias[0])
        v = v.at[4 * l + 2, :3 * dout].set(gamma[0])
        v = v.at[4 * l + 3, :3 * dout].set(beta[0])
    return v


def _pack_adjs(adjs):
    a = jnp.zeros((ADJ_ROWS, MAX_NS), jnp.float32)
    for (st, et, dt) in CANONICAL_ETYPES:
        r0 = ADJ_OFFS[et]
        a = a.at[r0:r0 + N_NODES[dt], :N_NODES[st]].set(adjs[et])
    return a


def hetsage_forward(node_feats, adjs, params):
    feat_slab = _pack_feats(node_feats)
    w_slab = _pack_weights(params)
    vec_slab = _pack_vecs(params)
    adj_slab = _pack_adjs(adjs)

    vmem = pl.BlockSpec(memory_space=pltpu.MemorySpace.VMEM)
    out = pl.pallas_call(
        _make_kernel(),
        out_shape=jax.ShapeDtypeStruct((NTOT, OUT_DIM), jnp.float32),
        in_specs=[vmem, vmem, vmem, vmem],
        out_specs=vmem,
    )(feat_slab, w_slab, vec_slab, adj_slab)
    # split the single lane-dense output slab back into per-ntype results
    return {"user": out[:NU], "item": out[NU:]}


# ----------------------------------------------------------------------------
# Parameter init
# ----------------------------------------------------------------------------
def _init_linear(key, din, dout, scale=0.1):
    kw, kb = jax.random.split(key)
    return (jax.random.normal(kw, (din, dout), jnp.float32) * scale,
            jax.random.normal(kb, (1, dout), jnp.float32) * scale)


def _init_sage(key, din, dout, scale=0.1):
    k = jax.random.split(key, 5)
    return {
        "wp": jax.random.normal(k[0], (din, din), jnp.float32) * scale,
        "bp": jax.random.normal(k[1], (1, din), jnp.float32) * scale,
        "ws": jax.random.normal(k[2], (din, dout), jnp.float32) * scale,
        "wn": jax.random.normal(k[3], (din, dout), jnp.float32) * scale,
        "bias": jax.random.normal(k[4], (1, dout), jnp.float32) * scale,
        "gamma": jnp.ones((1, dout), jnp.float32),
        "beta": jnp.zeros((1, dout), jnp.float32),
    }


def init_params(key):
    n_keys = len(NTYPES) + N_LAYERS * len(CANONICAL_ETYPES)
    keys = iter(jax.random.split(key, n_keys))
    params = {"hl": {nt: _init_linear(next(keys), FEAT_DIMS[nt], EMBED) for nt in NTYPES}}
    params["layers"] = [
        {et: _init_sage(next(keys), din, dout) for (_, et, _) in CANONICAL_ETYPES}
        for (din, dout) in LAYER_DIMS
    ]
    return params


# ----------------------------------------------------------------------------
# Pure-JAX f32 reference (independent formulation: sentinel masked max + zero-fill)
# ----------------------------------------------------------------------------
def _sage_ref(feat_src, feat_dst, adj, p, apply_relu):
    pooled = jnp.maximum(feat_src @ p["wp"] + p["bp"], 0.0)
    masked = jnp.where(adj[:, :, None] > 0, pooled[None, :, :], -1e30)
    neigh = masked.max(axis=1)
    neigh = jnp.where(adj.sum(axis=1, keepdims=True) > 0, neigh, 0.0)
    rst = feat_dst @ p["ws"] + neigh @ p["wn"] + p["bias"]
    if apply_relu:
        rst = jnp.maximum(rst, 0.0)
    mean = rst.mean(-1, keepdims=True)
    var = ((rst - mean) ** 2).mean(-1, keepdims=True)
    return (rst - mean) * jax.lax.rsqrt(var + _LN_EPS) * p["gamma"] + p["beta"]


def hetsage_forward_ref(node_feats, adjs, params):
    h = {nt: node_feats[nt] @ params["hl"][nt][0] + params["hl"][nt][1] for nt in NTYPES}
    for l, layer_p in enumerate(params["layers"]):
        apply_relu = l != N_LAYERS - 1
        new_h = {}
        for (stype, etype, dtype) in CANONICAL_ETYPES:
            out = _sage_ref(h[stype], h[dtype], adjs[etype], layer_p[etype], apply_relu)
            new_h[dtype] = out if dtype not in new_h else new_h[dtype] + out
        h = new_h
    return h


# ----------------------------------------------------------------------------
if __name__ == "__main__":
    root = jax.random.PRNGKey(0)
    k_feat, k_adj, k_par = jax.random.split(root, 3)

    # raw node features per ntype
    fkeys = jax.random.split(k_feat, len(NTYPES))
    node_feats = {
        nt: jax.random.normal(fk, (N_NODES[nt], FEAT_DIMS[nt]), jnp.float32)
        for nt, fk in zip(NTYPES, fkeys)
    }

    # dense adjacency masks per etype ([num_dst, num_src]); same "block" each layer
    akeys = jax.random.split(k_adj, len(CANONICAL_ETYPES))
    adjs = {
        et: jax.random.bernoulli(ak, 0.35, (N_NODES[dt], N_NODES[st])).astype(jnp.float32)
        for (st, et, dt), ak in zip(CANONICAL_ETYPES, akeys)
    }

    params = init_params(k_par)

    out = hetsage_forward(node_feats, adjs, params)
    for v in out.values():
        jax.block_until_ready(v)

    with jax.default_matmul_precision("float32"):
        ref = hetsage_forward_ref(node_feats, adjs, params)
    for nt in NTYPES:
        assert out[nt].shape == (N_NODES[nt], OUT_DIM)
        # Tolerance re-derived for bf16 MXU inputs vs the f32 reference:
        # 3 layers of K<=40 bf16 matmuls followed by LayerNorm keeps relative
        # error ~1%, so 5e-2 is comfortable yet still meaningful.
        if not jnp.allclose(out[nt], ref[nt], atol=5e-2, rtol=5e-2):
            err = float(jnp.max(jnp.abs(out[nt] - ref[nt])))
            raise AssertionError(f"mismatch vs reference for ntype {nt}: max|diff|={err}")

    print("KERNEL_OK")
</pallas_src>

<mosaic_0001>
module attributes {stable_mosaic.version = 11 : i64} {
  func.func @kernel(%arg0: memref<24x40xbf16, #tpu.memory_space<vmem>>, %arg1: memref<280x96xbf16, #tpu.memory_space<vmem>>, %arg2: memref<12x96xf32, #tpu.memory_space<vmem>>, %arg3: memref<40x16xf32, #tpu.memory_space<vmem>>, %arg4: memref<24x16xf32, #tpu.memory_space<vmem>>) attributes {dimension_semantics = [], scalar_prefetch = 0 : i64, scratch_operands = 0 : i64, tpu.core_type = #tpu.core_type<tc>} {
    %c0 = arith.constant 0 : index
    %c0_0 = arith.constant 0 : index
    %0 = vector.load %arg2[%c0, %c0_0] : memref<12x96xf32, #tpu.memory_space<vmem>>, vector<12x96xf32>
    %c0_1 = arith.constant 0 : index
    %c0_2 = arith.constant 0 : index
    %1 = vector.load %arg3[%c0_1, %c0_2] : memref<40x16xf32, #tpu.memory_space<vmem>>, vector<40x16xf32>
    %c0_3 = arith.constant 0 : index
    %c0_4 = arith.constant 0 : index
    %2 = vector.load %arg0[%c0_3, %c0_4] : memref<24x40xbf16, #tpu.memory_space<vmem>>, vector<24x40xbf16>
    %c0_5 = arith.constant 0 : index
    %c0_6 = arith.constant 0 : index
    %3 = vector.load %arg1[%c0_5, %c0_6] : memref<280x96xbf16, #tpu.memory_space<vmem>>, vector<40x16xbf16>
    %cst = arith.constant dense<0.000000e+00> : vector<24x16xf32>
    %4 = tpu.matmul %2, %3, %cst {dimension_numbers = #tpu.dot_dimension_numbers<[1], [0], [0], [1], [0, 0, 1, 1], [], []>} : vector<24x40xbf16>, vector<40x16xbf16>, vector<24x16xf32> -> vector<24x16xf32>
    %5 = arith.truncf %4 : vector<24x16xf32> to vector<24x16xbf16>
    %c40 = arith.constant 40 : index
    %c0_7 = arith.constant 0 : index
    %6 = vector.load %arg1[%c40, %c0_7] : memref<280x96xbf16, #tpu.memory_space<vmem>>, vector<16x96xbf16>
    %c56 = arith.constant 56 : index
    %c0_8 = arith.constant 0 : index
    %7 = vector.load %arg1[%c56, %c0_8] : memref<280x96xbf16, #tpu.memory_space<vmem>>, vector<16x96xbf16>
    %c72 = arith.constant 72 : index
    %c0_9 = arith.constant 0 : index
    %8 = vector.load %arg1[%c72, %c0_9] : memref<280x96xbf16, #tpu.memory_space<vmem>>, vector<16x96xbf16>
    %9 = vector.extract_strided_slice %0 {offsets = [0, 0], sizes = [1, 96], strides = [1, 1]} : vector<12x96xf32> to vector<1x96xf32>
    %cst_10 = arith.constant dense<0.000000e+00> : vector<24x96xf32>
    %10 = tpu.matmul %5, %6, %cst_10 {dimension_numbers = #tpu.dot_dimension_numbers<[1], [0], [0], [1], [0, 0, 1, 1], [], []>} : vector<24x16xbf16>, vector<16x96xbf16>, vector<24x96xf32> -> vector<24x96xf32>
    %11 = vector.broadcast %9 : vector<1x96xf32> to vector<24x96xf32>
    %12 = arith.addf %10, %11 : vector<24x96xf32>
    %cst_11 = arith.constant 0.000000e+00 : f32
    %13 = vector.broadcast %cst_11 : f32 to vector<24x96xf32>
    %14 = arith.maximumf %12, %13 : vector<24x96xf32>
    %cst_12 = arith.constant dense<0.000000e+00> : vector<24x96xf32>
    %15 = tpu.matmul %5, %7, %cst_12 {dimension_numbers = #tpu.dot_dimension_numbers<[1], [0], [0], [1], [0, 0, 1, 1], [], []>} : vector<24x16xbf16>, vector<16x96xbf16>, vector<24x96xf32> -> vector<24x96xf32>
    %16 = vector.extract_strided_slice %14 {offsets = [0, 0], sizes = [16, 16], strides = [1, 1]} : vector<24x96xf32> to vector<16x16xf32>
    %17 = vector.extract_strided_slice %1 {offsets = [0, 0], sizes = [16, 16], strides = [1, 1]} : vector<40x16xf32> to vector<16x16xf32>
    %18 = vector.shape_cast %17 : vector<16x16xf32> to vector<16x16x1xf32>
    %19 = vector.shape_cast %16 : vector<16x16xf32> to vector<1x16x16xf32>
    %20 = vector.broadcast %18 : vector<16x16x1xf32> to vector<16x16x16xf32>
    %21 = vector.broadcast %19 : vector<1x16x16xf32> to vector<16x16x16xf32>
    %22 = arith.mulf %20, %21 : vector<16x16x16xf32>
    %cst_13 = arith.constant dense<0xFF800000> : vector<16x16xf32>
    %23 = vector.multi_reduction <maximumf>, %22, %cst_13 [1] : vector<16x16x16xf32> to vector<16x16xf32>
    %24 = vector.extract_strided_slice %15 {offsets = [0, 0], sizes = [16, 32], strides = [1, 1]} : vector<24x96xf32> to vector<16x32xf32>
    %25 = arith.truncf %23 : vector<16x16xf32> to vector<16x16xbf16>
    %26 = vector.extract_strided_slice %8 {offsets = [0, 0], sizes = [16, 32], strides = [1, 1]} : vector<16x96xbf16> to vector<16x32xbf16>
    %cst_14 = arith.constant dense<0.000000e+00> : vector<16x32xf32>
    %27 = tpu.matmul %25, %26, %cst_14 {dimension_numbers = #tpu.dot_dimension_numbers<[1], [0], [0], [1], [0, 0, 1, 1], [], []>} : vector<16x16xbf16>, vector<16x32xbf16>, vector<16x32xf32> -> vector<16x32xf32>
    %28 = arith.addf %24, %27 : vector<16x32xf32>
    %29 = vector.extract_strided_slice %0 {offsets = [1, 0], sizes = [1, 32], strides = [1, 1]} : vector<12x96xf32> to vector<1x32xf32>
    %30 = vector.broadcast %29 : vector<1x32xf32> to vector<16x32xf32>
    %31 = arith.addf %28, %30 : vector<16x32xf32>
    %cst_15 = arith.constant 0.000000e+00 : f32
    %32 = vector.broadcast %cst_15 : f32 to vector<16x32xf32>
    %33 = arith.maximumf %31, %32 : vector<16x32xf32>
    %cst_16 = arith.constant dense<0.000000e+00> : vector<16xf32>
    %34 = vector.multi_reduction <add>, %33, %cst_16 [1] : vector<16x32xf32> to vector<16xf32>
    %35 = vector.shape_cast %34 : vector<16xf32> to vector<16x1xf32>
    %cst_17 = arith.constant 3.200000e+01 : f32
    %36 = vector.broadcast %cst_17 : f32 to vector<16x1xf32>
    %37 = arith.divf %35, %36 : vector<16x1xf32>
    %38 = vector.broadcast %37 : vector<16x1xf32> to vector<16x32xf32>
    %39 = arith.subf %33, %38 : vector<16x32xf32>
    %40 = arith.mulf %39, %39 : vector<16x32xf32>
    %cst_18 = arith.constant dense<0.000000e+00> : vector<16xf32>
    %41 = vector.multi_reduction <add>, %40, %cst_18 [1] : vector<16x32xf32> to vector<16xf32>
    %42 = vector.shape_cast %41 : vector<16xf32> to vector<16x1xf32>
    %cst_19 = arith.constant 3.200000e+01 : f32
    %43 = vector.broadcast %cst_19 : f32 to vector<16x1xf32>
    %44 = arith.divf %42, %43 : vector<16x1xf32>
    %45 = vector.broadcast %37 : vector<16x1xf32> to vector<16x32xf32>
    %46 = arith.subf %33, %45 : vector<16x32xf32>
    %cst_20 = arith.constant 9.99999974E-6 : f32
    %47 = vector.broadcast %cst_20 : f32 to vector<16x1xf32>
    %48 = arith.addf %44, %47 : vector<16x1xf32>
    %49 = math.rsqrt %48 : vector<16x1xf32>
    %50 = vector.broadcast %49 : vector<16x1xf32> to vector<16x32xf32>
    %51 = arith.mulf %46, %50 : vector<16x32xf32>
    %52 = vector.extract_strided_slice %0 {offsets = [2, 0], sizes = [1, 32], strides = [1, 1]} : vector<12x96xf32> to vector<1x32xf32>
    %53 = vector.broadcast %52 : vector<1x32xf32> to vector<16x32xf32>
    %54 = arith.mulf %51, %53 : vector<16x32xf32>
    %55 = vector.extract_strided_slice %0 {offsets = [3, 0], sizes = [1, 32], strides = [1, 1]} : vector<12x96xf32> to vector<1x32xf32>
    %56 = vector.broadcast %55 : vector<1x32xf32> to vector<16x32xf32>
    %57 = arith.addf %54, %56 : vector<16x32xf32>
    %58 = vector.extract_strided_slice %14 {offsets = [0, 16], sizes = [16, 16], strides = [1, 1]} : vector<24x96xf32> to vector<16x16xf32>
    %59 = vector.extract_strided_slice %1 {offsets = [16, 0], sizes = [8, 16], strides = [1, 1]} : vector<40x16xf32> to vector<8x16xf32>
    %60 = vector.shape_cast %59 : vector<8x16xf32> to vector<8x16x1xf32>
    %61 = vector.shape_cast %58 : vector<16x16xf32> to vector<1x16x16xf32>
    %62 = vector.broadcast %60 : vector<8x16x1xf32> to vector<8x16x16xf32>
    %63 = vector.broadcast %61 : vector<1x16x16xf32> to vector<8x16x16xf32>
    %64 = arith.mulf %62, %63 : vector<8x16x16xf32>
    %cst_21 = arith.constant dense<0xFF800000> : vector<8x16xf32>
    %65 = vector.multi_reduction <maximumf>, %64, %cst_21 [1] : vector<8x16x16xf32> to vector<8x16xf32>
    %66 = vector.extract_strided_slice %15 {offsets = [16, 32], sizes = [8, 32], strides = [1, 1]} : vector<24x96xf32> to vector<8x32xf32>
    %67 = arith.truncf %65 : vector<8x16xf32> to vector<8x16xbf16>
    %68 = vector.extract_strided_slice %8 {offsets = [0, 32], sizes = [16, 32], strides = [1, 1]} : vector<16x96xbf16> to vector<16x32xbf16>
    %cst_22 = arith.constant dense<0.000000e+00> : vector<8x32xf32>
    %69 = tpu.matmul %67, %68, %cst_22 {dimension_numbers = #tpu.dot_dimension_numbers<[1], [0], [0], [1], [0, 0, 1, 1], [], []>} : vector<8x16xbf16>, vector<16x32xbf16>, vector<8x32xf32> -> vector<8x32xf32>
    %70 = arith.addf %66, %69 : vector<8x32xf32>
    %71 = vector.extract_strided_slice %0 {offsets = [1, 32], sizes = [1, 32], strides = [1, 1]} : vector<12x96xf32> to vector<1x32xf32>
    %72 = vector.broadcast %71 : vector<1x32xf32> to vector<8x32xf32>
    %73 = arith.addf %70, %72 : vector<8x32xf32>
    %cst_23 = arith.constant 0.000000e+00 : f32
    %74 = vector.broadcast %cst_23 : f32 to vector<8x32xf32>
    %75 = arith.maximumf %73, %74 : vector<8x32xf32>
    %cst_24 = arith.constant dense<0.000000e+00> : vector<8xf32>
    %76 = vector.multi_reduction <add>, %75, %cst_24 [1] : vector<8x32xf32> to vector<8xf32>
    %77 = vector.shape_cast %76 : vector<8xf32> to vector<8x1xf32>
    %cst_25 = arith.constant 3.200000e+01 : f32
    %78 = vector.broadcast %cst_25 : f32 to vector<8x1xf32>
    %79 = arith.divf %77, %78 : vector<8x1xf32>
    %80 = vector.broadcast %79 : vector<8x1xf32> to vector<8x32xf32>
    %81 = arith.subf %75, %80 : vector<8x32xf32>
    %82 = arith.mulf %81, %81 : vector<8x32xf32>
    %cst_26 = arith.constant dense<0.000000e+00> : vector<8xf32>
    %83 = vector.multi_reduction <add>, %82, %cst_26 [1] : vector<8x32xf32> to vector<8xf32>
    %84 = vector.shape_cast %83 : vector<8xf32> to vector<8x1xf32>
    %cst_27 = arith.constant 3.200000e+01 : f32
    %85 = vector.broadcast %cst_27 : f32 to vector<8x1xf32>
    %86 = arith.divf %84, %85 : vector<8x1xf32>
    %87 = vector.broadcast %79 : vector<8x1xf32> to vector<8x32xf32>
    %88 = arith.subf %75, %87 : vector<8x32xf32>
    %cst_28 = arith.constant 9.99999974E-6 : f32
    %89 = vector.broadcast %cst_28 : f32 to vector<8x1xf32>
    %90 = arith.addf %86, %89 : vector<8x1xf32>
    %91 = math.rsqrt %90 : vector<8x1xf32>
    %92 = vector.broadcast %91 : vector<8x1xf32> to vector<8x32xf32>
    %93 = arith.mulf %88, %92 : vector<8x32xf32>
    %94 = vector.extract_strided_slice %0 {offsets = [2, 32], sizes = [1, 32], strides = [1, 1]} : vector<12x96xf32> to vector<1x32xf32>
    %95 = vector.broadcast %94 : vector<1x32xf32> to vector<8x32xf32>
    %96 = arith.mulf %93, %95 : vector<8x32xf32>
    %97 = vector.extract_strided_slice %0 {offsets = [3, 32], sizes = [1, 32], strides = [1, 1]} : vector<12x96xf32> to vector<1x32xf32>
    %98 = vector.broadcast %97 : vector<1x32xf32> to vector<8x32xf32>
    %99 = arith.addf %96, %98 : vector<8x32xf32>
    %100 = vector.extract_strided_slice %14 {offsets = [16, 32], sizes = [8, 16], strides = [1, 1]} : vector<24x96xf32> to vector<8x16xf32>
    %101 = vector.extract_strided_slice %1 {offsets = [24, 0], sizes = [16, 8], strides = [1, 1]} : vector<40x16xf32> to vector<16x8xf32>
    %102 = vector.shape_cast %101 : vector<16x8xf32> to vector<16x8x1xf32>
    %103 = vector.shape_cast %100 : vector<8x16xf32> to vector<1x8x16xf32>
    %104 = vector.broadcast %102 : vector<16x8x1xf32> to vector<16x8x16xf32>
    %105 = vector.broadcast %103 : vector<1x8x16xf32> to vector<16x8x16xf32>
    %106 = arith.mulf %104, %105 : vector<16x8x16xf32>
    %cst_29 = arith.constant dense<0xFF800000> : vector<16x16xf32>
    %107 = vector.multi_reduction <maximumf>, %106, %cst_29 [1] : vector<16x8x16xf32> to vector<16x16xf32>
    %108 = vector.extract_strided_slice %15 {offsets = [0, 64], sizes = [16, 32], strides = [1, 1]} : vector<24x96xf32> to vector<16x32xf32>
    %109 = arith.truncf %107 : vector<16x16xf32> to vector<16x16xbf16>
    %110 = vector.extract_strided_slice %8 {offsets = [0, 64], sizes = [16, 32], strides = [1, 1]} : vector<16x96xbf16> to vector<16x32xbf16>
    %cst_30 = arith.constant dense<0.000000e+00> : vector<16x32xf32>
    %111 = tpu.matmul %109, %110, %cst_30 {dimension_numbers = #tpu.dot_dimension_numbers<[1], [0], [0], [1], [0, 0, 1, 1], [], []>} : vector<16x16xbf16>, vector<16x32xbf16>, vector<16x32xf32> -> vector<16x32xf32>
    %112 = arith.addf %108, %111 : vector<16x32xf32>
    %113 = vector.extract_strided_slice %0 {offsets = [1, 64], sizes = [1, 32], strides = [1, 1]} : vector<12x96xf32> to vector<1x32xf32>
    %114 = vector.broadcast %113 : vector<1x32xf32> to vector<16x32xf32>
    %115 = arith.addf %112, %114 : vector<16x32xf32>
    %cst_31 = arith.constant 0.000000e+00 : f32
    %116 = vector.broadcast %cst_31 : f32 to vector<16x32xf32>
    %117 = arith.maximumf %115, %116 : vector<16x32xf32>
    %cst_32 = arith.constant dense<0.000000e+00> : vector<16xf32>
    %118 = vector.multi_reduction <add>, %117, %cst_32 [1] : vector<16x32xf32> to vector<16xf32>
    %119 = vector.shape_cast %118 : vector<16xf32> to vector<16x1xf32>
    %cst_33 = arith.constant 3.200000e+01 : f32
    %120 = vector.broadcast %cst_33 : f32 to vector<16x1xf32>
    %121 = arith.divf %119, %120 : vector<16x1xf32>
    %122 = vector.broadcast %121 : vector<16x1xf32> to vector<16x32xf32>
    %123 = arith.subf %117, %122 : vector<16x32xf32>
    %124 = arith.mulf %123, %123 : vector<16x32xf32>
    %cst_34 = arith.constant dense<0.000000e+00> : vector<16xf32>
    %125 = vector.multi_reduction <add>, %124, %cst_34 [1] : vector<16x32xf32> to vector<16xf32>
    %126 = vector.shape_cast %125 : vector<16xf32> to vector<16x1xf32>
    %cst_35 = arith.constant 3.200000e+01 : f32
    %127 = vector.broadcast %cst_35 : f32 to vector<16x1xf32>
    %128 = arith.divf %126, %127 : vector<16x1xf32>
    %129 = vector.broadcast %121 : vector<16x1xf32> to vector<16x32xf32>
    %130 = arith.subf %117, %129 : vector<16x32xf32>
    %cst_36 = arith.constant 9.99999974E-6 : f32
    %131 = vector.broadcast %cst_36 : f32 to vector<16x1xf32>
    %132 = arith.addf %128, %131 : vector<16x1xf32>
    %133 = math.rsqrt %132 : vector<16x1xf32>
    %134 = vector.broadcast %133 : vector<16x1xf32> to vector<16x32xf32>
    %135 = arith.mulf %130, %134 : vector<16x32xf32>
    %136 = vector.extract_strided_slice %0 {offsets = [2, 64], sizes = [1, 32], strides = [1, 1]} : vector<12x96xf32> to vector<1x32xf32>
    %137 = vector.broadcast %136 : vector<1x32xf32> to vector<16x32xf32>
    %138 = arith.mulf %135, %137 : vector<16x32xf32>
    %139 = vector.extract_strided_slice %0 {offsets = [3, 64], sizes = [1, 32], strides = [1, 1]} : vector<12x96xf32> to vector<1x32xf32>
    %140 = vector.broadcast %139 : vector<1x32xf32> to vector<16x32xf32>
    %141 = arith.addf %138, %140 : vector<16x32xf32>
    %142 = arith.addf %57, %141 : vector<16x32xf32>
    %143 = tpu.concatenate %142, %99 in 0 : vector<16x32xf32>, vector<8x32xf32> -> vector<24x32xf32>
    %144 = arith.truncf %143 : vector<24x32xf32> to vector<24x32xbf16>
    %c88 = arith.constant 88 : index
    %c0_37 = arith.constant 0 : index
    %145 = vector.load %arg1[%c88, %c0_37] : memref<280x96xbf16, #tpu.memory_space<vmem>>, vector<32x96xbf16>
    %c120 = arith.constant 120 : index
    %c0_38 = arith.constant 0 : index
    %146 = vector.load %arg1[%c120, %c0_38] : memref<280x96xbf16, #tpu.memory_space<vmem>>, vector<32x96xbf16>
    %c152 = arith.constant 152 : index
    %c0_39 = arith.constant 0 : index
    %147 = vector.load %arg1[%c152, %c0_39] : memref<280x96xbf16, #tpu.memory_space<vmem>>, vector<32x96xbf16>
    %148 = vector.extract_strided_slice %0 {offsets = [4, 0], sizes = [1, 96], strides = [1, 1]} : vector<12x96xf32> to vector<1x96xf32>
    %cst_40 = arith.constant dense<0.000000e+00> : vector<24x96xf32>
    %149 = tpu.matmul %144, %145, %cst_40 {dimension_numbers = #tpu.dot_dimension_numbers<[1], [0], [0], [1], [0, 0, 1, 1], [], []>} : vector<24x32xbf16>, vector<32x96xbf16>, vector<24x96xf32> -> vector<24x96xf32>
    %150 = vector.broadcast %148 : vector<1x96xf32> to vector<24x96xf32>
    %151 = arith.addf %149, %150 : vector<24x96xf32>
    %cst_41 = arith.constant 0.000000e+00 : f32
    %152 = vector.broadcast %cst_41 : f32 to vector<24x96xf32>
    %153 = arith.maximumf %151, %152 : vector<24x96xf32>
    %cst_42 = arith.constant dense<0.000000e+00> : vector<24x96xf32>
    %154 = tpu.matmul %144, %146, %cst_42 {dimension_numbers = #tpu.dot_dimension_numbers<[1], [0], [0], [1], [0, 0, 1, 1], [], []>} : vector<24x32xbf16>, vector<32x96xbf16>, vector<24x96xf32> -> vector<24x96xf32>
    %155 = vector.extract_strided_slice %153 {offsets = [0, 0], sizes = [16, 32], strides = [1, 1]} : vector<24x96xf32> to vector<16x32xf32>
    %156 = vector.extract_strided_slice %1 {offsets = [0, 0], sizes = [16, 16], strides = [1, 1]} : vector<40x16xf32> to vector<16x16xf32>
    %157 = vector.shape_cast %156 : vector<16x16xf32> to vector<16x16x1xf32>
    %158 = vector.shape_cast %155 : vector<16x32xf32> to vector<1x16x32xf32>
    %159 = vector.broadcast %157 : vector<16x16x1xf32> to vector<16x16x32xf32>
    %160 = vector.broadcast %158 : vector<1x16x32xf32> to vector<16x16x32xf32>
    %161 = arith.mulf %159, %160 : vector<16x16x32xf32>
    %cst_43 = arith.constant dense<0xFF800000> : vector<16x32xf32>
    %162 = vector.multi_reduction <maximumf>, %161, %cst_43 [1] : vector<16x16x32xf32> to vector<16x32xf32>
    %163 = vector.extract_strided_slice %154 {offsets = [0, 0], sizes = [16, 32], strides = [1, 1]} : vector<24x96xf32> to vector<16x32xf32>
    %164 = arith.truncf %162 : vector<16x32xf32> to vector<16x32xbf16>
    %165 = vector.extract_strided_slice %147 {offsets = [0, 0], sizes = [32, 32], strides = [1, 1]} : vector<32x96xbf16> to vector<32x32xbf16>
    %cst_44 = arith.constant dense<0.000000e+00> : vector<16x32xf32>
    %166 = tpu.matmul %164, %165, %cst_44 {dimension_numbers = #tpu.dot_dimension_numbers<[1], [0], [0], [1], [0, 0, 1, 1], [], []>} : vector<16x32xbf16>, vector<32x32xbf16>, vector<16x32xf32> -> vector<16x32xf32>
    %167 = arith.addf %163, %166 : vector<16x32xf32>
    %168 = vector.extract_strided_slice %0 {offsets = [5, 0], sizes = [1, 32], strides = [1, 1]} : vector<12x96xf32> to vector<1x32xf32>
    %169 = vector.broadcast %168 : vector<1x32xf32> to vector<16x32xf32>
    %170 = arith.addf %167, %169 : vector<16x32xf32>
    %cst_45 = arith.constant 0.000000e+00 : f32
    %171 = vector.broadcast %cst_45 : f32 to vector<16x32xf32>
    %172 = arith.maximumf %170, %171 : vector<16x32xf32>
    %cst_46 = arith.constant dense<0.000000e+00> : vector<16xf32>
    %173 = vector.multi_reduction <add>, %172, %cst_46 [1] : vector<16x32xf32> to vector<16xf32>
    %174 = vector.shape_cast %173 : vector<16xf32> to vector<16x1xf32>
    %cst_47 = arith.constant 3.200000e+01 : f32
    %175 = vector.broadcast %cst_47 : f32 to vector<16x1xf32>
    %176 = arith.divf %174, %175 : vector<16x1xf32>
    %177 = vector.broadcast %176 : vector<16x1xf32> to vector<16x32xf32>
    %178 = arith.subf %172, %177 : vector<16x32xf32>
    %179 = arith.mulf %178, %178 : vector<16x32xf32>
    %cst_48 = arith.constant dense<0.000000e+00> : vector<16xf32>
    %180 = vector.multi_reduction <add>, %179, %cst_48 [1] : vector<16x32xf32> to vector<16xf32>
    %181 = vector.shape_cast %180 : vector<16xf32> to vector<16x1xf32>
    %cst_49 = arith.constant 3.200000e+01 : f32
    %182 = vector.broadcast %cst_49 : f32 to vector<16x1xf32>
    %183 = arith.divf %181, %182 : vector<16x1xf32>
    %184 = vector.broadcast %176 : vector<16x1xf32> to vector<16x32xf32>
    %185 = arith.subf %172, %184 : vector<16x32xf32>
    %cst_50 = arith.constant 9.99999974E-6 : f32
    %186 = vector.broadcast %cst_50 : f32 to vector<16x1xf32>
    %187 = arith.addf %183, %186 : vector<16x1xf32>
    %188 = math.rsqrt %187 : vector<16x1xf32>
    %189 = vector.broadcast %188 : vector<16x1xf32> to vector<16x32xf32>
    %190 = arith.mulf %185, %189 : vector<16x32xf32>
    %191 = vector.extract_strided_slice %0 {offsets = [6, 0], sizes = [1, 32], strides = [1, 1]} : vector<12x96xf32> to vector<1x32xf32>
    %192 = vector.broadcast %191 : vector<1x32xf32> to vector<16x32xf32>
    %193 = arith.mulf %190, %192 : vector<16x32xf32>
    %194 = vector.extract_strided_slice %0 {offsets = [7, 0], sizes = [1, 32], strides = [1, 1]} : vector<12x96xf32> to vector<1x32xf32>
    %195 = vector.broadcast %194 : vector<1x32xf32> to vector<16x32xf32>
    %196 = arith.addf %193, %195 : vector<16x32xf32>
    %197 = vector.extract_strided_slice %153 {offsets = [0, 32], sizes = [16, 32], strides = [1, 1]} : vector<24x96xf32> to vector<16x32xf32>
    %198 = vector.extract_strided_slice %1 {offsets = [16, 0], sizes = [8, 16], strides = [1, 1]} : vector<40x16xf32> to vector<8x16xf32>
    %199 = vector.shape_cast %198 : vector<8x16xf32> to vector<8x16x1xf32>
    %200 = vector.shape_cast %197 : vector<16x32xf32> to vector<1x16x32xf32>
    %201 = vector.broadcast %199 : vector<8x16x1xf32> to vector<8x16x32xf32>
    %202 = vector.broadcast %200 : vector<1x16x32xf32> to vector<8x16x32xf32>
    %203 = arith.mulf %201, %202 : vector<8x16x32xf32>
    %cst_51 = arith.constant dense<0xFF800000> : vector<8x32xf32>
    %204 = vector.multi_reduction <maximumf>, %203, %cst_51 [1] : vector<8x16x32xf32> to vector<8x32xf32>
    %205 = vector.extract_strided_slice %154 {offsets = [16, 32], sizes = [8, 32], strides = [1, 1]} : vector<24x96xf32> to vector<8x32xf32>
    %206 = arith.truncf %204 : vector<8x32xf32> to vector<8x32xbf16>
    %207 = vector.extract_strided_slice %147 {offsets = [0, 32], sizes = [32, 32], strides = [1, 1]} : vector<32x96xbf16> to vector<32x32xbf16>
    %cst_52 = arith.constant dense<0.000000e+00> : vector<8x32xf32>
    %208 = tpu.matmul %206, %207, %cst_52 {dimension_numbers = #tpu.dot_dimension_numbers<[1], [0], [0], [1], [0, 0, 1, 1], [], []>} : vector<8x32xbf16>, vector<32x32xbf16>, vector<8x32xf32> -> vector<8x32xf32>
    %209 = arith.addf %205, %208 : vector<8x32xf32>
    %210 = vector.extract_strided_slice %0 {offsets = [5, 32], sizes = [1, 32], strides = [1, 1]} : vector<12x96xf32> to vector<1x32xf32>
    %211 = vector.broadcast %210 : vector<1x32xf32> to vector<8x32xf32>
    %212 = arith.addf %209, %211 : vector<8x32xf32>
    %cst_53 = arith.constant 0.000000e+00 : f32
    %213 = vector.broadcast %cst_53 : f32 to vector<8x32xf32>
    %214 = arith.maximumf %212, %213 : vector<8x32xf32>
    %cst_54 = arith.constant dense<0.000000e+00> : vector<8xf32>
    %215 = vector.multi_reduction <add>, %214, %cst_54 [1] : vector<8x32xf32> to vector<8xf32>
    %216 = vector.shape_cast %215 : vector<8xf32> to vector<8x1xf32>
    %cst_55 = arith.constant 3.200000e+01 : f32
    %217 = vector.broadcast %cst_55 : f32 to vector<8x1xf32>
    %218 = arith.divf %216, %217 : vector<8x1xf32>
    %219 = vector.broadcast %218 : vector<8x1xf32> to vector<8x32xf32>
    %220 = arith.subf %214, %219 : vector<8x32xf32>
    %221 = arith.mulf %220, %220 : vector<8x32xf32>
    %cst_56 = arith.constant dense<0.000000e+00> : vector<8xf32>
    %222 = vector.multi_reduction <add>, %221, %cst_56 [1] : vector<8x32xf32> to vector<8xf32>
    %223 = vector.shape_cast %222 : vector<8xf32> to vector<8x1xf32>
    %cst_57 = arith.constant 3.200000e+01 : f32
    %224 = vector.broadcast %cst_57 : f32 to vector<8x1xf32>
    %225 = arith.divf %223, %224 : vector<8x1xf32>
    %226 = vector.broadcast %218 : vector<8x1xf32> to vector<8x32xf32>
    %227 = arith.subf %214, %226 : vector<8x32xf32>
    %cst_58 = arith.constant 9.99999974E-6 : f32
    %228 = vector.broadcast %cst_58 : f32 to vector<8x1xf32>
    %229 = arith.addf %225, %228 : vector<8x1xf32>
    %230 = math.rsqrt %229 : vector<8x1xf32>
    %231 = vector.broadcast %230 : vector<8x1xf32> to vector<8x32xf32>
    %232 = arith.mulf %227, %231 : vector<8x32xf32>
    %233 = vector.extract_strided_slice %0 {offsets = [6, 32], sizes = [1, 32], strides = [1, 1]} : vector<12x96xf32> to vector<1x32xf32>
    %234 = vector.broadcast %233 : vector<1x32xf32> to vector<8x32xf32>
    %235 = arith.mulf %232, %234 : vector<8x32xf32>
    %236 = vector.extract_strided_slice %0 {offsets = [7, 32], sizes = [1, 32], strides = [1, 1]} : vector<12x96xf32> to vector<1x32xf32>
    %237 = vector.broadcast %236 : vector<1x32xf32> to vector<8x32xf32>
    %238 = arith.addf %235, %237 : vector<8x32xf32>
    %239 = vector.extract_strided_slice %153 {offsets = [16, 64], sizes = [8, 32], strides = [1, 1]} : vector<24x96xf32> to vector<8x32xf32>
    %240 = vector.extract_strided_slice %1 {offsets = [24, 0], sizes = [16, 8], strides = [1, 1]} : vector<40x16xf32> to vector<16x8xf32>
    %241 = vector.shape_cast %240 : vector<16x8xf32> to vector<16x8x1xf32>
    %242 = vector.shape_cast %239 : vector<8x32xf32> to vector<1x8x32xf32>
    %243 = vector.broadcast %241 : vector<16x8x1xf32> to vector<16x8x32xf32>
    %244 = vector.broadcast %242 : vector<1x8x32xf32> to vector<16x8x32xf32>
    %245 = arith.mulf %243, %244 : vector<16x8x32xf32>
    %cst_59 = arith.constant dense<0xFF800000> : vector<16x32xf32>
    %246 = vector.multi_reduction <maximumf>, %245, %cst_59 [1] : vector<16x8x32xf32> to vector<16x32xf32>
    %247 = vector.extract_strided_slice %154 {offsets = [0, 64], sizes = [16, 32], strides = [1, 1]} : vector<24x96xf32> to vector<16x32xf32>
    %248 = arith.truncf %246 : vector<16x32xf32> to vector<16x32xbf16>
    %249 = vector.extract_strided_slice %147 {offsets = [0, 64], sizes = [32, 32], strides = [1, 1]} : vector<32x96xbf16> to vector<32x32xbf16>
    %cst_60 = arith.constant dense<0.000000e+00> : vector<16x32xf32>
    %250 = tpu.matmul %248, %249, %cst_60 {dimension_numbers = #tpu.dot_dimension_numbers<[1], [0], [0], [1], [0, 0, 1, 1], [], []>} : vector<16x32xbf16>, vector<32x32xbf16>, vector<16x32xf32> -> vector<16x32xf32>
    %251 = arith.addf %247, %250 : vector<16x32xf32>
    %252 = vector.extract_strided_slice %0 {offsets = [5, 64], sizes = [1, 32], strides = [1, 1]} : vector<12x96xf32> to vector<1x32xf32>
    %253 = vector.broadcast %252 : vector<1x32xf32> to vector<16x32xf32>
    %254 = arith.addf %251, %253 : vector<16x32xf32>
    %cst_61 = arith.constant 0.000000e+00 : f32
    %255 = vector.broadcast %cst_61 : f32 to vector<16x32xf32>
    %256 = arith.maximumf %254, %255 : vector<16x32xf32>
    %cst_62 = arith.constant dense<0.000000e+00> : vector<16xf32>
    %257 = vector.multi_reduction <add>, %256, %cst_62 [1] : vector<16x32xf32> to vector<16xf32>
    %258 = vector.shape_cast %257 : vector<16xf32> to vector<16x1xf32>
    %cst_63 = arith.constant 3.200000e+01 : f32
    %259 = vector.broadcast %cst_63 : f32 to vector<16x1xf32>
    %260 = arith.divf %258, %259 : vector<16x1xf32>
    %261 = vector.broadcast %260 : vector<16x1xf32> to vector<16x32xf32>
    %262 = arith.subf %256, %261 : vector<16x32xf32>
    %263 = arith.mulf %262, %262 : vector<16x32xf32>
    %cst_64 = arith.constant dense<0.000000e+00> : vector<16xf32>
    %264 = vector.multi_reduction <add>, %263, %cst_64 [1] : vector<16x32xf32> to vector<16xf32>
    %265 = vector.shape_cast %264 : vector<16xf32> to vector<16x1xf32>
    %cst_65 = arith.constant 3.200000e+01 : f32
    %266 = vector.broadcast %cst_65 : f32 to vector<16x1xf32>
    %267 = arith.divf %265, %266 : vector<16x1xf32>
    %268 = vector.broadcast %260 : vector<16x1xf32> to vector<16x32xf32>
    %269 = arith.subf %256, %268 : vector<16x32xf32>
    %cst_66 = arith.constant 9.99999974E-6 : f32
    %270 = vector.broadcast %cst_66 : f32 to vector<16x1xf32>
    %271 = arith.addf %267, %270 : vector<16x1xf32>
    %272 = math.rsqrt %271 : vector<16x1xf32>
    %273 = vector.broadcast %272 : vector<16x1xf32> to vector<16x32xf32>
    %274 = arith.mulf %269, %273 : vector<16x32xf32>
    %275 = vector.extract_strided_slice %0 {offsets = [6, 64], sizes = [1, 32], strides = [1, 1]} : vector<12x96xf32> to vector<1x32xf32>
    %276 = vector.broadcast %275 : vector<1x32xf32> to vector<16x32xf32>
    %277 = arith.mulf %274, %276 : vector<16x32xf32>
    %278 = vector.extract_strided_slice %0 {offsets = [7, 64], sizes = [1, 32], strides = [1, 1]} : vector<12x96xf32> to vector<1x32xf32>
    %279 = vector.broadcast %278 : vector<1x32xf32> to vector<16x32xf32>
    %280 = arith.addf %277, %279 : vector<16x32xf32>
    %281 = arith.addf %196, %280 : vector<16x32xf32>
    %282 = tpu.concatenate %281, %238 in 0 : vector<16x32xf32>, vector<8x32xf32> -> vector<24x32xf32>
    %283 = arith.truncf %282 : vector<24x32xf32> to vector<24x32xbf16>
    %c184 = arith.constant 184 : index
    %c0_67 = arith.constant 0 : index
    %284 = vector.load %arg1[%c184, %c0_67] : memref<280x96xbf16, #tpu.memory_space<vmem>>, vector<32x96xbf16>
    %c216 = arith.constant 216 : index
    %c0_68 = arith.constant 0 : index
    %285 = vector.load %arg1[%c216, %c0_68] : memref<280x96xbf16, #tpu.memory_space<vmem>>, vector<32x96xbf16>
    %c248 = arith.constant 248 : index
    %c0_69 = arith.constant 0 : index
    %286 = vector.load %arg1[%c248, %c0_69] : memref<280x96xbf16, #tpu.memory_space<vmem>>, vector<32x96xbf16>
    %287 = vector.extract_strided_slice %0 {offsets = [8, 0], sizes = [1, 96], strides = [1, 1]} : vector<12x96xf32> to vector<1x96xf32>
    %cst_70 = arith.constant dense<0.000000e+00> : vector<24x96xf32>
    %288 = tpu.matmul %283, %284, %cst_70 {dimension_numbers = #tpu.dot_dimension_numbers<[1], [0], [0], [1], [0, 0, 1, 1], [], []>} : vector<24x32xbf16>, vector<32x96xbf16>, vector<24x96xf32> -> vector<24x96xf32>
    %289 = vector.broadcast %287 : vector<1x96xf32> to vector<24x96xf32>
    %290 = arith.addf %288, %289 : vector<24x96xf32>
    %cst_71 = arith.constant 0.000000e+00 : f32
    %291 = vector.broadcast %cst_71 : f32 to vector<24x96xf32>
    %292 = arith.maximumf %290, %291 : vector<24x96xf32>
    %cst_72 = arith.constant dense<0.000000e+00> : vector<24x96xf32>
    %293 = tpu.matmul %283, %285, %cst_72 {dimension_numbers = #tpu.dot_dimension_numbers<[1], [0], [0], [1], [0, 0, 1, 1], [], []>} : vector<24x32xbf16>, vector<32x96xbf16>, vector<24x96xf32> -> vector<24x96xf32>
    %294 = vector.extract_strided_slice %292 {offsets = [0, 0], sizes = [16, 32], strides = [1, 1]} : vector<24x96xf32> to vector<16x32xf32>
    %295 = vector.extract_strided_slice %1 {offsets = [0, 0], sizes = [16, 16], strides = [1, 1]} : vector<40x16xf32> to vector<16x16xf32>
    %296 = vector.shape_cast %295 : vector<16x16xf32> to vector<16x16x1xf32>
    %297 = vector.shape_cast %294 : vector<16x32xf32> to vector<1x16x32xf32>
    %298 = vector.broadcast %296 : vector<16x16x1xf32> to vector<16x16x32xf32>
    %299 = vector.broadcast %297 : vector<1x16x32xf32> to vector<16x16x32xf32>
    %300 = arith.mulf %298, %299 : vector<16x16x32xf32>
    %cst_73 = arith.constant dense<0xFF800000> : vector<16x32xf32>
    %301 = vector.multi_reduction <maximumf>, %300, %cst_73 [1] : vector<16x16x32xf32> to vector<16x32xf32>
    %302 = vector.extract_strided_slice %293 {offsets = [0, 0], sizes = [16, 16], strides = [1, 1]} : vector<24x96xf32> to vector<16x16xf32>
    %303 = arith.truncf %301 : vector<16x32xf32> to vector<16x32xbf16>
    %304 = vector.extract_strided_slice %286 {offsets = [0, 0], sizes = [32, 16], strides = [1, 1]} : vector<32x96xbf16> to vector<32x16xbf16>
    %cst_74 = arith.constant dense<0.000000e+00> : vector<16x16xf32>
    %305 = tpu.matmul %303, %304, %cst_74 {dimension_numbers = #tpu.dot_dimension_numbers<[1], [0], [0], [1], [0, 0, 1, 1], [], []>} : vector<16x32xbf16>, vector<32x16xbf16>, vector<16x16xf32> -> vector<16x16xf32>
    %306 = arith.addf %302, %305 : vector<16x16xf32>
    %307 = vector.extract_strided_slice %0 {offsets = [9, 0], sizes = [1, 16], strides = [1, 1]} : vector<12x96xf32> to vector<1x16xf32>
    %308 = vector.broadcast %307 : vector<1x16xf32> to vector<16x16xf32>
    %309 = arith.addf %306, %308 : vector<16x16xf32>
    %cst_75 = arith.constant dense<0.000000e+00> : vector<16xf32>
    %310 = vector.multi_reduction <add>, %309, %cst_75 [1] : vector<16x16xf32> to vector<16xf32>
    %311 = vector.shape_cast %310 : vector<16xf32> to vector<16x1xf32>
    %cst_76 = arith.constant 1.600000e+01 : f32
    %312 = vector.broadcast %cst_76 : f32 to vector<16x1xf32>
    %313 = arith.divf %311, %312 : vector<16x1xf32>
    %314 = vector.broadcast %313 : vector<16x1xf32> to vector<16x16xf32>
    %315 = arith.subf %309, %314 : vector<16x16xf32>
    %316 = arith.mulf %315, %315 : vector<16x16xf32>
    %cst_77 = arith.constant dense<0.000000e+00> : vector<16xf32>
    %317 = vector.multi_reduction <add>, %316, %cst_77 [1] : vector<16x16xf32> to vector<16xf32>
    %318 = vector.shape_cast %317 : vector<16xf32> to vector<16x1xf32>
    %cst_78 = arith.constant 1.600000e+01 : f32
    %319 = vector.broadcast %cst_78 : f32 to vector<16x1xf32>
    %320 = arith.divf %318, %319 : vector<16x1xf32>
    %321 = vector.broadcast %313 : vector<16x1xf32> to vector<16x16xf32>
    %322 = arith.subf %309, %321 : vector<16x16xf32>
    %cst_79 = arith.constant 9.99999974E-6 : f32
    %323 = vector.broadcast %cst_79 : f32 to vector<16x1xf32>
    %324 = arith.addf %320, %323 : vector<16x1xf32>
    %325 = math.rsqrt %324 : vector<16x1xf32>
    %326 = vector.broadcast %325 : vector<16x1xf32> to vector<16x16xf32>
    %327 = arith.mulf %322, %326 : vector<16x16xf32>
    %328 = vector.extract_strided_slice %0 {offsets = [10, 0], sizes = [1, 16], strides = [1, 1]} : vector<12x96xf32> to vector<1x16xf32>
    %329 = vector.broadcast %328 : vector<1x16xf32> to vector<16x16xf32>
    %330 = arith.mulf %327, %329 : vector<16x16xf32>
    %331 = vector.extract_strided_slice %0 {offsets = [11, 0], sizes = [1, 16], strides = [1, 1]} : vector<12x96xf32> to vector<1x16xf32>
    %332 = vector.broadcast %331 : vector<1x16xf32> to vector<16x16xf32>
    %333 = arith.addf %330, %332 : vector<16x16xf32>
    %334 = vector.extract_strided_slice %292 {offsets = [0, 32], sizes = [16, 32], strides = [1, 1]} : vector<24x96xf32> to vector<16x32xf32>
    %335 = vector.extract_strided_slice %1 {offsets = [16, 0], sizes = [8, 16], strides = [1, 1]} : vector<40x16xf32> to vector<8x16xf32>
    %336 = vector.shape_cast %335 : vector<8x16xf32> to vector<8x16x1xf32>
    %337 = vector.shape_cast %334 : vector<16x32xf32> to vector<1x16x32xf32>
    %338 = vector.broadcast %336 : vector<8x16x1xf32> to vector<8x16x32xf32>
    %339 = vector.broadcast %337 : vector<1x16x32xf32> to vector<8x16x32xf32>
    %340 = arith.mulf %338, %339 : vector<8x16x32xf32>
    %cst_80 = arith.constant dense<0xFF800000> : vector<8x32xf32>
    %341 = vector.multi_reduction <maximumf>, %340, %cst_80 [1] : vector<8x16x32xf32> to vector<8x32xf32>
    %342 = vector.extract_strided_slice %293 {offsets = [16, 16], sizes = [8, 16], strides = [1, 1]} : vector<24x96xf32> to vector<8x16xf32>
    %343 = arith.truncf %341 : vector<8x32xf32> to vector<8x32xbf16>
    %344 = vector.extract_strided_slice %286 {offsets = [0, 16], sizes = [32, 16], strides = [1, 1]} : vector<32x96xbf16> to vector<32x16xbf16>
    %cst_81 = arith.constant dense<0.000000e+00> : vector<8x16xf32>
    %345 = tpu.matmul %343, %344, %cst_81 {dimension_numbers = #tpu.dot_dimension_numbers<[1], [0], [0], [1], [0, 0, 1, 1], [], []>} : vector<8x32xbf16>, vector<32x16xbf16>, vector<8x16xf32> -> vector<8x16xf32>
    %346 = arith.addf %342, %345 : vector<8x16xf32>
    %347 = vector.extract_strided_slice %0 {offsets = [9, 16], sizes = [1, 16], strides = [1, 1]} : vector<12x96xf32> to vector<1x16xf32>
    %348 = vector.broadcast %347 : vector<1x16xf32> to vector<8x16xf32>
    %349 = arith.addf %346, %348 : vector<8x16xf32>
    %cst_82 = arith.constant dense<0.000000e+00> : vector<8xf32>
    %350 = vector.multi_reduction <add>, %349, %cst_82 [1] : vector<8x16xf32> to vector<8xf32>
    %351 = vector.shape_cast %350 : vector<8xf32> to vector<8x1xf32>
    %cst_83 = arith.constant 1.600000e+01 : f32
    %352 = vector.broadcast %cst_83 : f32 to vector<8x1xf32>
    %353 = arith.divf %351, %352 : vector<8x1xf32>
    %354 = vector.broadcast %353 : vector<8x1xf32> to vector<8x16xf32>
    %355 = arith.subf %349, %354 : vector<8x16xf32>
    %356 = arith.mulf %355, %355 : vector<8x16xf32>
    %cst_84 = arith.constant dense<0.000000e+00> : vector<8xf32>
    %357 = vector.multi_reduction <add>, %356, %cst_84 [1] : vector<8x16xf32> to vector<8xf32>
    %358 = vector.shape_cast %357 : vector<8xf32> to vector<8x1xf32>
    %cst_85 = arith.constant 1.600000e+01 : f32
    %359 = vector.broadcast %cst_85 : f32 to vector<8x1xf32>
    %360 = arith.divf %358, %359 : vector<8x1xf32>
    %361 = vector.broadcast %353 : vector<8x1xf32> to vector<8x16xf32>
    %362 = arith.subf %349, %361 : vector<8x16xf32>
    %cst_86 = arith.constant 9.99999974E-6 : f32
    %363 = vector.broadcast %cst_86 : f32 to vector<8x1xf32>
    %364 = arith.addf %360, %363 : vector<8x1xf32>
    %365 = math.rsqrt %364 : vector<8x1xf32>
    %366 = vector.broadcast %365 : vector<8x1xf32> to vector<8x16xf32>
    %367 = arith.mulf %362, %366 : vector<8x16xf32>
    %368 = vector.extract_strided_slice %0 {offsets = [10, 16], sizes = [1, 16], strides = [1, 1]} : vector<12x96xf32> to vector<1x16xf32>
    %369 = vector.broadcast %368 : vector<1x16xf32> to vector<8x16xf32>
    %370 = arith.mulf %367, %369 : vector<8x16xf32>
    %371 = vector.extract_strided_slice %0 {offsets = [11, 16], sizes = [1, 16], strides = [1, 1]} : vector<12x96xf32> to vector<1x16xf32>
    %372 = vector.broadcast %371 : vector<1x16xf32> to vector<8x16xf32>
    %373 = arith.addf %370, %372 : vector<8x16xf32>
    %374 = vector.extract_strided_slice %292 {offsets = [16, 64], sizes = [8, 32], strides = [1, 1]} : vector<24x96xf32> to vector<8x32xf32>
    %375 = vector.extract_strided_slice %1 {offsets = [24, 0], sizes = [16, 8], strides = [1, 1]} : vector<40x16xf32> to vector<16x8xf32>
    %376 = vector.shape_cast %375 : vector<16x8xf32> to vector<16x8x1xf32>
    %377 = vector.shape_cast %374 : vector<8x32xf32> to vector<1x8x32xf32>
    %378 = vector.broadcast %376 : vector<16x8x1xf32> to vector<16x8x32xf32>
    %379 = vector.broadcast %377 : vector<1x8x32xf32> to vector<16x8x32xf32>
    %380 = arith.mulf %378, %379 : vector<16x8x32xf32>
    %cst_87 = arith.constant dense<0xFF800000> : vector<16x32xf32>
    %381 = vector.multi_reduction <maximumf>, %380, %cst_87 [1] : vector<16x8x32xf32> to vector<16x32xf32>
    %382 = vector.extract_strided_slice %293 {offsets = [0, 32], sizes = [16, 16], strides = [1, 1]} : vector<24x96xf32> to vector<16x16xf32>
    %383 = arith.truncf %381 : vector<16x32xf32> to vector<16x32xbf16>
    %384 = vector.extract_strided_slice %286 {offsets = [0, 32], sizes = [32, 16], strides = [1, 1]} : vector<32x96xbf16> to vector<32x16xbf16>
    %cst_88 = arith.constant dense<0.000000e+00> : vector<16x16xf32>
    %385 = tpu.matmul %383, %384, %cst_88 {dimension_numbers = #tpu.dot_dimension_numbers<[1], [0], [0], [1], [0, 0, 1, 1], [], []>} : vector<16x32xbf16>, vector<32x16xbf16>, vector<16x16xf32> -> vector<16x16xf32>
    %386 = arith.addf %382, %385 : vector<16x16xf32>
    %387 = vector.extract_strided_slice %0 {offsets = [9, 32], sizes = [1, 16], strides = [1, 1]} : vector<12x96xf32> to vector<1x16xf32>
    %388 = vector.broadcast %387 : vector<1x16xf32> to vector<16x16xf32>
    %389 = arith.addf %386, %388 : vector<16x16xf32>
    %cst_89 = arith.constant dense<0.000000e+00> : vector<16xf32>
    %390 = vector.multi_reduction <add>, %389, %cst_89 [1] : vector<16x16xf32> to vector<16xf32>
    %391 = vector.shape_cast %390 : vector<16xf32> to vector<16x1xf32>
    %cst_90 = arith.constant 1.600000e+01 : f32
    %392 = vector.broadcast %cst_90 : f32 to vector<16x1xf32>
    %393 = arith.divf %391, %392 : vector<16x1xf32>
    %394 = vector.broadcast %393 : vector<16x1xf32> to vector<16x16xf32>
    %395 = arith.subf %389, %394 : vector<16x16xf32>
    %396 = arith.mulf %395, %395 : vector<16x16xf32>
    %cst_91 = arith.constant dense<0.000000e+00> : vector<16xf32>
    %397 = vector.multi_reduction <add>, %396, %cst_91 [1] : vector<16x16xf32> to vector<16xf32>
    %398 = vector.shape_cast %397 : vector<16xf32> to vector<16x1xf32>
    %cst_92 = arith.constant 1.600000e+01 : f32
    %399 = vector.broadcast %cst_92 : f32 to vector<16x1xf32>
    %400 = arith.divf %398, %399 : vector<16x1xf32>
    %401 = vector.broadcast %393 : vector<16x1xf32> to vector<16x16xf32>
    %402 = arith.subf %389, %401 : vector<16x16xf32>
    %cst_93 = arith.constant 9.99999974E-6 : f32
    %403 = vector.broadcast %cst_93 : f32 to vector<16x1xf32>
    %404 = arith.addf %400, %403 : vector<16x1xf32>
    %405 = math.rsqrt %404 : vector<16x1xf32>
    %406 = vector.broadcast %405 : vector<16x1xf32> to vector<16x16xf32>
    %407 = arith.mulf %402, %406 : vector<16x16xf32>
    %408 = vector.extract_strided_slice %0 {offsets = [10, 32], sizes = [1, 16], strides = [1, 1]} : vector<12x96xf32> to vector<1x16xf32>
    %409 = vector.broadcast %408 : vector<1x16xf32> to vector<16x16xf32>
    %410 = arith.mulf %407, %409 : vector<16x16xf32>
    %411 = vector.extract_strided_slice %0 {offsets = [11, 32], sizes = [1, 16], strides = [1, 1]} : vector<12x96xf32> to vector<1x16xf32>
    %412 = vector.broadcast %411 : vector<1x16xf32> to vector<16x16xf32>
    %413 = arith.addf %410, %412 : vector<16x16xf32>
    %414 = arith.addf %333, %413 : vector<16x16xf32>
    %415 = tpu.concatenate %414, %373 in 0 : vector<16x16xf32>, vector<8x16xf32> -> vector<24x16xf32>
    %c0_94 = arith.constant 0 : index
    %c0_95 = arith.constant 0 : index
    %416 = vector.load %arg4[%c0_94, %c0_95] : memref<24x16xf32, #tpu.memory_space<vmem>>, vector<24x16xf32>
    tpu.vector_store %arg4[%c0_94, %c0_95], %415 {strides = array<i32>} : memref<24x16xf32, #tpu.memory_space<vmem>>, vector<24x16xf32>,
    return
  }
}

</mosaic_0001>

<bundles_post_ra>
// kernel: tpu_custom_call.1
= control target key start
LH: loop header
LB: loop body
LE: loop exit
PB: predicated region body
PF: predicated region fallthrough
CT: control target
= control target key end

     0   :  { %9 = vsyncpa [#allocation3], 0  ;;  %s3816_s15 = smov [#allocation2]   ;;  %s5323_s0 = inlined_call_operand.vmem [shape: bf16[24,40], index: 0, kind: input, shape index: {}]   ;;  %s5324_s1 = inlined_call_operand.hbm [shape: bf16[280,96], index: 1, kind: input, shape index: {}]   ;;  %s5325_s2 = inlined_call_operand.vmem [shape: f32[12,96], index: 2, kind: input, shape index: {}]   ;;  %s5326_s3 = inlined_call_operand.vmem [shape: f32[40,16], index: 3, kind: input, shape index: {}]   ;;  %s5327_s4 = inlined_call_operand.vmem [shape: f32[24,16], index: 4, kind: output, shape index: {}]  }
   0x1   :  { %s17_s16 = sshll.u32 %s3816_s15, 4  ;;  %s18_s16 = int_to_ptr.vmem [resolvable:$true] %s17_s16 }
   0x2   :  { %s3802_s17 = scalar_lea.vmem %s18_s16, 2240  ;;  %p3807_p1 = scmp.lt.s32.totalorder %s18_s16, %s18_s16 }
   0x3   :  { %p3803_p0 = scmp.ne.s32.totalorder %s18_s16, %s3802_s17  ;;  %p3808_p2 = scmp.lt.s32.totalorder %s3802_s17, %s3802_s17 }
   0x5   :  { %p3809_p3 = por %p3808_p2, %p3807_p1 }
   0x7   :  { %p3810_p4 = pnand %p3809_p3, %p3803_p0 }
   0x9   :  { %3813 = shalt.err (!%p3810_p4)
}
   0xa   :  { %s3817_s18 = smov 64   ;;  %s3818_s19 = smov 4  }
   0xb   :  { %23 = dma.hbm_to_vmem [thread:$0]  %s5324_s1, 2240, %s18_s16, [#allocation3], %s3817_s18, %s3817_s18, %s3818_s19  }
   0xc   :  { %3814 = dma.done.wait [#allocation3], 2240  }
   0xd   :  { %3815 = vsyncadd [#allocation3], 4294965056  ;;  %v137_v0 = vlaneseq  ;;  %vm77_vm0 = vcmask 1043456   ;;  %v3741_v2 = vld [vmem:[#allocation2 + $0x10] ss:$0 sps:$4 sm:$0xff]   ;;  %v3742_v3 = vld [vmem:[#allocation2 + $0x8] sm:$0xff]  }
   0xe   :  { %3731 = vmatprep.subr.msk.bf16.mxu0 %vm77_vm0, %v3741_v2  ;;  %v79_v5 = vsel %vm77_vm0, %v3741_v2, 0  ;;  %vm70_vm1 = vcmask 326656   ;;  %v3744_v6 = vld [vmem:[%s5323_s0] sm:$0xff]   ;;  %v37_v9 = vld [vmem:[%s5326_s3 + $0x18] sm:$0xff]  ;;  %v3745_v15 = vld [vmem:[%s5323_s0 + $0x8] ss:$0 sps:$4 sm:$0xff]  }
   0xf   :  { %v3855_v1 = vshrl.u32 %v137_v0, 7  ;;  %3612 = vmatpush3.bf16.msra.mxu0 %v79_v5  ;;  %v3743_v8 = vld [vmem:[#allocation2] sm:$0xff]   ;;  %3617 = vmatprep.mubr.msk.bf16.mxu0 %vm70_vm1, %v3744_v6  ;;  %v36_v28 = vld [vmem:[%s5326_s3 + $0x10] sm:$0xff]  ;;  %v35_v48 = vld [vmem:[%s5326_s3 + $0x8] sm:$0xff]  ;;  %vm147_vm2 = vcmask 130048   ;;  %vm3821_vm3 = vmmov 0  }
  0x10   :  { %3613 = vmatprep.subr.bf16.mxu0 %v3742_v3  ;;  %v38_v10 = vld [vmem:[%s5326_s3 + $0x20] sm:$0xff]  ;;  %v3746_v33 = vld [vmem:[#allocation2 + $0x14] sm:$0xff]   ;;  %vm1196_vm4 = vcmask 392448   ;;  %vm659_vm5 = vcmask 1041409   ;;  %vm661_vm6 = vcmask 1042434   ;;  %vm663_vm7 = vcmask 1043459  }
  0x11   :  { %v3858_v4 = vsub.s32 0, %v3855_v1  ;;  %v3864_v7 = vsub.s32 1, %v3855_v1  ;;  %v3877_v14 = vsub.s32 2, %v3855_v1  ;;  %v3885_v18 = vsub.s32 3, %v3855_v1  ;;  %3621 = vmatprep.subr.bf16.mxu1 %v3746_v33  ;;  %v3916_v38 = vld [vmem:[#allocation2 + $0x1c] sm:$0xff]   ;;  %s3822_s10 = smov 112  }
  0x12   :  { %v3891_v21 = vsub.s32 4, %v3855_v1  ;;  %v3896_v24 = vsub.s32 5, %v3855_v1  ;;  %v3907_v31 = vsub.s32 6, %v3855_v1  ;;  %v3913_v36 = vsub.s32 7, %v3855_v1  ;;  %3622 = vmatpush3.bf16.msra.mxu1 %v3746_v33  ;;  %v34_v45 = vld [vmem:[%s5326_s3] sm:$0xff]  ;;  %s3819_s3 = smov 96  }
  0x13   :  { %5415 = vst [vmem:[#allocation5_spill] sm:$0xff] %v3858_v4  ;;  %5416 = vst [vmem:[#allocation6_spill] sm:$0xff] %v3864_v7  ;;  %v1071_v11 = vrot.slane %v37_v9, %v3858_v4  ;;  %v1127_v12 = vrot.slane %v38_v10, %v3858_v4  ;;  %3614 = vmatpush3.bf16.msra.mxu0 %v3742_v3  ;;  %v1078_v13 = vrot.slane %v37_v9, %v3864_v7  ;;  %vm665_vm8 = vcmask 1044484   ;;  %s3823_s11 = smov 32  }
  0x14   :  { %5417 = vst [vmem:[#allocation7_spill] sm:$0xff] %v3877_v14  ;;  %3615 = vmatprep.subr.bf16.mxu0 %v3743_v8  ;;  %v1134_v16 = vrot.slane %v38_v10, %v3864_v7  ;;  %v1085_v17 = vrot.slane %v37_v9, %v3877_v14  ;;  %5418 = vst [vmem:[#allocation8_spill] sm:$0xff] %v3885_v18  ;;  %v1141_v19 = vrot.slane %v38_v10, %v3877_v14  ;;  %vm667_vm9 = vcmask 1045509  }
  0x15   :  { %1073 = vbcast.lane.b32.xlu0 %v1071_v11, 256  ;;  %1129 = vbcast.lane.b32.xlu1 %v1127_v12, 256  ;;  %v1092_v20 = vrot.slane %v37_v9, %v3885_v18  ;;  %5419 = vst [vmem:[#allocation9_spill] sm:$0xff] %v3891_v21  ;;  %v1148_v22 = vrot.slane %v38_v10, %v3885_v18  ;;  %5420 = vst [vmem:[#allocation10_spill] sm:$0xff] %v3896_v24  ;;  %vm669_vm10 = vcmask 1046534   ;;  %vm671_vm11 = vcmask 1047559  }
  0x16   :  { %v1099_v23 = vrot.slane %v37_v9, %v3891_v21  ;;  %v1155_v25 = vrot.slane %v38_v10, %v3891_v21  ;;  %v1106_v26 = vrot.slane %v37_v9, %v3896_v24  ;;  %v1162_v27 = vrot.slane %v38_v10, %v3896_v24  ;;  %5421 = vst [vmem:[#allocation11_spill] sm:$0xff] %v3907_v31 }
  0x17   :  { %3616 = vmatpush3.bf16.msra.mxu0 %v3743_v8  ;;  %v784_v29 = vrot.slane %v36_v28, %v3858_v4  ;;  %v795_v30 = vrot.slane %v36_v28, %v3864_v7  ;;  %v1113_v32 = vrot.slane %v37_v9, %v3907_v31  ;;  %v1169_v34 = vrot.slane %v38_v10, %v3907_v31 }
  0x18   :  { %v806_v35 = vrot.slane %v36_v28, %v3877_v14  ;;  %5422 = vst [vmem:[#allocation12_spill] sm:$0xff] %v3913_v36  ;;  %v1120_v37 = vrot.slane %v37_v9, %v3913_v36  ;;  %v1176_v39 = vrot.slane %v38_v10, %v3913_v36  ;;  %v817_v40 = vrot.slane %v36_v28, %v3885_v18 }
  0x19   :  { %1080 = vbcast.lane.b32.xlu0 %v1078_v13, 256  ;;  %1136 = vbcast.lane.b32.xlu1 %v1134_v16, 256  ;;  %v828_v41 = vrot.slane %v36_v28, %v3891_v21  ;;  %v839_v42 = vrot.slane %v36_v28, %v3896_v24  ;;  %v850_v43 = vrot.slane %v36_v28, %v3907_v31  ;;  %vm885_vm12 = vcmask 261248  }
  0x1a   :  { %3618 = vmatmul.mubr.msk.bf16.vlgmr.msra.gmra.mxu0 %vm70_vm1, %v3745_v15  ;;  %3627 = vmatprep.subr.bf16.mxu1 %v3916_v38  ;;  %v861_v44 = vrot.slane %v36_v28, %v3913_v36  ;;  %v262_v46 = vrot.slane %v34_v45, %v3858_v4  ;;  %v273_v47 = vrot.slane %v34_v45, %v3864_v7  ;;  %vm741_vm13 = vcmask 261120  }
  0x1b   :  { %v350_v49 = vrot.slane %v35_v48, %v3858_v4  ;;  %v361_v50 = vrot.slane %v35_v48, %v3864_v7  ;;  %v284_v51 = vrot.slane %v34_v45, %v3877_v14  ;;  %v372_v52 = vrot.slane %v35_v48, %v3877_v14 }
  0x1c   :  { %v295_v53 = vrot.slane %v34_v45, %v3885_v18  ;;  %v383_v54 = vrot.slane %v35_v48, %v3885_v18  ;;  %v306_v55 = vrot.slane %v34_v45, %v3891_v21  ;;  %v394_v56 = vrot.slane %v35_v48, %v3891_v21  ;;  %v32_v21 = vld [vmem:[%s5325_s2] sm:$0xff] }
  0x1d   :  { %1087 = vbcast.lane.b32.xlu0 %v1085_v17, 256  ;;  %1143 = vbcast.lane.b32.xlu1 %v1141_v19, 256  ;;  %v317_v57 = vrot.slane %v34_v45, %v3896_v24  ;;  %v405_v58 = vrot.slane %v35_v48, %v3896_v24  ;;  %v328_v59 = vrot.slane %v34_v45, %v3907_v31  ;;  %vm2203_vm14 = vcmask 785920  }
  0x1e   :  { %v416_v60 = vrot.slane %v35_v48, %v3907_v31  ;;  %v339_v61 = vrot.slane %v34_v45, %v3913_v36  ;;  %v427_v62 = vrot.slane %v35_v48, %v3913_v36  ;;  %v140_v14 = vrot.slane %v32_v21, %v3858_v4 }
  0x1f   :  { %vm2001_vm15 = vcmask 523520  }
  0x21   :  { %1094 = vbcast.lane.b32.xlu0 %v1092_v20, 256  ;;  %1150 = vbcast.lane.b32.xlu1 %v1148_v22, 256 }
  0x25   :  { %1101 = vbcast.lane.b32.xlu0 %v1099_v23, 256  ;;  %1157 = vbcast.lane.b32.xlu1 %v1155_v25, 256 }
  0x29   :  { %1108 = vbcast.lane.b32.xlu0 %v1106_v26, 256  ;;  %1164 = vbcast.lane.b32.xlu1 %v1162_v27, 256 }
  0x2d   :  { %786 = vbcast.lane.b32.xlu0 %v784_v29, 256  ;;  %790 = vbcast.lane.b32.xlu1 %v784_v29, 264 }
  0x31   :  { %797 = vbcast.lane.b32.xlu0 %v795_v30, 256  ;;  %801 = vbcast.lane.b32.xlu1 %v795_v30, 264 }
  0x35   :  { %1115 = vbcast.lane.b32.xlu0 %v1113_v32, 256  ;;  %1171 = vbcast.lane.b32.xlu1 %v1169_v34, 256 }
  0x39   :  { %808 = vbcast.lane.b32.xlu0 %v806_v35, 256  ;;  %812 = vbcast.lane.b32.xlu1 %v806_v35, 264 }
  0x3d   :  { %1122 = vbcast.lane.b32.xlu0 %v1120_v37, 256  ;;  %1178 = vbcast.lane.b32.xlu1 %v1176_v39, 256 }
  0x41   :  { %819 = vbcast.lane.b32.xlu0 %v817_v40, 256  ;;  %823 = vbcast.lane.b32.xlu1 %v817_v40, 264 }
  0x45   :  { %830 = vbcast.lane.b32.xlu0 %v828_v41, 256  ;;  %834 = vbcast.lane.b32.xlu1 %v828_v41, 264  ;;  %v3748_v41 = vld [vmem:[#allocation2 + $0x24] sm:$0xff]  }
  0x49   :  { %841 = vbcast.lane.b32.xlu0 %v839_v42, 256  ;;  %845 = vbcast.lane.b32.xlu1 %v839_v42, 264 }
  0x4d   :  { %852 = vbcast.lane.b32.xlu0 %v850_v43, 256  ;;  %856 = vbcast.lane.b32.xlu1 %v850_v43, 264 }
  0x51   :  { %863 = vbcast.lane.b32.xlu0 %v861_v44, 256  ;;  %867 = vbcast.lane.b32.xlu1 %v861_v44, 264 }
  0x55   :  { %264 = vbcast.lane.b32.xlu0 %v262_v46, 256  ;;  %268 = vbcast.lane.b32.xlu1 %v262_v46, 264 }
  0x59   :  { %275 = vbcast.lane.b32.xlu0 %v273_v47, 256  ;;  %279 = vbcast.lane.b32.xlu1 %v273_v47, 264 }
  0x5d   :  { %352 = vbcast.lane.b32.xlu0 %v350_v49, 256  ;;  %356 = vbcast.lane.b32.xlu1 %v350_v49, 264 }
  0x61   :  { %363 = vbcast.lane.b32.xlu0 %v361_v50, 256  ;;  %367 = vbcast.lane.b32.xlu1 %v361_v50, 264 }
  0x65   :  { %286 = vbcast.lane.b32.xlu0 %v284_v51, 256  ;;  %290 = vbcast.lane.b32.xlu1 %v284_v51, 264 }
  0x69   :  { %374 = vbcast.lane.b32.xlu0 %v372_v52, 256  ;;  %378 = vbcast.lane.b32.xlu1 %v372_v52, 264 }
  0x6d   :  { %297 = vbcast.lane.b32.xlu0 %v295_v53, 256  ;;  %301 = vbcast.lane.b32.xlu1 %v295_v53, 264  ;;  %v5328_v53 = vmov 0.0  }
  0x6e   :  { %3633 = vmatprep.subr.bf16.mxu0 %v5328_v53  ;;  %3635 = vmatprep.mubr.msk.bf16.mxu0 %vm3821_vm3, %v5328_v53 }
  0x6f   :  { %3634 = vmatpush3.bf16.msra.mxu0 %v3748_v41 }
  0x70   :  { %3645 = vmatprep.subr.bf16.mxu0 %v5328_v53 }
  0x71   :  { %385 = vbcast.lane.b32.xlu0 %v383_v54, 256  ;;  %389 = vbcast.lane.b32.xlu1 %v383_v54, 264 }
  0x75   :  { %308 = vbcast.lane.b32.xlu0 %v306_v55, 256  ;;  %312 = vbcast.lane.b32.xlu1 %v306_v55, 264 }
  0x79   :  { %396 = vbcast.lane.b32.xlu0 %v394_v56, 256  ;;  %400 = vbcast.lane.b32.xlu1 %v394_v56, 264 }
  0x7d   :  { %319 = vbcast.lane.b32.xlu0 %v317_v57, 256  ;;  %323 = vbcast.lane.b32.xlu1 %v317_v57, 264 }
  0x81   :  { %407 = vbcast.lane.b32.xlu0 %v405_v58, 256  ;;  %411 = vbcast.lane.b32.xlu1 %v405_v58, 264 }
  0x85   :  { %330 = vbcast.lane.b32.xlu0 %v328_v59, 256  ;;  %334 = vbcast.lane.b32.xlu1 %v328_v59, 264 }
  0x87   :  { %v3952_v6 = vpop.permute.xlu0 %1073  ;;  %v3954_v8 = vpop.permute.xlu1 %1129 }
  0x88   :  { %5423 = vst [vmem:[#allocation13_spill] sm:$0xff] %v3952_v6  ;;  %5424 = vst [vmem:[#allocation14_spill] sm:$0xff] %v3954_v8 }
  0x89   :  { %418 = vbcast.lane.b32.xlu0 %v416_v60, 256  ;;  %422 = vbcast.lane.b32.xlu1 %v416_v60, 264 }
  0x8b   :  { %v3956_v9 = vpop.permute.xlu0 %1080  ;;  %v3958_v10 = vpop.permute.xlu1 %1136 }
  0x8c   :  { %5425 = vst [vmem:[#allocation15_spill] sm:$0xff] %v3956_v9  ;;  %5426 = vst [vmem:[#allocation16_spill] sm:$0xff] %v3958_v10 }
  0x8d   :  { %341 = vbcast.lane.b32.xlu0 %v339_v61, 256  ;;  %345 = vbcast.lane.b32.xlu1 %v339_v61, 264 }
  0x8f   :  { %v3960_v11 = vpop.permute.xlu0 %1087  ;;  %v3962_v12 = vpop.permute.xlu1 %1143 }
  0x90   :  { %5427 = vst [vmem:[#allocation17_spill] sm:$0xff] %v3960_v11  ;;  %5428 = vst [vmem:[#allocation18_spill] sm:$0xff] %v3962_v12 }
  0x91   :  { %429 = vbcast.lane.b32.xlu0 %v427_v62, 256  ;;  %433 = vbcast.lane.b32.xlu1 %v427_v62, 264 }
  0x93   :  { %v3964_v13 = vpop.permute.xlu0 %1094  ;;  %v3966_v15 = vpop.permute.xlu1 %1150 }
  0x94   :  { %5429 = vst [vmem:[#allocation19_spill] sm:$0xff] %v3964_v13  ;;  %5430 = vst [vmem:[#allocation20_spill] sm:$0xff] %v3966_v15 }
  0x95   :  { %1374 = vrot.lane.b32.xlu0 %v3748_v41, %s3817_s18 }
  0x97   :  { %v3968_v16 = vpop.permute.xlu0 %1101  ;;  %v3970_v17 = vpop.permute.xlu1 %1157 }
  0x98   :  { %5431 = vst [vmem:[#allocation21_spill] sm:$0xff] %v3968_v16  ;;  %5432 = vst [vmem:[#allocation22_spill] sm:$0xff] %v3970_v17 }
  0x99   :  { %992 = vrot.lane.b32.xlu0 %v3748_v41, %s3819_s3 }
  0x9b   :  { %v3972_v19 = vpop.permute.xlu0 %1108  ;;  %v3974_v20 = vpop.permute.xlu1 %1164 }
  0x9c   :  { %5433 = vst [vmem:[#allocation23_spill] sm:$0xff] %v3972_v19  ;;  %5434 = vst [vmem:[#allocation24_spill] sm:$0xff] %v3974_v20 }
  0x9f   :  { %v3976_v22 = vpop.permute.xlu0 %786  ;;  %v3978_v23 = vpop.permute.xlu1 %790 }
  0xa3   :  { %v3980_v25 = vpop.permute.xlu0 %797  ;;  %v3982_v26 = vpop.permute.xlu1 %801 }
  0xa7   :  { %v3984_v27 = vpop.permute.xlu0 %1115  ;;  %v3986_v28 = vpop.permute.xlu1 %1171 }
  0xa8   :  { %5435 = vst [vmem:[#allocation25_spill] sm:$0xff] %v3984_v27  ;;  %5436 = vst [vmem:[#allocation26_spill] sm:$0xff] %v3986_v28 }
  0xab   :  { %v3988_v29 = vpop.permute.xlu0 %808  ;;  %v3990_v30 = vpop.permute.xlu1 %812 }
  0xaf   :  { %v3992_v32 = vpop.permute.xlu0 %1122  ;;  %v3994_v33 = vpop.permute.xlu1 %1178 }
  0xb0   :  { %5437 = vst [vmem:[#allocation27_spill] sm:$0xff] %v3992_v32  ;;  %5438 = vst [vmem:[#allocation28_spill] sm:$0xff] %v3994_v33 }
  0xb3   :  { %v3996_v34 = vpop.permute.xlu0 %819  ;;  %v3998_v35 = vpop.permute.xlu1 %823 }
  0xb7   :  { %v4000_v37 = vpop.permute.xlu0 %830 }
  0xbb   :  { %v4004_v39 = vpop.permute.xlu0 %841 }
  0xbf   :  { %v4008_v42 = vpop.permute.xlu0 %852 }
  0xc3   :  { %v4014_v44 = vpop.permute.xlu0 %863 }
  0xc7   :  { %v4018_v46 = vpop.permute.xlu0 %264 }
  0xcb   :  { %v4022_v48 = vpop.permute.xlu0 %275 }
  0xcc   :  { %5439 = vst [vmem:[#allocation29_spill] sm:$0xff] %v4022_v48 }
  0xcf   :  { %v4026_v50 = vpop.permute.xlu0 %352 }
  0xd0   :  { %5441 = vst [vmem:[#allocation31_spill] sm:$0xff] %v4026_v50 }
  0xd3   :  { %v4030_v52 = vpop.permute.xlu0 %363 }
  0xd4   :  { %5443 = vst [vmem:[#allocation33_spill] sm:$0xff] %v4030_v52 }
  0xd7   :  { %v4041_v55 = vpop.permute.xlu0 %286 }
  0xd8   :  { %5445 = vst [vmem:[#allocation35_spill] sm:$0xff] %v4041_v55 }
  0xda   :  { %v3619_v63 = vpop.f32.mrf.mxu0 }
  0xdb   :  { %v130_v5 = vpack.c.bf16 %v3619_v63, %v3619_v63  ;;  %v4045_v57 = vpop.permute.xlu0 %374 }
  0xdc   :  { %v115_v0 = vpop.f32.mrf.mxu0  ;;  %5447 = vst [vmem:[#allocation37_spill] sm:$0xff] %v4045_v57 }
  0xde   :  { %v3620_v1 = vpop.f32.mrf.mxu0 }
  0xdf   :  { %v4049_v59 = vpop.permute.xlu0 %297 }
  0xe0   :  { %v118_v2 = vpop.f32.mrf.mxu0  ;;  %5449 = vst [vmem:[#allocation39_spill] sm:$0xff] %v4049_v59 }
  0xe1   :  { %v129_v3 = vpack.c.bf16 %v118_v2, %v115_v0 }
  0xe3   :  { %3623 = vmatprep.mubr.msk.bf16.mxu1 %vm147_vm2, %v129_v3  ;;  %v4053_v61 = vpop.permute.xlu0 %385 }
  0xe4   :  { %3624 = vmatmul.mubr.msk.bf16.vlgmr.msra.gmra.mxu1 %vm147_vm2, %v130_v5  ;;  %5451 = vst [vmem:[#allocation41_spill] sm:$0xff] %v4053_v61 }
  0xe5   :  { %3629 = vmatprep.mubr.msk.bf16.mxu1 %vm147_vm2, %v129_v3  ;;  %3628 = vmatpush3.bf16.msra.mxu1 %v3916_v38  ;;  %v4002_v38 = vpop.permute.xlu1 %834 }
  0xe6   :  { %3639 = vmatprep.subr.bf16.mxu1 %v5328_v53 }
  0xe7   :  { %v4057_v63 = vpop.permute.xlu0 %308 }
  0xe8   :  { %5453 = vst [vmem:[#allocation43_spill] sm:$0xff] %v4057_v63 }
  0xe9   :  { %v4006_v40 = vpop.permute.xlu1 %845 }
  0xeb   :  { %v4061_v1 = vpop.permute.xlu0 %396 }
  0xec   :  { %3630 = vmatmul.mubr.msk.bf16.vlgmr.msra.gmra.mxu1 %vm147_vm2, %v130_v5  ;;  %5455 = vst [vmem:[#allocation45_spill] sm:$0xff] %v4061_v1 }
  0xed   :  { %v4011_v43 = vpop.permute.xlu1 %856  ;;  %3641 = vmatprep.mubr.msk.bf16.mxu1 %vm3821_vm3, %v5328_v53 }
  0xef   :  { %v4065_v3 = vpop.permute.xlu0 %319 }
  0xf0   :  { %5457 = vst [vmem:[#allocation47_spill] sm:$0xff] %v4065_v3 }
  0xf1   :  { %v4016_v45 = vpop.permute.xlu1 %867 }
  0xf3   :  { %v4069_v41 = vpop.permute.xlu0 %407 }
  0xf4   :  { %5459 = vst [vmem:[#allocation49_spill] sm:$0xff] %v4069_v41 }
  0xf5   :  { %v4020_v47 = vpop.permute.xlu1 %268 }
  0xf7   :  { %v4073_v36 = vpop.permute.xlu0 %330 }
  0xf8   :  { %5461 = vst [vmem:[#allocation51_spill] sm:$0xff] %v4073_v36 }
  0xf9   :  { %v4024_v49 = vpop.permute.xlu1 %279 }
  0xfa   :  { %5440 = vst [vmem:[#allocation30_spill] sm:$0xff] %v4024_v49 }
  0xfb   :  { %v4077_v24 = vpop.permute.xlu0 %418 }
  0xfc   :  { %5463 = vst [vmem:[#allocation53_spill] sm:$0xff] %v4077_v24 }
  0xfd   :  { %v4028_v51 = vpop.permute.xlu1 %356 }
  0xfe   :  { %5442 = vst [vmem:[#allocation32_spill] sm:$0xff] %v4028_v51 }
  0xff   :  { %v4085_v7 = vpop.permute.xlu0 %341 }
 0x100   :  { %5465 = vst [vmem:[#allocation55_spill] sm:$0xff] %v4085_v7 }
 0x101   :  { %v4036_v54 = vpop.permute.xlu1 %367 }
 0x102   :  { %5444 = vst [vmem:[#allocation34_spill] sm:$0xff] %v4036_v54 }
 0x103   :  { %v4091_v24 = vpop.permute.xlu0 %429 }
 0x104   :  { %5467 = vst [vmem:[#allocation57_spill] sm:$0xff] %v4091_v24 }
 0x105   :  { %v4043_v56 = vpop.permute.xlu1 %290 }
 0x106   :  { %5446 = vst [vmem:[#allocation36_spill] sm:$0xff] %v4043_v56 }
 0x109   :  { %v4047_v58 = vpop.permute.xlu1 %378 }
 0x10a   :  { %5448 = vst [vmem:[#allocation38_spill] sm:$0xff] %v4047_v58 }
 0x10d   :  { %v4051_v60 = vpop.permute.xlu1 %301 }
 0x10e   :  { %5450 = vst [vmem:[#allocation40_spill] sm:$0xff] %v4051_v60 }
 0x111   :  { %v4055_v62 = vpop.permute.xlu1 %389 }
 0x112   :  { %5452 = vst [vmem:[#allocation42_spill] sm:$0xff] %v4055_v62 }
 0x115   :  { %v4059_v0 = vpop.permute.xlu1 %312 }
 0x116   :  { %5454 = vst [vmem:[#allocation44_spill] sm:$0xff] %v4059_v0 }
 0x119   :  { %v4063_v2 = vpop.permute.xlu1 %400 }
 0x11a   :  { %5456 = vst [vmem:[#allocation46_spill] sm:$0xff] %v4063_v2 }
 0x11d   :  { %v4067_v5 = vpop.permute.xlu1 %323 }
 0x11e   :  { %5458 = vst [vmem:[#allocation48_spill] sm:$0xff] %v4067_v5 }
 0x121   :  { %v4071_v53 = vpop.permute.xlu1 %411 }
 0x122   :  { %5460 = vst [vmem:[#allocation50_spill] sm:$0xff] %v4071_v53 }
 0x125   :  { %v4075_v31 = vpop.permute.xlu1 %334 }
 0x126   :  { %5462 = vst [vmem:[#allocation52_spill] sm:$0xff] %v4075_v31 }
 0x129   :  { %v4082_v18 = vpop.permute.xlu1 %422 }
 0x12a   :  { %5464 = vst [vmem:[#allocation54_spill] sm:$0xff] %v4082_v18 }
 0x12d   :  { %v4087_v53 = vpop.permute.xlu1 %345 }
 0x12e   :  { %5466 = vst [vmem:[#allocation56_spill] sm:$0xff] %v4087_v53 }
 0x1a4   :  { %v3625_v2 = vpop.f32.mrf.mxu1 }
 0x1a5   :  { %v197_v41 = vadd.f32 %v3625_v2, %v140_v14 }
 0x1a6   :  { %v188_v1 = vpop.f32.mrf.mxu1 }
 0x1a7   :  { %v4089_v62 = vmax.f32 %v197_v41, 0.0  ;;  %v189_v61 = vadd.f32 %v188_v1, %v140_v14  ;;  %v4107_v41 = vpop.permute.xlu1 %433 }
 0x1a8   :  { %v3626_v58 = vpop.f32.mrf.mxu1  ;;  %5469 = vst [vmem:[#allocation59_spill] sm:$0xff] %v4107_v41 }
 0x1a9   :  { %v4093_v57 = vmax.f32 %v189_v61, 0.0  ;;  %v1180_v18 = vmul.f32 %v3952_v6, %v4089_v62  ;;  %v1181_v21 = vmul.f32 %v3956_v9, %v4089_v62  ;;  %v1182_v58 = vmul.f32 %v3960_v11, %v4089_v62 }
 0x1aa   :  { %v191_v54 = vpop.f32.mrf.mxu1  ;;  %v1183_v6 = vmul.f32 %v3964_v13, %v4089_v62  ;;  %v1184_v9 = vmul.f32 %v3968_v16, %v4089_v62  ;;  %v4127_v11 = vmul.f32 %v3954_v8, %v4089_v62  ;;  %v4131_v16 = vmul.f32 %v3958_v10, %v4089_v62 }
 0x1ab   :  { %v449_v2 = vmul.f32 %v4085_v7, %v4093_v57  ;;  %v192_v4 = vadd.f32 %v191_v54, %v140_v14  ;;  %v465_v1 = vmul.f32 %v4091_v24, %v4093_v57  ;;  %v1185_v7 = vmul.f32 %v3972_v19, %v4089_v62 }
 0x1ac   :  { %v4105_v61 = vpop.f32.mrf.mxu1  ;;  %v4117_v14 = vmul.f32 %v3984_v27, %v4089_v62  ;;  %v4123_v24 = vmul.f32 %v3992_v32, %v4089_v62  ;;  %v1197_v32 = vsel %vm1196_vm4, %v1180_v18, -inf  ;;  %v1204_v52 = vsel %vm1196_vm4, %v1181_v21, -inf }
 0x1ad   :  { %5468 = vst [vmem:[#allocation58_spill] sm:$0xff] %v4105_v61  ;;  %v4119_v54 = vmax.f32 %v192_v4, 0.0  ;;  %v530_v19 = vsel %vm147_vm2, %v449_v2, -inf  ;;  %v602_v13 = vsel %vm147_vm2, %v465_v1, -inf  ;;  %v4139_v4 = vmul.f32 %v3962_v12, %v4089_v62 }
 0x1ae   :  { %v4135_v27 = vpop.f32.mrf.mxu1  ;;  %v1198_v10 = vrot.slane %v1197_v32, 4  ;;  %v1205_v51 = vrot.slane %v1204_v52, 4  ;;  %v1211_v1 = vsel %vm1196_vm4, %v1182_v58, -inf  ;;  %v1225_v12 = vsel %vm1196_vm4, %v1184_v9, -inf  ;;  %v4153_v9 = vpop.permute.xlu0 %1374 }
 0x1af   :  { %5470 = vst [vmem:[#allocation60_spill] sm:$0xff] %v4135_v27  ;;  %v450_v8 = vmul.f32 %v4087_v53, %v4119_v54  ;;  %v466_v61 = vmul.f32 %v4107_v41, %v4119_v54  ;;  %v1218_v27 = vsel %vm1196_vm4, %v1183_v6, -inf  ;;  %v1212_v53 = vrot.slane %v1211_v1, 4  ;;  %5471 = vst [vmem:[#allocation61_spill] sm:$0xff] %v4153_v9 }
 0x1b0   :  { %v3632_v2 = vpop.f32.mrf.mxu1  ;;  %v1199_v31 = vmax.f32 %v1197_v32, %v1198_v10  ;;  %v1206_v41 = vmax.f32 %v1204_v52, %v1205_v51  ;;  %v1219_v3 = vrot.slane %v1218_v27, 4  ;;  %v1232_v63 = vsel %vm1196_vm4, %v1185_v7, -inf }
 0x1b1   :  { %v531_v50 = vsel %vm147_vm2, %v450_v8, -inf  ;;  %v603_v18 = vsel %vm147_vm2, %v466_v61, -inf  ;;  %v1213_v21 = vmax.f32 %v1211_v1, %v1212_v53  ;;  %v1226_v2 = vrot.slane %v1225_v12, 4 }
 0x1b2   :  { %v532_v36 = vmax.f32 %v530_v19, %v531_v50  ;;  %v604_v5 = vmax.f32 %v602_v13, %v603_v18  ;;  %v1200_v0 = vrot.slane %v1199_v31, 2  ;;  %v1207_v6 = vrot.slane %v1206_v41, 2 }
 0x1b3   :  { %v1220_v59 = vmax.f32 %v1218_v27, %v1219_v3  ;;  %v1214_v56 = vrot.slane %v1213_v21, 2  ;;  %v1227_v61 = vmax.f32 %v1225_v12, %v1226_v2  ;;  %v1233_v10 = vrot.slane %v1232_v63, 4  ;;  %v993_v3 = vpop.permute.xlu0 %992 }
 0x1b4   :  { %v533_v58 = vrot.slane %v532_v36, 4  ;;  %v605_v60 = vrot.slane %v604_v5, 4  ;;  %v1201_v8 = vmax.f32 %v1199_v31, %v1200_v0  ;;  %v1208_v13 = vmax.f32 %v1206_v41, %v1207_v6  ;;  %3640 = vmatpush3.bf16.msra.mxu1 %v993_v3 }
 0x1b5   :  { %v1221_v50 = vrot.slane %v1220_v59, 2  ;;  %v1191_v51 = vmul.f32 %v3966_v15, %v4089_v62  ;;  %v1215_v52 = vmax.f32 %v1213_v21, %v1214_v56  ;;  %v1228_v53 = vrot.slane %v1227_v61, 2 }
 0x1b6   :  { %v534_v32 = vmax.f32 %v532_v36, %v533_v58  ;;  %v606_v19 = vmax.f32 %v604_v5, %v605_v60  ;;  %v1234_v7 = vmax.f32 %v1232_v63, %v1233_v10  ;;  %v1202_v55 = vrot.slane %v1201_v8, 1 }
 0x1b7   :  { %v1222_v27 = vmax.f32 %v1220_v59, %v1221_v50  ;;  %v1209_v9 = vrot.slane %v1208_v13, 1  ;;  %v1216_v31 = vrot.slane %v1215_v52, 1  ;;  %v1229_v0 = vmax.f32 %v1227_v61, %v1228_v53 }
 0x1b8   :  { %v535_v1 = vrot.slane %v534_v32, 2  ;;  %v607_v18 = vrot.slane %v606_v19, 2  ;;  %v1235_v12 = vrot.slane %v1234_v7, 2  ;;  %v1192_v60 = vmul.f32 %v3970_v17, %v4089_v62 }
 0x1b9   :  { %v1193_v5 = vmul.f32 %v3974_v20, %v4089_v62  ;;  %v1194_v56 = vmul.f32 %v3986_v28, %v4089_v62  ;;  %v1195_v59 = vmul.f32 %v3994_v33, %v4089_v62  ;;  %v1239_v21 = vsel %vm1196_vm4, %v4117_v14, -inf }
 0x1ba   :  { %v536_v36 = vmax.f32 %v534_v32, %v535_v1  ;;  %v4163_v63 = vmax.f32 %v606_v19, %v607_v18  ;;  %v1236_v41 = vmax.f32 %v1234_v7, %v1235_v12  ;;  %v4169_v2 = vmax.f32 %v1201_v8, %v1202_v55 }
 0x1bb   :  { %v1223_v58 = vrot.slane %v1222_v27, 1  ;;  %v1230_v6 = vrot.slane %v1229_v0, 1  ;;  %v1240_v61 = vrot.slane %v1239_v21, 4  ;;  %v4171_v10 = vmax.f32 %v1208_v13, %v1209_v9 }
 0x1bc   :  { %v4173_v32 = vmax.f32 %v1215_v52, %v1216_v31  ;;  %v1246_v19 = vsel %vm1196_vm4, %v4123_v24, -inf  ;;  %v1253_v50 = vsel %vm1196_vm4, %v4127_v11, -inf  ;;  %v537_v62 = vrot.slane %v536_v36, 1 }
 0x1bd   :  { %v1237_v53 = vrot.slane %v1236_v41, 1  ;;  %v1241_v7 = vmax.f32 %v1239_v21, %v1240_v61  ;;  %v1247_v1 = vrot.slane %v1246_v19, 4  ;;  %v1254_v14 = vrot.slane %v1253_v50, 4 }
 0x1be   :  { %v1260_v8 = vsel %vm1196_vm4, %v4131_v16, -inf  ;;  %v1267_v9 = vsel %vm1196_vm4, %v4139_v4, -inf  ;;  %v4184_v13 = vmax.f32 %v1222_v27, %v1223_v58  ;;  %v4186_v52 = vmax.f32 %v1229_v0, %v1230_v6 }
 0x1bf   :  { %v1242_v24 = vrot.slane %v1241_v7, 2  ;;  %v1248_v18 = vmax.f32 %v1246_v19, %v1247_v1  ;;  %v1255_v11 = vmax.f32 %v1253_v50, %v1254_v14  ;;  %v1261_v3 = vrot.slane %v1260_v8, 4 }
 0x1c0   :  { %v1268_v31 = vrot.slane %v1267_v9, 4  ;;  %v1274_v12 = vsel %vm1196_vm4, %v1191_v51, -inf  ;;  %v4189_v21 = vmax.f32 %v536_v36, %v537_v62  ;;  %v4191_v61 = vmax.f32 %v1236_v41, %v1237_v53 }
 0x1c1   :  { %v1243_v55 = vmax.f32 %v1241_v7, %v1242_v24  ;;  %v1249_v16 = vrot.slane %v1248_v18, 2  ;;  %v1256_v33 = vrot.slane %v1255_v11, 2  ;;  %v1262_v28 = vmax.f32 %v1260_v8, %v1261_v3 }
 0x1c2   :  { %v1269_v4 = vmax.f32 %v1267_v9, %v1268_v31  ;;  %v1275_v27 = vrot.slane %v1274_v12, 4  ;;  %v1281_v6 = vsel %vm1196_vm4, %v1192_v60, -inf  ;;  %v1288_v19 = vsel %vm1196_vm4, %v1193_v5, -inf }
 0x1c3   :  { %v1244_v58 = vrot.slane %v1243_v55, 1  ;;  %v1250_v0 = vmax.f32 %v1248_v18, %v1249_v16  ;;  %v1257_v50 = vmax.f32 %v1255_v11, %v1256_v33  ;;  %v1263_v1 = vrot.slane %v1262_v28, 2 }
 0x1c4   :  { %v1270_v14 = vrot.slane %v1269_v4, 2  ;;  %v1276_v51 = vmax.f32 %v1274_v12, %v1275_v27  ;;  %v1282_v62 = vrot.slane %v1281_v6, 4  ;;  %v1289_v53 = vrot.slane %v1288_v19, 4 }
 0x1c5   :  { %v4195_v36 = vmax.f32 %v1243_v55, %v1244_v58  ;;  %v1251_v41 = vrot.slane %v1250_v0, 1  ;;  %v1258_v7 = vrot.slane %v1257_v50, 1  ;;  %v1264_v24 = vmax.f32 %v1262_v28, %v1263_v1 }
 0x1c6   :  { %v1271_v8 = vmax.f32 %v1269_v4, %v1270_v14  ;;  %v1277_v9 = vrot.slane %v1276_v51, 2  ;;  %v1283_v31 = vmax.f32 %v1281_v6, %v1282_v62  ;;  %v1290_v18 = vmax.f32 %v1288_v19, %v1289_v53 }
 0x1c7   :  { %v1252_v3 = vmax.f32 %v1250_v0, %v1251_v41  ;;  %v1295_v60 = vsel %vm1196_vm4, %v1194_v56, -inf  ;;  %v1259_v16 = vmax.f32 %v1257_v50, %v1258_v7  ;;  %v1265_v5 = vrot.slane %v1264_v24, 1 }
 0x1c8   :  { %v1272_v33 = vrot.slane %v1271_v8, 1  ;;  %v1278_v11 = vmax.f32 %v1276_v51, %v1277_v9  ;;  %v1284_v20 = vrot.slane %v1283_v31, 2  ;;  %v1291_v12 = vrot.slane %v1290_v18, 2 }
 0x1c9   :  { %v1296_v55 = vrot.slane %v1295_v60, 4  ;;  %v1302_v27 = vsel %vm1196_vm4, %v1195_v59, -inf  ;;  %v1266_v58 = vmax.f32 %v1264_v24, %v1265_v5  ;;  %v1309_v56 = vpack.c.bf16 %v4169_v2, %v4169_v2 }
 0x1ca   :  { %v1273_v17 = vmax.f32 %v1271_v8, %v1272_v33  ;;  %v1279_v15 = vrot.slane %v1278_v11, 1  ;;  %v1303_v28 = vrot.slane %v1302_v27, 4  ;;  %v1285_v4 = vmax.f32 %v1283_v31, %v1284_v20 }
 0x1cb   :  { %v1292_v0 = vmax.f32 %v1290_v18, %v1291_v12  ;;  %v1297_v6 = vmax.f32 %v1295_v60, %v1296_v55  ;;  %v1310_v1 = vpack.c.bf16 %v4171_v10, %v4171_v10  ;;  %v1311_v59 = vpack.c.bf16 %v4173_v32, %v4173_v32 }
 0x1cc   :  { %v1280_v19 = vmax.f32 %v1278_v11, %v1279_v15  ;;  %v1304_v50 = vmax.f32 %v1302_v27, %v1303_v28  ;;  %v1286_v14 = vrot.slane %v1285_v4, 1  ;;  %v1312_v20 = vpack.c.bf16 %v4184_v13, %v4184_v13 }
 0x1cd   :  { %v1293_v51 = vrot.slane %v1292_v0, 1  ;;  %v1298_v41 = vrot.slane %v1297_v6, 2  ;;  %v1313_v2 = vpack.c.bf16 %v4186_v52, %v4186_v52  ;;  %v1314_v15 = vpack.c.bf16 %v4191_v61, %v4191_v61 }
 0x1ce   :  { %v1305_v62 = vrot.slane %v1304_v50, 2  ;;  %v1315_v10 = vpack.c.bf16 %v4195_v36, %v4195_v36  ;;  %v1287_v32 = vmax.f32 %v1285_v4, %v1286_v14  ;;  %v1316_v24 = vpack.c.bf16 %v1252_v3, %v1252_v3 }
 0x1cf   :  { %v1294_v53 = vmax.f32 %v1292_v0, %v1293_v51  ;;  %v1299_v7 = vmax.f32 %v1297_v6, %v1298_v41  ;;  %v1317_v9 = vpack.c.bf16 %v1259_v16, %v1259_v16  ;;  %v1318_v13 = vpack.c.bf16 %v1266_v58, %v1266_v58 }
 0x1d0   :  { %v1306_v8 = vmax.f32 %v1304_v50, %v1305_v62  ;;  %v1319_v31 = vpack.c.bf16 %v1273_v17, %v1273_v17  ;;  %v1320_v60 = vpack.c.bf16 %v1280_v19, %v1280_v19  ;;  %v1321_v52 = vpack.c.bf16 %v1287_v32, %v1287_v32 }
 0x1d1   :  { %v1300_v18 = vrot.slane %v1299_v7, 1  ;;  %v1322_v5 = vpack.c.bf16 %v1294_v53, %v1294_v53  ;;  %v1341_v61 = vunpack.c.l.b16 %v1309_v56  ;;  %v1342_v11 = vunpack.c.l.b16 %v1310_v1 }
 0x1d2   :  { %v1307_v33 = vrot.slane %v1306_v8, 1  ;;  %v1343_v12 = vunpack.c.l.b16 %v1311_v59  ;;  %v1344_v55 = vunpack.c.l.b16 %v1312_v20  ;;  %v1345_v27 = vunpack.c.l.b16 %v1313_v2 }
 0x1d3   :  { %v1301_v36 = vmax.f32 %v1299_v7, %v1300_v18  ;;  %v1346_v28 = vunpack.c.l.b16 %v1314_v15  ;;  %v1347_v3 = vunpack.c.l.b16 %v1315_v10  ;;  %v1348_v0 = vunpack.c.l.b16 %v1316_v24 }
 0x1d4   :  { %v1308_v4 = vmax.f32 %v1306_v8, %v1307_v33  ;;  %v1349_v6 = vunpack.c.l.b16 %v1317_v9  ;;  %v1350_v17 = vunpack.c.l.b16 %v1318_v13  ;;  %v1351_v58 = vunpack.c.l.b16 %v1319_v31 }
 0x1d5   :  { %v1323_v16 = vpack.c.bf16 %v1301_v36, %v1301_v36  ;;  %v1352_v50 = vunpack.c.l.b16 %v1320_v60  ;;  %v1353_v14 = vunpack.c.l.b16 %v1321_v52  ;;  %v1354_v51 = vunpack.c.l.b16 %v1322_v5 }
 0x1d6   :  { %v1324_v19 = vpack.c.bf16 %v1308_v4, %v1308_v4  ;;  %v1357_v56 = vsel %vm659_vm5, %v1342_v11, %v1341_v61  ;;  %v1364_v41 = vsel %vm659_vm5, %v1350_v17, %v1349_v6  ;;  %v869_v20 = vmul.f32 %v3976_v22, %v4093_v57 }
 0x1d7   :  { %v1355_v1 = vunpack.c.l.b16 %v1323_v16  ;;  %v1358_v59 = vsel %vm661_vm6, %v1343_v12, %v1357_v56  ;;  %v1365_v15 = vsel %vm661_vm6, %v1351_v58, %v1364_v41  ;;  %v870_v10 = vmul.f32 %v3978_v23, %v4119_v54 }
 0x1d8   :  { %v1356_v62 = vunpack.c.l.b16 %v1324_v19  ;;  %v1359_v2 = vsel %vm663_vm7, %v1344_v55, %v1358_v59  ;;  %v1366_v53 = vsel %vm663_vm7, %v1352_v50, %v1365_v15  ;;  %v871_v7 = vmul.f32 %v3980_v25, %v4093_v57 }
 0x1d9   :  { %v1360_v32 = vsel %vm665_vm8, %v1345_v27, %v1359_v2  ;;  %v872_v24 = vmul.f32 %v3982_v26, %v4119_v54  ;;  %v1367_v9 = vsel %vm665_vm8, %v1353_v14, %v1366_v53  ;;  %v873_v13 = vmul.f32 %v3988_v29, %v4093_v57 }
 0x1da   :  { %v1361_v8 = vsel %vm667_vm9, %v1346_v28, %v1360_v32  ;;  %v874_v31 = vmul.f32 %v3990_v30, %v4119_v54  ;;  %v1368_v60 = vsel %vm667_vm9, %v1354_v51, %v1367_v9  ;;  %v875_v52 = vmul.f32 %v3996_v34, %v4093_v57 }
 0x1db   :  { %v1362_v18 = vsel %vm669_vm10, %v1347_v3, %v1361_v8  ;;  %v876_v5 = vmul.f32 %v3998_v35, %v4119_v54  ;;  %v1369_v61 = vsel %vm669_vm10, %v1355_v1, %v1368_v60  ;;  %v877_v11 = vmul.f32 %v4000_v37, %v4093_v57 }
 0x1dc   :  { %v1363_v33 = vsel %vm671_vm11, %v1348_v0, %v1362_v18  ;;  %v878_v12 = vmul.f32 %v4002_v38, %v4119_v54  ;;  %v1370_v36 = vsel %vm671_vm11, %v1356_v62, %v1369_v61  ;;  %v879_v55 = vmul.f32 %v4004_v39, %v4093_v57 }
 0x1dd   :  { %v880_v27 = vmul.f32 %v4006_v40, %v4119_v54  ;;  %v881_v28 = vmul.f32 %v4008_v42, %v4093_v57  ;;  %v1371_v4 = vpack.c.b16 %v1370_v36, %v1363_v33  ;;  %v882_v3 = vmul.f32 %v4011_v43, %v4119_v54 }
 0x1de   :  { %v883_v0 = vmul.f32 %v4014_v44, %v4093_v57  ;;  %v884_v6 = vmul.f32 %v4016_v45, %v4119_v54  ;;  %v886_v16 = vsel %vm885_vm12, %v869_v20, -inf  ;;  %v887_v17 = vsel %vm885_vm12, %v870_v10, -inf }
 0x1df   :  { %v895_v58 = vsel %vm885_vm12, %v871_v7, -inf  ;;  %v896_v50 = vsel %vm885_vm12, %v872_v24, -inf  ;;  %1372 = vrot.lane.b32.xlu1 %v1371_v4, %s3819_s3  ;;  %v888_v19 = vmax.f32 %v886_v16, %v887_v17  ;;  %v904_v51 = vsel %vm885_vm12, %v873_v13, -inf }
 0x1e0   :  { %v897_v14 = vmax.f32 %v895_v58, %v896_v50  ;;  %v905_v56 = vsel %vm885_vm12, %v874_v31, -inf  ;;  %v913_v59 = vsel %vm885_vm12, %v875_v52, -inf  ;;  %v914_v41 = vsel %vm885_vm12, %v876_v5, -inf }
 0x1e1   :  { %v906_v1 = vmax.f32 %v904_v51, %v905_v56  ;;  %v922_v20 = vsel %vm885_vm12, %v877_v11, -inf  ;;  %v889_v62 = vrot.slane %v888_v19, 4  ;;  %v915_v15 = vmax.f32 %v913_v59, %v914_v41 }
 0x1e2   :  { %v898_v2 = vrot.slane %v897_v14, 4  ;;  %v923_v10 = vsel %vm885_vm12, %v878_v12, -inf  ;;  %v931_v7 = vsel %vm885_vm12, %v879_v55, -inf  ;;  %v932_v24 = vsel %vm885_vm12, %v880_v27, -inf }
 0x1e3   :  { %v907_v32 = vrot.slane %v906_v1, 4  ;;  %v924_v53 = vmax.f32 %v922_v20, %v923_v10  ;;  %v890_v8 = vmax.f32 %v888_v19, %v889_v62  ;;  %v916_v13 = vrot.slane %v915_v15, 4 }
 0x1e4   :  { %v899_v9 = vmax.f32 %v897_v14, %v898_v2  ;;  %v933_v31 = vmax.f32 %v931_v7, %v932_v24  ;;  %v940_v52 = vsel %vm885_vm12, %v881_v28, -inf  ;;  %v941_v5 = vsel %vm885_vm12, %v882_v3, -inf }
 0x1e5   :  { %v908_v18 = vmax.f32 %v906_v1, %v907_v32  ;;  %v925_v60 = vrot.slane %v924_v53, 4  ;;  %v891_v33 = vrot.slane %v890_v8, 2  ;;  %v917_v11 = vmax.f32 %v915_v15, %v916_v13 }
 0x1e6   :  { %v900_v61 = vrot.slane %v899_v9, 2  ;;  %v934_v12 = vrot.slane %v933_v31, 4  ;;  %v942_v16 = vmax.f32 %v940_v52, %v941_v5  ;;  %v949_v55 = vsel %vm885_vm12, %v883_v0, -inf }
 0x1e7   :  { %v909_v36 = vrot.slane %v908_v18, 2  ;;  %v926_v4 = vmax.f32 %v924_v53, %v925_v60  ;;  %v892_v27 = vmax.f32 %v890_v8, %v891_v33  ;;  %v918_v58 = vrot.slane %v917_v11, 2 }
 0x1e8   :  { %v901_v17 = vmax.f32 %v899_v9, %v900_v61  ;;  %v935_v50 = vmax.f32 %v933_v31, %v934_v12  ;;  %v943_v51 = vrot.slane %v942_v16, 4  ;;  %v950_v28 = vsel %vm885_vm12, %v884_v6, -inf }
 0x1e9   :  { %v910_v19 = vmax.f32 %v908_v18, %v909_v36  ;;  %v927_v14 = vrot.slane %v926_v4, 2  ;;  %v893_v56 = vrot.slane %v892_v27, 1  ;;  %v919_v1 = vmax.f32 %v917_v11, %v918_v58 }
 0x1ea   :  { %v902_v3 = vrot.slane %v901_v17, 1  ;;  %v936_v59 = vrot.slane %v935_v50, 2  ;;  %v944_v62 = vmax.f32 %v942_v16, %v943_v51  ;;  %v951_v2 = vmax.f32 %v949_v55, %v950_v28  ;;  %v5489_v28 = vld [vmem:[#allocation41_spill] sm:$0xff] }
 0x1eb   :  { %v911_v41 = vrot.slane %v910_v19, 1  ;;  %v928_v20 = vmax.f32 %v926_v4, %v927_v14  ;;  %v894_v15 = vmax.f32 %v892_v27, %v893_v56  ;;  %v920_v0 = vrot.slane %v919_v1, 1 }
 0x1ec   :  { %v903_v10 = vmax.f32 %v901_v17, %v902_v3  ;;  %v937_v32 = vmax.f32 %v935_v50, %v936_v59  ;;  %v945_v24 = vrot.slane %v944_v62, 2  ;;  %v952_v8 = vrot.slane %v951_v2, 4 }
 0x1ed   :  { %v912_v53 = vmax.f32 %v910_v19, %v911_v41  ;;  %v929_v7 = vrot.slane %v928_v20, 1  ;;  %v921_v9 = vmax.f32 %v919_v1, %v920_v0  ;;  %v958_v31 = vpack.c.bf16 %v894_v15, %v894_v15 }
 0x1ee   :  { %v938_v13 = vrot.slane %v937_v32, 1  ;;  %v959_v6 = vpack.c.bf16 %v903_v10, %v903_v10  ;;  %v946_v60 = vmax.f32 %v944_v62, %v945_v24  ;;  %v953_v52 = vmax.f32 %v951_v2, %v952_v8  ;;  %v5474_v24 = vld [vmem:[#allocation36_spill] sm:$0xff] }
 0x1ef   :  { %v930_v18 = vmax.f32 %v928_v20, %v929_v7  ;;  %v960_v5 = vpack.c.bf16 %v912_v53, %v912_v53  ;;  %v961_v61 = vpack.c.bf16 %v921_v9, %v921_v9  ;;  %v974_v11 = vunpack.c.l.b16 %v958_v31  ;;  %v5473_v53 = vld [vmem:[#allocation35_spill] sm:$0xff] }
 0x1f0   :  { %v939_v33 = vmax.f32 %v937_v32, %v938_v13  ;;  %v975_v12 = vunpack.c.l.b16 %v959_v6  ;;  %v947_v36 = vrot.slane %v946_v60, 1  ;;  %v954_v4 = vrot.slane %v953_v52, 2  ;;  %v5475_v9 = vld [vmem:[#allocation39_spill] sm:$0xff]  ;;  %v5476_v6 = vld [vmem:[#allocation40_spill] sm:$0xff] }
 0x1f1   :  { %v962_v16 = vpack.c.bf16 %v930_v18, %v930_v18  ;;  %v976_v55 = vunpack.c.l.b16 %v960_v5  ;;  %v977_v17 = vunpack.c.l.b16 %v961_v61  ;;  %v5472_v56 = vrot.slane %v4163_v63, 1  ;;  %v5478_v5 = vld [vmem:[#allocation44_spill] sm:$0xff] }
 0x1f2   :  { %v963_v27 = vpack.c.bf16 %v939_v33, %v939_v33  ;;  %v982_v58 = vsel %vm659_vm5, %v975_v12, %v974_v11  ;;  %v948_v50 = vmax.f32 %v946_v60, %v947_v36  ;;  %v955_v19 = vmax.f32 %v953_v52, %v954_v4  ;;  %v5477_v60 = vld [vmem:[#allocation43_spill] sm:$0xff]  ;;  %v5480_v36 = vld [vmem:[#allocation48_spill] sm:$0xff] }
 0x1f3   :  { %v978_v14 = vunpack.c.l.b16 %v962_v16  ;;  %v983_v51 = vsel %vm661_vm6, %v976_v55, %v982_v58  ;;  %v4283_v3 = vmax.f32 %v4163_v63, %v5472_v56  ;;  %v435_v2 = vmul.f32 %v4018_v46, %v4093_v57  ;;  %v5479_v11 = vld [vmem:[#allocation47_spill] sm:$0xff] }
 0x1f4   :  { %v979_v1 = vunpack.c.l.b16 %v963_v27  ;;  %v984_v59 = vsel %vm663_vm7, %v977_v17, %v983_v51  ;;  %v956_v41 = vrot.slane %v955_v19, 1  ;;  %v964_v20 = vpack.c.bf16 %v948_v50, %v948_v50  ;;  %v5481_v16 = vld [vmem:[#allocation51_spill] sm:$0xff]  ;;  %v5482_v17 = vld [vmem:[#allocation52_spill] sm:$0xff] }
 0x1f5   :  { %v985_v62 = vsel %vm665_vm8, %v978_v14, %v984_v59  ;;  %v436_v10 = vmul.f32 %v4020_v47, %v4119_v54  ;;  %v437_v0 = vmul.f32 %v4022_v48, %v4093_v57  ;;  %v438_v63 = vmul.f32 %v4024_v49, %v4119_v54  ;;  %v5483_v50 = vld [vmem:[#allocation31_spill] sm:$0xff]  ;;  %v5484_v14 = vld [vmem:[#allocation32_spill] sm:$0xff] }
 0x1f6   :  { %v986_v15 = vsel %vm667_vm9, %v979_v1, %v985_v62  ;;  %v957_v32 = vmax.f32 %v955_v19, %v956_v41  ;;  %v439_v7 = vmul.f32 %v5473_v53, %v4093_v57  ;;  %v440_v8 = vmul.f32 %v5474_v24, %v4119_v54  ;;  %v5485_v1 = vld [vmem:[#allocation33_spill] sm:$0xff]  ;;  %v5486_v41 = vld [vmem:[#allocation34_spill] sm:$0xff] }
 0x1f7   :  { %v441_v13 = vmul.f32 %v5475_v9, %v4093_v57  ;;  %v980_v31 = vunpack.c.l.b16 %v964_v20  ;;  %v442_v18 = vmul.f32 %v5476_v6, %v4119_v54  ;;  %v443_v52 = vmul.f32 %v5477_v60, %v4093_v57  ;;  %v5487_v62 = vld [vmem:[#allocation37_spill] sm:$0xff] }
 0x1f8   :  { %v444_v33 = vmul.f32 %v5478_v5, %v4119_v54  ;;  %v965_v61 = vpack.c.bf16 %v957_v32, %v957_v32  ;;  %v445_v12 = vmul.f32 %v5479_v11, %v4093_v57  ;;  %v446_v4 = vmul.f32 %v5480_v36, %v4119_v54  ;;  %v5488_v32 = vld [vmem:[#allocation38_spill] sm:$0xff] }
 0x1f9   :  { %v447_v55 = vmul.f32 %v5481_v16, %v4093_v57  ;;  %v987_v27 = vsel %vm669_vm10, %v980_v31, %v986_v15  ;;  %v448_v58 = vmul.f32 %v5482_v17, %v4119_v54  ;;  %v451_v19 = vmul.f32 %v5483_v50, %v4093_v57  ;;  %v5491_v50 = vld [vmem:[#allocation45_spill] sm:$0xff] }
 0x1fa   :  { %v452_v51 = vmul.f32 %v5484_v14, %v4119_v54  ;;  %v981_v56 = vunpack.c.l.b16 %v965_v61  ;;  %v4323_v59 = vmul.f32 %v5485_v1, %v4093_v57  ;;  %v4327_v20 = vmul.f32 %v5486_v41, %v4119_v54  ;;  %v5490_v61 = vld [vmem:[#allocation42_spill] sm:$0xff] }
 0x1fb   :  { %v4331_v15 = vmul.f32 %v5487_v62, %v4093_v57  ;;  %v4335_v31 = vmul.f32 %v5488_v32, %v4119_v54  ;;  %v4339_v14 = vmul.f32 %v5489_v28, %v4093_v57  ;;  %v4343_v1 = vmul.f32 %v5490_v61, %v4119_v54  ;;  %v5492_v62 = vld [vmem:[#allocation46_spill] sm:$0xff]  ;;  %v5493_v32 = vld [vmem:[#allocation49_spill] sm:$0xff] }
 0x1fc   :  { %v4347_v41 = vmul.f32 %v5491_v50, %v4093_v57  ;;  %v988_v17 = vsel %vm671_vm11, %v981_v56, %v987_v27  ;;  %v4352_v16 = vmul.f32 %v5492_v62, %v4119_v54  ;;  %v4356_v36 = vmul.f32 %v5493_v32, %v4093_v57 }
 0x1fd   :  { %v467_v28 = vsel %vm147_vm2, %v435_v2, -inf  ;;  %v989_v11 = vpack.c.b16 %v988_v17, %v988_v17  ;;  %v468_v61 = vsel %vm147_vm2, %v436_v10, -inf  ;;  %v476_v5 = vsel %vm147_vm2, %v437_v0, -inf }
 0x1fe   :  { %v477_v50 = vsel %vm147_vm2, %v438_v63, -inf  ;;  %v469_v60 = vmax.f32 %v467_v28, %v468_v61  ;;  %v485_v27 = vsel %vm147_vm2, %v439_v7, -inf  ;;  %v486_v56 = vsel %vm147_vm2, %v440_v8, -inf }
 0x1ff   :  { %v478_v6 = vmax.f32 %v476_v5, %v477_v50  ;;  %990 = vrot.lane.b32.xlu1 %v989_v11, %s3822_s10  ;;  %v487_v32 = vmax.f32 %v485_v27, %v486_v56  ;;  %v494_v62 = vsel %vm147_vm2, %v441_v13, -inf  ;;  %v495_v2 = vsel %vm147_vm2, %v442_v18, -inf }
 0x200   :  { %v503_v10 = vsel %vm147_vm2, %v443_v52, -inf  ;;  %v470_v17 = vrot.slane %v469_v60, 4  ;;  %v496_v9 = vmax.f32 %v494_v62, %v495_v2  ;;  %v504_v28 = vsel %vm147_vm2, %v444_v33, -inf }
 0x201   :  { %v479_v0 = vrot.slane %v478_v6, 4  ;;  %v488_v63 = vrot.slane %v487_v32, 4  ;;  %v505_v5 = vmax.f32 %v503_v10, %v504_v28  ;;  %v512_v7 = vsel %vm147_vm2, %v445_v12, -inf }
 0x202   :  { %v513_v8 = vsel %vm147_vm2, %v446_v4, -inf  ;;  %v471_v50 = vmax.f32 %v469_v60, %v470_v17  ;;  %v497_v61 = vrot.slane %v496_v9, 4  ;;  %v521_v18 = vsel %vm147_vm2, %v447_v55, -inf }
 0x203   :  { %v480_v11 = vmax.f32 %v478_v6, %v479_v0  ;;  %v514_v27 = vmax.f32 %v512_v7, %v513_v8  ;;  %v489_v13 = vmax.f32 %v487_v32, %v488_v63  ;;  %v506_v56 = vrot.slane %v505_v5, 4 }
 0x204   :  { %v522_v52 = vsel %vm147_vm2, %v448_v58, -inf  ;;  %v472_v24 = vrot.slane %v471_v50, 2  ;;  %v498_v2 = vmax.f32 %v496_v9, %v497_v61  ;;  %v539_v12 = vsel %vm147_vm2, %v451_v19, -inf }
 0x205   :  { %v481_v62 = vrot.slane %v480_v11, 2  ;;  %v515_v33 = vrot.slane %v514_v27, 4  ;;  %v490_v53 = vrot.slane %v489_v13, 2  ;;  %v507_v10 = vmax.f32 %v505_v5, %v506_v56  ;;  %v5494_v56 = vld [vmem:[#allocation50_spill] sm:$0xff] }
 0x206   :  { %v523_v28 = vmax.f32 %v521_v18, %v522_v52  ;;  %v473_v4 = vmax.f32 %v471_v50, %v472_v24  ;;  %v499_v6 = vrot.slane %v498_v2, 2  ;;  %v540_v55 = vsel %vm147_vm2, %v452_v51, -inf  ;;  %v5495_v24 = vld [vmem:[#allocation53_spill] sm:$0xff] }
 0x207   :  { %v482_v60 = vmax.f32 %v480_v11, %v481_v62  ;;  %v516_v17 = vmax.f32 %v514_v27, %v515_v33  ;;  %v491_v0 = vmax.f32 %v489_v13, %v490_v53  ;;  %v508_v32 = vrot.slane %v507_v10, 2  ;;  %v5496_v27 = vld [vmem:[#allocation54_spill] sm:$0xff] }
 0x208   :  { %v524_v63 = vrot.slane %v523_v28, 4  ;;  %v474_v7 = vrot.slane %v473_v4, 1  ;;  %v500_v8 = vmax.f32 %v498_v2, %v499_v6  ;;  %v541_v5 = vmax.f32 %v539_v12, %v540_v55 }
 0x209   :  { %v483_v58 = vrot.slane %v482_v60, 1  ;;  %v517_v49 = vrot.slane %v516_v17, 2  ;;  %v492_v9 = vrot.slane %v491_v0, 1  ;;  %v509_v61 = vmax.f32 %v507_v10, %v508_v32 }
 0x20a   :  { %v525_v48 = vmax.f32 %v523_v28, %v524_v63  ;;  %v462_v19 = vmul.f32 %v5494_v56, %v4119_v54  ;;  %v463_v50 = vmul.f32 %v5495_v24, %v4093_v57  ;;  %v501_v11 = vrot.slane %v500_v8, 1 }
 0x20b   :  { %v518_v53 = vmax.f32 %v516_v17, %v517_v49  ;;  %v464_v13 = vmul.f32 %v5496_v27, %v4119_v54  ;;  %v510_v51 = vrot.slane %v509_v61, 1  ;;  %v542_v52 = vrot.slane %v541_v5, 4 }
 0x20c   :  { %v526_v18 = vrot.slane %v525_v48, 2  ;;  %v4381_v62 = vmax.f32 %v473_v4, %v474_v7  ;;  %v4383_v2 = vmax.f32 %v482_v60, %v483_v58  ;;  %v548_v33 = vsel %vm147_vm2, %v4323_v59, -inf }
 0x20d   :  { %v549_v10 = vsel %vm147_vm2, %v4327_v20, -inf  ;;  %v4389_v28 = vmax.f32 %v491_v0, %v492_v9  ;;  %v543_v49 = vmax.f32 %v541_v5, %v542_v52  ;;  %v4391_v6 = vmax.f32 %v500_v8, %v501_v11 }
 0x20e   :  { %v527_v57 = vmax.f32 %v525_v48, %v526_v18  ;;  %v550_v12 = vmax.f32 %v548_v33, %v549_v10  ;;  %v519_v54 = vrot.slane %v518_v53, 1  ;;  %v557_v4 = vsel %vm147_vm2, %v4331_v15, -inf }
 0x20f   :  { %v558_v60 = vsel %vm147_vm2, %v4335_v31, -inf  ;;  %v4397_v17 = vmax.f32 %v509_v61, %v510_v51  ;;  %v544_v59 = vrot.slane %v543_v49, 2  ;;  %v566_v48 = vsel %vm147_vm2, %v4339_v14, -inf }
 0x210   :  { %v551_v32 = vrot.slane %v550_v12, 4  ;;  %v559_v63 = vmax.f32 %v557_v4, %v558_v60  ;;  %v528_v20 = vrot.slane %v527_v57, 1  ;;  %v567_v0 = vsel %vm147_vm2, %v4343_v1, -inf }
 0x211   :  { %v576_v55 = vsel %vm147_vm2, %v4352_v16, -inf  ;;  %v545_v7 = vmax.f32 %v543_v49, %v544_v59  ;;  %v575_v31 = vsel %vm147_vm2, %v4347_v41, -inf  ;;  %v568_v8 = vmax.f32 %v566_v48, %v567_v0 }
 0x212   :  { %v552_v15 = vmax.f32 %v550_v12, %v551_v32  ;;  %v560_v58 = vrot.slane %v559_v63, 4  ;;  %v577_v9 = vmax.f32 %v575_v31, %v576_v55  ;;  %v584_v61 = vsel %vm147_vm2, %v4356_v36, -inf }
 0x213   :  { %v585_v5 = vsel %vm147_vm2, %v462_v19, -inf  ;;  %v4410_v14 = vmax.f32 %v518_v53, %v519_v54  ;;  %v546_v18 = vrot.slane %v545_v7, 1  ;;  %v569_v16 = vrot.slane %v568_v8, 4 }
 0x214   :  { %v553_v11 = vrot.slane %v552_v15, 2  ;;  %v561_v1 = vmax.f32 %v559_v63, %v560_v58  ;;  %v586_v51 = vmax.f32 %v584_v61, %v585_v5  ;;  %v578_v52 = vrot.slane %v577_v9, 4 }
 0x215   :  { %v594_v33 = vsel %vm147_vm2, %v464_v13, -inf  ;;  %v593_v12 = vsel %vm147_vm2, %v463_v50, -inf  ;;  %v529_v4 = vmax.f32 %v527_v57, %v528_v20  ;;  %v570_v60 = vmax.f32 %v568_v8, %v569_v16 }
 0x216   :  { %v554_v10 = vmax.f32 %v552_v15, %v553_v11  ;;  %v562_v49 = vrot.slane %v561_v1, 2  ;;  %v587_v41 = vrot.slane %v586_v51, 4  ;;  %v579_v36 = vmax.f32 %v577_v9, %v578_v52 }
 0x217   :  { %v595_v59 = vmax.f32 %v593_v12, %v594_v33  ;;  %v611_v32 = vpack.c.bf16 %v4381_v62, %v4381_v62  ;;  %v547_v63 = vmax.f32 %v545_v7, %v546_v18  ;;  %v571_v48 = vrot.slane %v570_v60, 2 }
 0x218   :  { %v555_v19 = vrot.slane %v554_v10, 1  ;;  %v563_v53 = vmax.f32 %v561_v1, %v562_v49  ;;  %v588_v54 = vmax.f32 %v586_v51, %v587_v41  ;;  %v580_v0 = vrot.slane %v579_v36, 2 }
 0x219   :  { %v596_v55 = vrot.slane %v595_v59, 4  ;;  %v612_v50 = vpack.c.bf16 %v4383_v2, %v4383_v2  ;;  %v572_v57 = vmax.f32 %v570_v60, %v571_v48  ;;  %v613_v8 = vpack.c.bf16 %v4389_v28, %v4389_v28 }
 0x21a   :  { %v556_v13 = vmax.f32 %v554_v10, %v555_v19  ;;  %v564_v15 = vrot.slane %v563_v53, 1  ;;  %v589_v58 = vrot.slane %v588_v54, 2  ;;  %v581_v20 = vmax.f32 %v579_v36, %v580_v0 }
 0x21b   :  { %v597_v31 = vmax.f32 %v595_v59, %v596_v55  ;;  %v614_v62 = vpack.c.bf16 %v4391_v6, %v4391_v6  ;;  %v615_v7 = vpack.c.bf16 %v4397_v17, %v4397_v17  ;;  %v573_v5 = vrot.slane %v572_v57, 1 }
 0x21c   :  { %v565_v9 = vmax.f32 %v563_v53, %v564_v15  ;;  %v590_v61 = vmax.f32 %v588_v54, %v589_v58  ;;  %v582_v11 = vrot.slane %v581_v20, 1  ;;  %v619_v51 = vpack.c.bf16 %v547_v63, %v547_v63 }
 0x21d   :  { %v598_v1 = vrot.slane %v597_v31, 2  ;;  %v620_v2 = vpack.c.bf16 %v556_v13, %v556_v13  ;;  %v643_v52 = vunpack.c.l.b16 %v611_v32  ;;  %v574_v33 = vmax.f32 %v572_v57, %v573_v5 }
 0x21e   :  { %v591_v18 = vrot.slane %v590_v61, 1  ;;  %v621_v16 = vpack.c.bf16 %v565_v9, %v565_v9  ;;  %v583_v10 = vmax.f32 %v581_v20, %v582_v11  ;;  %v644_v28 = vunpack.c.l.b16 %v612_v50 }
 0x21f   :  { %v599_v49 = vmax.f32 %v597_v31, %v598_v1  ;;  %v626_v41 = vpack.c.bf16 %v4283_v3, %v4283_v3  ;;  %v616_v6 = vpack.c.bf16 %v4410_v14, %v4410_v14  ;;  %v645_v17 = vunpack.c.l.b16 %v613_v8 }
 0x220   :  { %v592_v12 = vmax.f32 %v590_v61, %v591_v18  ;;  %v617_v36 = vpack.c.bf16 %v529_v4, %v529_v4  ;;  %v622_v59 = vpack.c.bf16 %v574_v33, %v574_v33  ;;  %v623_v19 = vpack.c.bf16 %v583_v10, %v583_v10 }
 0x221   :  { %v600_v60 = vrot.slane %v599_v49, 1  ;;  %v651_v54 = vunpack.c.l.b16 %v619_v51  ;;  %v652_v63 = vunpack.c.l.b16 %v620_v2  ;;  %v653_v32 = vunpack.c.l.b16 %v621_v16 }
 0x222   :  { %v624_v53 = vpack.c.bf16 %v592_v12, %v592_v12  ;;  %v646_v0 = vunpack.c.l.b16 %v614_v62  ;;  %v647_v55 = vunpack.c.l.b16 %v615_v7  ;;  %v660_v13 = vsel %vm659_vm5, %v644_v28, %v643_v52 }
 0x223   :  { %v601_v48 = vmax.f32 %v599_v49, %v600_v60  ;;  %v648_v15 = vunpack.c.l.b16 %v616_v6  ;;  %v654_v3 = vunpack.c.l.b16 %v622_v59  ;;  %v662_v58 = vsel %vm661_vm6, %v645_v17, %v660_v13  ;;  %v4457_v13 = vld [vmem:[%s5325_s2] sm:$0xff] }
 0x224   :  { %v673_v14 = vsel %vm659_vm5, %v652_v63, %v651_v54  ;;  %v655_v57 = vunpack.c.l.b16 %v623_v19  ;;  %v664_v4 = vsel %vm663_vm7, %v646_v0, %v662_v58  ;;  %v649_v31 = vunpack.c.l.b16 %v617_v36  ;;  %v248_v54 = vpop.f32.mrf.mxu1  ;;  %v5501_v58 = vld [vmem:[#allocation60_spill] sm:$0xff] }
 0x225   :  { %v625_v50 = vpack.c.bf16 %v601_v48, %v601_v48  ;;  %v674_v20 = vsel %vm661_vm6, %v653_v32, %v673_v14  ;;  %v656_v8 = vunpack.c.l.b16 %v624_v53  ;;  %v666_v9 = vsel %vm665_vm8, %v647_v55, %v664_v4 }
 0x226   :  { %v675_v61 = vsel %vm663_vm7, %v654_v3, %v674_v20  ;;  %v5497_v62 = vpack.c.bf16 %v4189_v21, %v4189_v21  ;;  %v668_v11 = vsel %vm667_vm9, %v648_v15, %v666_v9  ;;  %v658_v51 = vunpack.c.l.b16 %v626_v41  ;;  %v5498_v21 = vld [vmem:[#allocation61_spill] sm:$0xff]  ;;  %v5500_v15 = vld [vmem:[#allocation6_spill] sm:$0xff] }
 0x227   :  { %v657_v5 = vunpack.c.l.b16 %v625_v50  ;;  %v676_v1 = vsel %vm665_vm8, %v655_v57, %v675_v61  ;;  %v670_v18 = vsel %vm669_vm10, %v649_v31, %v668_v11  ;;  %v5499_v49 = vmov 0.0   ;;  %v5502_v61 = vld [vmem:[#allocation58_spill] sm:$0xff] }
 0x228   :  { %v650_v7 = vunpack.c.l.b16 %v5497_v62  ;;  %v677_v2 = vsel %vm667_vm9, %v656_v8, %v676_v1  ;;  %v736_v3 = vrot.slane %v4457_v13, %v5500_v15 }
 0x229   :  { %v678_v52 = vsel %vm669_vm10, %v657_v5, %v677_v2 }
 0x22a   :  { %v672_v16 = vsel %vm671_vm11, %v650_v7, %v670_v18  ;;  %v679_v33 = vsel %vm671_vm11, %v658_v51, %v678_v52 }
 0x22b   :  { %v680_v10 = vpack.c.b16 %v679_v33, %v672_v16 }
 0x22d   :  { %3636 = vmatmul.mubr.msk.bf16.vlgmr.msra.gmra.mxu0 %vm147_vm2, %v680_v10 }
 0x22e   :  { %3646 = vmatpush3.bf16.msra.mxu0 %v5498_v21  ;;  %3647 = vmatprep.mubr.msk.bf16.mxu0 %vm3821_vm3, %v5499_v49 }
 0x251   :  { %v1373_v28 = vpop.permute.xlu1 %1372 }
 0x252   :  { %3648 = vmatmul.mubr.msk.bf16.vlgmr.msra.gmra.mxu0 %vm147_vm2, %v1373_v28 }
 0x271   :  { %v991_v41 = vpop.permute.xlu1 %990 }
 0x272   :  { %3642 = vmatmul.mubr.msk.bf16.vlgmr.msra.gmra.mxu1 %vm147_vm2, %v991_v41 }
 0x2ed   :  { %v724_v12 = vpop.f32.mrf.mxu0 }
 0x2ef   :  { %v3637_v6 = vpop.f32.mrf.mxu0 }
 0x2f1   :  { %v727_v17 = vpop.f32.mrf.mxu0 }
 0x2f3   :  { %v3638_v60 = vpop.f32.mrf.mxu0 }
 0x312   :  { %v1414_v36 = vpop.f32.mrf.mxu0 }
 0x313   :  { %1423 = vrot.lane.b32.xlu0 %v1414_v36, %s3817_s18  ;;  %v731_v36 = vadd.f32 %v724_v12, %v5501_v58 }
 0x314   :  { %v3649_v59 = vpop.f32.mrf.mxu0 }
 0x315   :  { %v737_v59 = vadd.f32 %v736_v3, %v731_v36 }
 0x316   :  { %v1417_v19 = vpop.f32.mrf.mxu0 }
 0x317   :  { %1425 = vrot.lane.b32.xlu1 %v1417_v19, %s3817_s18 }
 0x318   :  { %v3650_v53 = vpop.f32.mrf.mxu0 }
 0x332   :  { %v1032_v63 = vpop.f32.mrf.mxu1 }
 0x333   :  { %1039 = vrot.lane.b32.xlu0 %v1032_v63, %s3823_s11  ;;  %v739_v63 = vmax.f32 %v737_v59, 0.0  ;;  %v3751_v59 = vld [vmem:[#allocation2 + $0x2c] sm:$0xff]  }
 0x334   :  { %v3643_v32 = vpop.f32.mrf.mxu1 }
 0x336   :  { %v1035_v48 = vpop.f32.mrf.mxu1 }
 0x338   :  { %v3644_v0 = vpop.f32.mrf.mxu1 }
 0x339   :  { %v742_v0 = vsel %vm741_vm13, %v739_v63, 0.0 }
 0x385   :  { %v1424_v55 = vpop.permute.xlu0 %1423 }
 0x386   :  { %v1429_v14 = vadd.f32 %v1424_v55, %v5501_v58  ;;  %v732_v55 = vadd.f32 %v727_v17, %v248_v54 }
 0x388   :  { %v1431_v50 = vadd.f32 %v1429_v14, %v736_v3  ;;  %v738_v14 = vadd.f32 %v736_v3, %v732_v55 }
 0x389   :  { %v1426_v57 = vpop.permute.xlu1 %1425 }
 0x38a   :  { %v1430_v4 = vadd.f32 %v1426_v57, %v248_v54  ;;  %v1433_v20 = vmax.f32 %v1431_v50, 0.0  ;;  %v740_v50 = vmax.f32 %v738_v14, 0.0 }
 0x38c   :  { %1437 = vrot.lane.b32.xlu1 %v1433_v20, %s3817_s18  ;;  %v1432_v31 = vadd.f32 %v1430_v4, %v736_v3  ;;  %v745_v57 = vsel %vm741_vm13, %v740_v50, 0.0 }
 0x38e   :  { %v1434_v8 = vmax.f32 %v1432_v31, 0.0 }
 0x390   :  { %1439 = vrot.lane.b32.xlu0 %v1434_v8, %s3817_s18 }
 0x3a5   :  { %v1040_v9 = vpop.permute.xlu0 %1039 }
 0x3a6   :  { %v1042_v62 = vadd.f32 %v5502_v61, %v1040_v9 }
 0x3a8   :  { %v1043_v7 = vadd.f32 %v1042_v62, %v736_v3 }
 0x3aa   :  { %v1044_v5 = vmax.f32 %v1043_v7, 0.0 }
 0x3ac   :  { %1046 = vrot.lane.b32.xlu1 %v1044_v5, %s3819_s3 }
 0x3fe   :  { %v1438_v11 = vpop.permute.xlu1 %1437 }
 0x3ff   :  { %v1443_v1 = vsel %vm741_vm13, %v1438_v11, 0.0 }
 0x400   :  { %1444 = vadd.xlane.f32.xlu0 %v1443_v1 }
 0x402   :  { %v1440_v51 = vpop.permute.xlu0 %1439 }
 0x403   :  { %v1446_v18 = vsel %vm741_vm13, %v1440_v51, 0.0 }
 0x404   :  { %1447 = vadd.xlane.f32.xlu1 %v1446_v18 }
 0x41e   :  { %v1047_v2 = vpop.permute.xlu1 %1046 }
 0x41f   :  { %v1049_v16 = vsel %vm741_vm13, %v1047_v2, 0.0 }
 0x420   :  { %1050 = vadd.xlane.f32.xlu0 %v1049_v16 }
 0x489   :  { %v1445_v52 = vpop.xlane.xlu0 %1444 }
 0x48a   :  { %v1449_v33 = vmul.f32 0.03125, %v1445_v52 }
 0x48c   :  { %v4469_v10 = vsub.f32 %v1433_v20, %v1449_v33 }
 0x48d   :  { %v1448_v21 = vpop.xlane.xlu1 %1447 }
 0x48e   :  { %v1450_v28 = vmul.f32 0.03125, %v1448_v21  ;;  %v1453_v41 = vmul.f32 %v4469_v10, %v4469_v10  ;;  %v3749_v21 = vld [vmem:[#allocation2 + $0x34] sm:$0xff]  }
 0x48f   :  { %3651 = vmatprep.subr.bf16.mxu1 %v3749_v21 }
 0x490   :  { %v4473_v6 = vsub.f32 %v1434_v8, %v1450_v28  ;;  %1457 = vrot.lane.b32.xlu0 %v1453_v41, %s3817_s18  ;;  %v3750_v28 = vld [vmem:[#allocation2 + $0x44] sm:$0xff]   ;;  %3652 = vmatpush3.bf16.msra.mxu1 %v3749_v21  ;;  %v5503_v41 = vld [vmem:[#allocation7_spill] sm:$0xff] }
 0x491   :  { %3659 = vmatprep.subr.bf16.mxu0 %v3750_v28  ;;  %3653 = vmatprep.subr.bf16.mxu1 %v3751_v59 }
 0x492   :  { %v1454_v60 = vmul.f32 %v4473_v6, %v4473_v6  ;;  %3660 = vmatpush3.bf16.msra.mxu0 %v3750_v28 }
 0x494   :  { %1459 = vrot.lane.b32.xlu1 %v1454_v60, %s3817_s18  ;;  %v772_v60 = vrot.slane %v4457_v13, %v5503_v41  ;;  %3654 = vmatpush3.bf16.msra.mxu1 %v3751_v59 }
 0x495   :  { %3667 = vmatprep.subr.bf16.mxu1 %v5499_v49 }
 0x4a9   :  { %v1051_v19 = vpop.xlane.xlu0 %1050 }
 0x4aa   :  { %v1052_v53 = vmul.f32 0.03125, %v1051_v19  ;;  %v3752_v19 = vld [vmem:[#allocation2 + $0x3c] sm:$0xff]  }
 0x4ab   :  { %3661 = vmatprep.subr.bf16.mxu0 %v3752_v19 }
 0x4ac   :  { %v4480_v32 = vsub.f32 %v1044_v5, %v1052_v53  ;;  %v5504_v53 = vld [vmem:[#allocation8_spill] sm:$0xff]  ;;  %3662 = vmatpush3.bf16.msra.mxu0 %v3752_v19 }
 0x4ad   :  { %3675 = vmatprep.subr.bf16.mxu0 %v5499_v49 }
 0x4ae   :  { %v1054_v48 = vmul.f32 %v4480_v32, %v4480_v32 }
 0x4af   :  { %743 = vadd.xlane.f32.xlu0 %v742_v0 }
 0x4b0   :  { %1056 = vrot.lane.b32.xlu1 %v1054_v48, %s3819_s3 }
 0x4d4   :  { %746 = vadd.xlane.f32.xlu1 %v745_v57 }
 0x502   :  { %v1458_v12 = vpop.permute.xlu0 %1457 }
 0x503   :  { %v1463_v58 = vsel %vm741_vm13, %v1458_v12, 0.0 }
 0x504   :  { %1464 = vadd.xlane.f32.xlu0 %v1463_v58 }
 0x506   :  { %v1460_v4 = vpop.permute.xlu1 %1459 }
 0x507   :  { %v1466_v20 = vsel %vm741_vm13, %v1460_v4, 0.0 }
 0x508   :  { %1467 = vadd.xlane.f32.xlu0 %v1466_v20 }
 0x522   :  { %v1057_v31 = vpop.permute.xlu1 %1056 }
 0x523   :  { %v1059_v8 = vsel %vm741_vm13, %v1057_v31, 0.0 }
 0x524   :  { %1060 = vadd.xlane.f32.xlu1 %v1059_v8 }
 0x538   :  { %v744_v9 = vpop.xlane.xlu0 %743 }
 0x539   :  { %v749_v61 = vmul.f32 0.03125, %v744_v9 }
 0x53b   :  { %v4490_v17 = vsub.f32 %v739_v63, %v749_v61  ;;  %v778_v63 = vrot.slane %v4457_v13, %v5504_v53 }
 0x53d   :  { %v753_v54 = vmul.f32 %v4490_v17, %v4490_v17 }
 0x53f   :  { %v755_v3 = vsel %vm741_vm13, %v753_v54, 0.0 }
 0x540   :  { %756 = vadd.xlane.f32.xlu0 %v755_v3 }
 0x55d   :  { %v747_v62 = vpop.xlane.xlu1 %746 }
 0x55e   :  { %v750_v7 = vmul.f32 0.03125, %v747_v62 }
 0x560   :  { %v752_v5 = vsub.f32 %v740_v50, %v750_v7 }
 0x562   :  { %v754_v11 = vmul.f32 %v752_v5, %v752_v5 }
 0x564   :  { %v758_v1 = vsel %vm741_vm13, %v754_v11, 0.0 }
 0x565   :  { %759 = vadd.xlane.f32.xlu1 %v758_v1 }
 0x58d   :  { %v1465_v51 = vpop.xlane.xlu0 %1464 }
 0x58e   :  { %v1469_v18 = vmul.f32 0.03125, %v1465_v51 }
 0x590   :  { %v1471_v2 = vadd.f32 1e-05, %v1469_v18 }
 0x591   :  { %v1468_v16 = vpop.xlane.xlu0 %1467 }
 0x592   :  { %3761 = vrsqrt.f32 %v1471_v2  ;;  %v1470_v52 = vmul.f32 0.03125, %v1468_v16 }
 0x594   :  { %v1472_v33 = vadd.f32 1e-05, %v1470_v52 }
 0x596   :  { %3763 = vrsqrt.f32 %v1472_v33 }
 0x59f   :  { %v3762_v36 = vpop.eup %3761 }
 0x5a0   :  { %v1475_v48 = vmul.f32 %v3762_v36, %v4469_v10 }
 0x5a2   :  { %v1477_v0 = vmul.f32 %v1475_v48, %v772_v60 }
 0x5a3   :  { %v3764_v55 = vpop.eup %3763 }
 0x5a4   :  { %v1479_v14 = vadd.f32 %v1477_v0, %v778_v63  ;;  %v1476_v50 = vmul.f32 %v3764_v55, %v4473_v6 }
 0x5a6   :  { %1483 = vrot.lane.b32.xlu0 %v1479_v14, %s3817_s18  ;;  %v1478_v57 = vmul.f32 %v1476_v50, %v772_v60 }
 0x5a8   :  { %v1480_v12 = vadd.f32 %v1478_v57, %v778_v63 }
 0x5aa   :  { %1485 = vrot.lane.b32.xlu1 %v1480_v12, %s3817_s18 }
 0x5ad   :  { %v1061_v10 = vpop.xlane.xlu1 %1060 }
 0x5ae   :  { %v1062_v58 = vmul.f32 0.03125, %v1061_v10 }
 0x5b0   :  { %v1063_v4 = vadd.f32 1e-05, %v1062_v58 }
 0x5b2   :  { %3765 = vrsqrt.f32 %v1063_v4 }
 0x5bf   :  { %v3766_v20 = vpop.eup %3765 }
 0x5c0   :  { %v1065_v31 = vmul.f32 %v3766_v20, %v4480_v32 }
 0x5c2   :  { %v1066_v8 = vmul.f32 %v1065_v31, %v772_v60  ;;  %v5508_v31 = vld [vmem:[#allocation13_spill] sm:$0xff] }
 0x5c4   :  { %v1067_v9 = vadd.f32 %v1066_v8, %v778_v63 }
 0x5c6   :  { %1492 = vrot.lane.b32.xlu1 %v1067_v9, %s3819_s3  ;;  %v5509_v9 = vld [vmem:[#allocation15_spill] sm:$0xff] }
 0x5c9   :  { %v757_v61 = vpop.xlane.xlu0 %756 }
 0x5ca   :  { %v761_v6 = vmul.f32 0.03125, %v757_v61 }
 0x5cc   :  { %v763_v62 = vadd.f32 1e-05, %v761_v6 }
 0x5ce   :  { %3767 = vrsqrt.f32 %v763_v62 }
 0x5db   :  { %v3768_v11 = vpop.eup %3767 }
 0x5dc   :  { %v767_v51 = vmul.f32 %v3768_v11, %v4490_v17  ;;  %v3753_v17 = vld [vmem:[#allocation2 + $0x54] sm:$0xff]  }
 0x5dd   :  { %2383 = vrot.lane.b32.xlu0 %v3753_v17, %s3817_s18 }
 0x5de   :  { %v773_v2 = vmul.f32 %v772_v60, %v767_v51 }
 0x5e0   :  { %v779_v52 = vadd.f32 %v778_v63, %v773_v2 }
 0x5e1   :  { %2110 = vrot.lane.b32.xlu0 %v3753_v17, %s3819_s3 }
 0x5ee   :  { %v760_v54 = vpop.xlane.xlu1 %759 }
 0x5ef   :  { %v762_v3 = vmul.f32 0.03125, %v760_v54  ;;  %v5510_v54 = vld [vmem:[#allocation17_spill] sm:$0xff] }
 0x5f1   :  { %v764_v7 = vadd.f32 1e-05, %v762_v3  ;;  %v5511_v3 = vld [vmem:[#allocation19_spill] sm:$0xff] }
 0x5f3   :  { %3769 = vrsqrt.f32 %v764_v7  ;;  %v5512_v7 = vld [vmem:[#allocation21_spill] sm:$0xff] }
 0x600   :  { %v3770_v1 = vpop.eup %3769 }
 0x601   :  { %v768_v18 = vmul.f32 %v3770_v1, %v752_v5  ;;  %v3754_v5 = vld [vmem:[#allocation2 + $0x4c] sm:$0xff]   ;;  %v5513_v1 = vld [vmem:[#allocation23_spill] sm:$0xff] }
 0x602   :  { %2381 = vrot.lane.b32.xlu1 %v3754_v5, %s3817_s18  ;;  %2108 = vrot.lane.b32.xlu0 %v3754_v5, %s3819_s3 }
 0x603   :  { %v774_v16 = vmul.f32 %v772_v60, %v768_v18  ;;  %v5505_v60 = vld [vmem:[#allocation9_spill] sm:$0xff] }
 0x604   :  { %v5514_v18 = vld [vmem:[#allocation25_spill] sm:$0xff] }
 0x605   :  { %v780_v33 = vadd.f32 %v778_v63, %v774_v16  ;;  %v1512_v63 = vrot.slane %v4457_v13, %v5505_v60 }
 0x618   :  { %v1484_v32 = vpop.permute.xlu0 %1483 }
 0x619   :  { %v1489_v28 = vadd.f32 %v1484_v32, %v779_v52  ;;  %v5515_v32 = vld [vmem:[#allocation27_spill] sm:$0xff] }
 0x61c   :  { %v1486_v21 = vpop.permute.xlu1 %1485 }
 0x61d   :  { %v1490_v36 = vadd.f32 %v1486_v21, %v780_v33  ;;  %v5516_v33 = vld [vmem:[#allocation14_spill] sm:$0xff] }
 0x61f   :  { %v1495_v59 = vpack.c.bf16 %v1490_v36, %v1489_v28  ;;  %v5517_v28 = vld [vmem:[#allocation16_spill] sm:$0xff] }
 0x621   :  { %3655 = vmatprep.mubr.msk.bf16.mxu1 %vm741_vm13, %v1495_v59  ;;  %3663 = vmatprep.mubr.msk.bf16.mxu0 %vm741_vm13, %v1495_v59  ;;  %v5518_v59 = vld [vmem:[#allocation18_spill] sm:$0xff] }
 0x638   :  { %v1493_v19 = vpop.permute.xlu1 %1492 }
 0x639   :  { %v1496_v48 = vpack.c.bf16 %v1493_v19, %v1493_v19 }
 0x63b   :  { %3656 = vmatmul.mubr.msk.bf16.vlgmr.msra.gmra.mxu1 %vm741_vm13, %v1496_v48  ;;  %3664 = vmatmul.mubr.msk.bf16.vlgmr.msra.gmra.mxu0 %vm741_vm13, %v1496_v48  ;;  %v5519_v48 = vld [vmem:[#allocation20_spill] sm:$0xff] }
 0x63c   :  { %3671 = vmatprep.mubr.msk.bf16.mxu1 %vm3821_vm3, %v5499_v49  ;;  %3679 = vmatprep.mubr.msk.bf16.mxu0 %vm3821_vm3, %v5499_v49 }
 0x63d   :  { %3668 = vmatpush3.bf16.msra.mxu1 %v3753_v17 }
 0x63e   :  { %3669 = vmatprep.subr.bf16.mxu1 %v5499_v49 }
 0x641   :  { %3670 = vmatpush3.bf16.msra.mxu1 %v3754_v5  ;;  %v5520_v5 = vld [vmem:[#allocation22_spill] sm:$0xff] }
 0x642   :  { %3683 = vmatprep.subr.bf16.mxu1 %v5499_v49 }
 0x6fb   :  { %v3657_v0 = vpop.f32.mrf.mxu1  ;;  %v4525_v55 = vpop.f32.mrf.mxu0 }
 0x6fc   :  { %5506 = vst [vmem:[#allocation61_spill] sm:$0xff] %v4525_v55  ;;  %v1574_v14 = vadd.f32 %v3657_v0, %v1512_v63  ;;  %v5521_v0 = vld [vmem:[#allocation24_spill] sm:$0xff] }
 0x6fd   :  { %v1565_v50 = vpop.f32.mrf.mxu1  ;;  %v4527_v57 = vpop.f32.mrf.mxu0 }
 0x6fe   :  { %5507 = vst [vmem:[#allocation60_spill] sm:$0xff] %v4527_v57  ;;  %v1581_v12 = vmax.f32 %v1574_v14, 0.0  ;;  %v1566_v10 = vadd.f32 %v1565_v50, %v1512_v63  ;;  %v5522_v50 = vld [vmem:[#allocation26_spill] sm:$0xff] }
 0x6ff   :  { %v3658_v58 = vpop.f32.mrf.mxu1  ;;  %v3666_v4 = vpop.f32.mrf.mxu0 }
 0x700   :  { %v4529_v20 = vmax.f32 %v1566_v10, 0.0  ;;  %v2187_v8 = vmul.f32 %v1581_v12, %v5508_v31  ;;  %v2188_v61 = vmul.f32 %v1581_v12, %v5509_v9  ;;  %v2189_v13 = vmul.f32 %v1581_v12, %v5510_v54  ;;  %v5523_v58 = vld [vmem:[#allocation28_spill] sm:$0xff] }
 0x701   :  { %v1568_v6 = vpop.f32.mrf.mxu1  ;;  %v2190_v62 = vmul.f32 %v1581_v12, %v5511_v3  ;;  %v2191_v11 = vmul.f32 %v1581_v12, %v5512_v7  ;;  %v2192_v51 = vmul.f32 %v1581_v12, %v5513_v1  ;;  %v2193_v2 = vmul.f32 %v1581_v12, %v5514_v18 }
 0x702   :  { %v1569_v16 = vadd.f32 %v1568_v6, %v1512_v63  ;;  %v2194_v52 = vmul.f32 %v1581_v12, %v5515_v32  ;;  %v4540_v21 = vmul.f32 %v1581_v12, %v5516_v33  ;;  %v4543_v36 = vmul.f32 %v1581_v12, %v5517_v28  ;;  %v4570_v28 = vpop.permute.xlu0 %2383 }
 0x703   :  { %v4546_v19 = vmul.f32 %v1581_v12, %v5518_v59  ;;  %v4549_v17 = vmul.f32 %v1581_v12, %v5519_v48  ;;  %v4552_v60 = vmul.f32 %v1581_v12, %v5520_v5  ;;  %v4555_v14 = vmul.f32 %v1581_v12, %v5521_v0 }
 0x704   :  { %v4557_v63 = vmax.f32 %v1569_v16, 0.0  ;;  %v4560_v10 = vmul.f32 %v1581_v12, %v5522_v50  ;;  %v4563_v4 = vmul.f32 %v1581_v12, %v5523_v58  ;;  %v2204_v6 = vsel %vm2203_vm14, %v2187_v8, -inf }
 0x705   :  { %v2205_v53 = vrot.slane %v2204_v6, 4  ;;  %v2211_v41 = vsel %vm2203_vm14, %v2188_v61, -inf  ;;  %v2218_v15 = vsel %vm2203_vm14, %v2189_v13, -inf  ;;  %v2225_v5 = vsel %vm2203_vm14, %v2190_v62, -inf }
 0x706   :  { %v2212_v48 = vrot.slane %v2211_v41, 4  ;;  %v2219_v0 = vrot.slane %v2218_v15, 4  ;;  %v2226_v59 = vrot.slane %v2225_v5, 4  ;;  %v2232_v16 = vsel %vm2203_vm14, %v2191_v11, -inf  ;;  %v2111_v31 = vpop.permute.xlu0 %2110 }
 0x707   :  { %v2206_v50 = vmax.f32 %v2204_v6, %v2205_v53  ;;  %v2233_v33 = vrot.slane %v2232_v16, 4  ;;  %v2239_v12 = vsel %vm2203_vm14, %v2192_v51, -inf  ;;  %v2246_v8 = vsel %vm2203_vm14, %v2193_v2, -inf  ;;  %3676 = vmatpush3.bf16.msra.mxu0 %v2111_v31 }
 0x708   :  { %v2213_v58 = vmax.f32 %v2211_v41, %v2212_v48  ;;  %v2220_v32 = vmax.f32 %v2218_v15, %v2219_v0  ;;  %v2227_v61 = vmax.f32 %v2225_v5, %v2226_v59  ;;  %v2240_v18 = vrot.slane %v2239_v12, 4  ;;  %3677 = vmatprep.subr.bf16.mxu0 %v5499_v49 }
 0x709   :  { %v2207_v13 = vrot.slane %v2206_v50, 2  ;;  %v2234_v1 = vmax.f32 %v2232_v16, %v2233_v33  ;;  %v2247_v62 = vrot.slane %v2246_v8, 4  ;;  %v2253_v7 = vsel %vm2203_vm14, %v2194_v52, -inf }
 0x70a   :  { %v2214_v3 = vrot.slane %v2213_v58, 2  ;;  %v2221_v54 = vrot.slane %v2220_v32, 2  ;;  %v2228_v11 = vrot.slane %v2227_v61, 2  ;;  %v2241_v9 = vmax.f32 %v2239_v12, %v2240_v18 }
 0x70b   :  { %v2208_v53 = vmax.f32 %v2206_v50, %v2207_v13  ;;  %v2235_v6 = vrot.slane %v2234_v1, 2  ;;  %v2248_v55 = vmax.f32 %v2246_v8, %v2247_v62  ;;  %v2254_v51 = vrot.slane %v2253_v7, 4 }
 0x70c   :  { %v2215_v2 = vmax.f32 %v2213_v58, %v2214_v3  ;;  %v2222_v41 = vmax.f32 %v2220_v32, %v2221_v54  ;;  %v2229_v15 = vmax.f32 %v2227_v61, %v2228_v11  ;;  %v2242_v59 = vrot.slane %v2241_v9, 2 }
 0x70d   :  { %v2209_v33 = vrot.slane %v2208_v53, 1  ;;  %v2236_v48 = vmax.f32 %v2234_v1, %v2235_v6  ;;  %v2249_v5 = vrot.slane %v2248_v55, 2  ;;  %v2255_v52 = vmax.f32 %v2253_v7, %v2254_v51 }
 0x70e   :  { %v2216_v0 = vrot.slane %v2215_v2, 1  ;;  %v2223_v16 = vrot.slane %v2222_v41, 1  ;;  %v2230_v57 = vrot.slane %v2229_v15, 1  ;;  %v2243_v18 = vmax.f32 %v2241_v9, %v2242_v59 }
 0x70f   :  { %v4576_v12 = vmax.f32 %v2208_v53, %v2209_v33  ;;  %v2237_v50 = vrot.slane %v2236_v48, 1  ;;  %v2250_v8 = vmax.f32 %v2248_v55, %v2249_v5  ;;  %v2256_v13 = vrot.slane %v2255_v52, 2 }
 0x710   :  { %v4578_v31 = vmax.f32 %v2215_v2, %v2216_v0  ;;  %v4580_v54 = vmax.f32 %v2222_v41, %v2223_v16  ;;  %v4582_v3 = vmax.f32 %v2229_v15, %v2230_v57  ;;  %v2244_v32 = vrot.slane %v2243_v18, 1 }
 0x711   :  { %v4584_v58 = vmax.f32 %v2236_v48, %v2237_v50  ;;  %v2251_v1 = vrot.slane %v2250_v8, 1  ;;  %v2257_v7 = vmax.f32 %v2255_v52, %v2256_v13  ;;  %v2260_v61 = vsel %vm2203_vm14, %v4540_v21, -inf }
 0x712   :  { %v4588_v9 = vmax.f32 %v2243_v18, %v2244_v32  ;;  %v2261_v62 = vrot.slane %v2260_v61, 4  ;;  %v2267_v55 = vsel %vm2203_vm14, %v4543_v36, -inf  ;;  %v2274_v11 = vsel %vm2203_vm14, %v4546_v19, -inf }
 0x713   :  { %v4594_v53 = vmax.f32 %v2250_v8, %v2251_v1  ;;  %v2258_v57 = vrot.slane %v2257_v7, 1  ;;  %v2268_v6 = vrot.slane %v2267_v55, 4  ;;  %v2275_v51 = vrot.slane %v2274_v11, 4 }
 0x714   :  { %v2262_v2 = vmax.f32 %v2260_v61, %v2261_v62  ;;  %v2281_v41 = vsel %vm2203_vm14, %v4549_v17, -inf  ;;  %v2288_v21 = vsel %vm2203_vm14, %v4552_v60, -inf  ;;  %v2295_v15 = vsel %vm2203_vm14, %v4555_v14, -inf }
 0x715   :  { %v4602_v59 = vmax.f32 %v2257_v7, %v2258_v57  ;;  %v2269_v36 = vmax.f32 %v2267_v55, %v2268_v6  ;;  %v2276_v33 = vmax.f32 %v2274_v11, %v2275_v51  ;;  %v2282_v19 = vrot.slane %v2281_v41, 4 }
 0x716   :  { %v2263_v48 = vrot.slane %v2262_v2, 2  ;;  %v2289_v5 = vrot.slane %v2288_v21, 4  ;;  %v2296_v52 = vrot.slane %v2295_v15, 4  ;;  %v2302_v0 = vsel %vm2203_vm14, %v4560_v10, -inf }
 0x717   :  { %v2270_v16 = vrot.slane %v2269_v36, 2  ;;  %v2277_v18 = vrot.slane %v2276_v33, 2  ;;  %v2283_v17 = vmax.f32 %v2281_v41, %v2282_v19  ;;  %v2303_v50 = vrot.slane %v2302_v0, 4 }
 0x718   :  { %v2264_v8 = vmax.f32 %v2262_v2, %v2263_v48  ;;  %v2290_v60 = vmax.f32 %v2288_v21, %v2289_v5  ;;  %v2297_v13 = vmax.f32 %v2295_v15, %v2296_v52  ;;  %v2309_v14 = vsel %vm2203_vm14, %v4563_v4, -inf }
 0x719   :  { %v2271_v32 = vmax.f32 %v2269_v36, %v2270_v16  ;;  %v2278_v1 = vmax.f32 %v2276_v33, %v2277_v18  ;;  %v2284_v7 = vrot.slane %v2283_v17, 2  ;;  %v2304_v61 = vmax.f32 %v2302_v0, %v2303_v50 }
 0x71a   :  { %v2265_v62 = vrot.slane %v2264_v8, 1  ;;  %v2291_v55 = vrot.slane %v2290_v60, 2  ;;  %v2298_v11 = vrot.slane %v2297_v13, 2  ;;  %v2310_v57 = vrot.slane %v2309_v14, 4 }
 0x71b   :  { %v2272_v6 = vrot.slane %v2271_v32, 1  ;;  %v2279_v10 = vrot.slane %v2278_v1, 1  ;;  %v2285_v51 = vmax.f32 %v2283_v17, %v2284_v7  ;;  %v2305_v49 = vrot.slane %v2304_v61, 2 }
 0x71c   :  { %v2266_v41 = vmax.f32 %v2264_v8, %v2265_v62  ;;  %v2292_v19 = vmax.f32 %v2290_v60, %v2291_v55  ;;  %v2299_v2 = vmax.f32 %v2297_v13, %v2298_v11  ;;  %v2311_v21 = vmax.f32 %v2309_v14, %v2310_v57 }
 0x71d   :  { %v2273_v15 = vmax.f32 %v2271_v32, %v2272_v6  ;;  %v2280_v48 = vmax.f32 %v2278_v1, %v2279_v10  ;;  %v2286_v5 = vrot.slane %v2285_v51, 1  ;;  %v2306_v4 = vmax.f32 %v2304_v61, %v2305_v49 }
 0x71e   :  { %v2293_v36 = vrot.slane %v2292_v19, 1  ;;  %v2300_v33 = vrot.slane %v2299_v2, 1  ;;  %v2312_v52 = vrot.slane %v2311_v21, 2  ;;  %v2316_v0 = vpack.c.bf16 %v4576_v12, %v4576_v12 }
 0x71f   :  { %v2287_v16 = vmax.f32 %v2285_v51, %v2286_v5  ;;  %v2307_v18 = vrot.slane %v2306_v4, 1  ;;  %v2317_v17 = vpack.c.bf16 %v4578_v31, %v4578_v31  ;;  %v2318_v50 = vpack.c.bf16 %v4580_v54, %v4580_v54 }
 0x720   :  { %v2294_v8 = vmax.f32 %v2292_v19, %v2293_v36  ;;  %v2301_v60 = vmax.f32 %v2299_v2, %v2300_v33  ;;  %v2313_v13 = vmax.f32 %v2311_v21, %v2312_v52  ;;  %v2319_v49 = vpack.c.bf16 %v4582_v3, %v4582_v3 }
 0x721   :  { %v2308_v14 = vmax.f32 %v2306_v4, %v2307_v18  ;;  %v2320_v32 = vpack.c.bf16 %v4584_v58, %v4584_v58  ;;  %v2321_v12 = vpack.c.bf16 %v4588_v9, %v4588_v9  ;;  %v2322_v1 = vpack.c.bf16 %v4594_v53, %v4594_v53  ;;  %v2109_v53 = vpop.permute.xlu0 %2108 }
 0x722   :  { %v2314_v31 = vrot.slane %v2313_v13, 1  ;;  %v2323_v54 = vpack.c.bf16 %v4602_v59, %v4602_v59  ;;  %v2324_v7 = vpack.c.bf16 %v2266_v41, %v2266_v41  ;;  %v2325_v61 = vpack.c.bf16 %v2273_v15, %v2273_v15  ;;  %3678 = vmatpush3.bf16.msra.mxu0 %v2109_v53 }
 0x723   :  { %v2326_v62 = vpack.c.bf16 %v2280_v48, %v2280_v48  ;;  %v2327_v55 = vpack.c.bf16 %v2287_v16, %v2287_v16  ;;  %v2328_v11 = vpack.c.bf16 %v2294_v8, %v2294_v8  ;;  %v2329_v3 = vpack.c.bf16 %v2301_v60, %v2301_v60 }
 0x724   :  { %v2315_v57 = vmax.f32 %v2313_v13, %v2314_v31  ;;  %v2330_v6 = vpack.c.bf16 %v2308_v14, %v2308_v14  ;;  %v2348_v10 = vunpack.c.l.b16 %v2316_v0  ;;  %v2349_v58 = vunpack.c.l.b16 %v2317_v17 }
 0x725   :  { %v2350_v51 = vunpack.c.l.b16 %v2318_v50  ;;  %v2351_v19 = vunpack.c.l.b16 %v2319_v49  ;;  %v2352_v9 = vunpack.c.l.b16 %v2320_v32  ;;  %v2353_v2 = vunpack.c.l.b16 %v2321_v12 }
 0x726   :  { %v2331_v21 = vpack.c.bf16 %v2315_v57, %v2315_v57  ;;  %v2354_v5 = vunpack.c.l.b16 %v2322_v1  ;;  %v2355_v4 = vunpack.c.l.b16 %v2323_v54  ;;  %v2356_v59 = vunpack.c.l.b16 %v2324_v7 }
 0x727   :  { %v2357_v41 = vunpack.c.l.b16 %v2325_v61  ;;  %v2358_v15 = vunpack.c.l.b16 %v2326_v62  ;;  %v2359_v48 = vunpack.c.l.b16 %v2327_v55  ;;  %v2360_v36 = vunpack.c.l.b16 %v2328_v11 }
 0x728   :  { %v2361_v33 = vunpack.c.l.b16 %v2329_v3  ;;  %v2362_v52 = vunpack.c.l.b16 %v2330_v6  ;;  %v2363_v16 = vunpack.c.l.b16 %v2331_v21  ;;  %v2364_v0 = vsel %vm659_vm5, %v2349_v58, %v2348_v10 }
 0x729   :  { %v2365_v18 = vsel %vm661_vm6, %v2350_v51, %v2364_v0  ;;  %v2371_v17 = vsel %vm659_vm5, %v2357_v41, %v2356_v59  ;;  %v1985_v50 = vmul.f32 %v4529_v20, %v3976_v22  ;;  %v1986_v8 = vmul.f32 %v4557_v63, %v3978_v23 }
 0x72a   :  { %v2366_v60 = vsel %vm663_vm7, %v2351_v19, %v2365_v18  ;;  %v2372_v13 = vsel %vm661_vm6, %v2358_v15, %v2371_v17  ;;  %v1987_v49 = vmul.f32 %v4529_v20, %v3980_v25  ;;  %v1988_v14 = vmul.f32 %v4557_v63, %v3982_v26 }
 0x72b   :  { %v2367_v32 = vsel %vm665_vm8, %v2352_v9, %v2366_v60  ;;  %v2373_v12 = vsel %vm663_vm7, %v2359_v48, %v2372_v13  ;;  %v1989_v1 = vmul.f32 %v4529_v20, %v3988_v29  ;;  %v1990_v31 = vmul.f32 %v4557_v63, %v3990_v30 }
 0x72c   :  { %v2368_v54 = vsel %vm667_vm9, %v2353_v2, %v2367_v32  ;;  %v2374_v7 = vsel %vm665_vm8, %v2360_v36, %v2373_v12  ;;  %v1991_v61 = vmul.f32 %v4529_v20, %v3996_v34  ;;  %v1992_v62 = vmul.f32 %v4557_v63, %v3998_v35 }
 0x72d   :  { %v2369_v55 = vsel %vm669_vm10, %v2354_v5, %v2368_v54  ;;  %v2375_v11 = vsel %vm667_vm9, %v2361_v33, %v2374_v7  ;;  %v1993_v3 = vmul.f32 %v4529_v20, %v4000_v37  ;;  %v1994_v57 = vmul.f32 %v4557_v63, %v4002_v38 }
 0x72e   :  { %v2370_v6 = vsel %vm671_vm11, %v2355_v4, %v2369_v55  ;;  %v2376_v10 = vsel %vm669_vm10, %v2362_v52, %v2375_v11  ;;  %v1995_v58 = vmul.f32 %v4529_v20, %v4004_v39  ;;  %v1996_v51 = vmul.f32 %v4557_v63, %v4006_v40 }
 0x72f   :  { %v2377_v19 = vsel %vm671_vm11, %v2363_v16, %v2376_v10  ;;  %v1997_v9 = vmul.f32 %v4529_v20, %v4008_v42  ;;  %v1998_v2 = vmul.f32 %v4557_v63, %v4011_v43  ;;  %v1999_v53 = vmul.f32 %v4529_v20, %v4014_v44 }
 0x730   :  { %v2378_v21 = vpack.c.b16 %v2377_v19, %v2370_v6  ;;  %v2000_v5 = vmul.f32 %v4557_v63, %v4016_v45  ;;  %v2002_v4 = vsel %vm2001_vm15, %v1985_v50, -inf  ;;  %v2003_v59 = vsel %vm2001_vm15, %v1986_v8, -inf }
 0x731   :  { %v2004_v41 = vmax.f32 %v2002_v4, %v2003_v59  ;;  %v2011_v15 = vsel %vm2001_vm15, %v1987_v49, -inf  ;;  %v2012_v48 = vsel %vm2001_vm15, %v1988_v14, -inf  ;;  %v2020_v36 = vsel %vm2001_vm15, %v1989_v1, -inf }
 0x732   :  { %2379 = vrot.lane.b32.xlu1 %v2378_v21, %s3817_s18  ;;  %v2013_v33 = vmax.f32 %v2011_v15, %v2012_v48  ;;  %v2021_v52 = vsel %vm2001_vm15, %v1990_v31, -inf  ;;  %v2029_v16 = vsel %vm2001_vm15, %v1991_v61, -inf  ;;  %v2030_v0 = vsel %vm2001_vm15, %v1992_v62, -inf }
 0x733   :  { %v2005_v18 = vrot.slane %v2004_v41, 4  ;;  %v2022_v17 = vmax.f32 %v2020_v36, %v2021_v52  ;;  %v2031_v50 = vmax.f32 %v2029_v16, %v2030_v0  ;;  %v2038_v8 = vsel %vm2001_vm15, %v1993_v3, -inf }
 0x734   :  { %v2014_v60 = vrot.slane %v2013_v33, 4  ;;  %v2039_v13 = vsel %vm2001_vm15, %v1994_v57, -inf  ;;  %v2047_v49 = vsel %vm2001_vm15, %v1995_v58, -inf  ;;  %v2048_v14 = vsel %vm2001_vm15, %v1996_v51, -inf }
 0x735   :  { %v2006_v32 = vmax.f32 %v2004_v41, %v2005_v18  ;;  %v2023_v12 = vrot.slane %v2022_v17, 4  ;;  %v2032_v1 = vrot.slane %v2031_v50, 4  ;;  %v2040_v31 = vmax.f32 %v2038_v8, %v2039_v13 }
 0x736   :  { %v2015_v54 = vmax.f32 %v2013_v33, %v2014_v60  ;;  %v2049_v7 = vmax.f32 %v2047_v49, %v2048_v14  ;;  %v2056_v61 = vsel %vm2001_vm15, %v1997_v9, -inf  ;;  %v2057_v62 = vsel %vm2001_vm15, %v1998_v2, -inf }
 0x737   :  { %v2007_v55 = vrot.slane %v2006_v32, 2  ;;  %v2024_v11 = vmax.f32 %v2022_v17, %v2023_v12  ;;  %v2033_v3 = vmax.f32 %v2031_v50, %v2032_v1  ;;  %v2041_v6 = vrot.slane %v2040_v31, 4 }
 0x738   :  { %v2016_v10 = vrot.slane %v2015_v54, 2  ;;  %v2050_v57 = vrot.slane %v2049_v7, 4  ;;  %v2058_v19 = vmax.f32 %v2056_v61, %v2057_v62  ;;  %v2065_v58 = vsel %vm2001_vm15, %v1999_v53, -inf }
 0x739   :  { %v2008_v51 = vmax.f32 %v2006_v32, %v2007_v55  ;;  %v2025_v21 = vrot.slane %v2024_v11, 2  ;;  %v2034_v4 = vrot.slane %v2033_v3, 2  ;;  %v2042_v59 = vmax.f32 %v2040_v31, %v2041_v6 }
 0x73a   :  { %v2017_v41 = vmax.f32 %v2015_v54, %v2016_v10  ;;  %v2051_v15 = vmax.f32 %v2049_v7, %v2050_v57  ;;  %v2059_v48 = vrot.slane %v2058_v19, 4  ;;  %v2066_v9 = vsel %vm2001_vm15, %v2000_v5, -inf }
 0x73b   :  { %v2009_v36 = vrot.slane %v2008_v51, 1  ;;  %v2026_v2 = vmax.f32 %v2024_v11, %v2025_v21  ;;  %v2035_v33 = vmax.f32 %v2033_v3, %v2034_v4  ;;  %v2043_v52 = vrot.slane %v2042_v59, 2 }
 0x73c   :  { %v2018_v16 = vrot.slane %v2017_v41, 1  ;;  %v2052_v0 = vrot.slane %v2051_v15, 2  ;;  %v2060_v18 = vmax.f32 %v2058_v19, %v2059_v48  ;;  %v2067_v17 = vmax.f32 %v2065_v58, %v2066_v9 }
 0x73d   :  { %v2010_v50 = vmax.f32 %v2008_v51, %v2009_v36  ;;  %v2027_v8 = vrot.slane %v2026_v2, 1  ;;  %v2036_v53 = vrot.slane %v2035_v33, 1  ;;  %v2044_v60 = vmax.f32 %v2042_v59, %v2043_v52 }
 0x73e   :  { %v2019_v13 = vmax.f32 %v2017_v41, %v2018_v16  ;;  %v2053_v49 = vmax.f32 %v2051_v15, %v2052_v0  ;;  %v2061_v14 = vrot.slane %v2060_v18, 2  ;;  %v2068_v32 = vrot.slane %v2067_v17, 4 }
 0x73f   :  { %v2028_v12 = vmax.f32 %v2026_v2, %v2027_v8  ;;  %v2037_v1 = vmax.f32 %v2035_v33, %v2036_v53  ;;  %v2045_v31 = vrot.slane %v2044_v60, 1  ;;  %v2074_v5 = vpack.c.bf16 %v2010_v50, %v2010_v50 }
 0x740   :  { %v2054_v54 = vrot.slane %v2053_v49, 1  ;;  %v2062_v7 = vmax.f32 %v2060_v18, %v2061_v14  ;;  %v2069_v61 = vmax.f32 %v2067_v17, %v2068_v32  ;;  %v2075_v62 = vpack.c.bf16 %v2019_v13, %v2019_v13  ;;  %v5525_v14 = vld [vmem:[#allocation30_spill] sm:$0xff] }
 0x741   :  { %v2046_v55 = vmax.f32 %v2044_v60, %v2045_v31  ;;  %v2076_v11 = vpack.c.bf16 %v2028_v12, %v2028_v12  ;;  %v2077_v3 = vpack.c.bf16 %v2037_v1, %v2037_v1  ;;  %v2090_v6 = vunpack.c.l.b16 %v2074_v5  ;;  %v5524_v60 = vld [vmem:[#allocation29_spill] sm:$0xff]  ;;  %v5526_v12 = vld [vmem:[#allocation35_spill] sm:$0xff]  ;;  %v5527_v31 = vld [vmem:[#allocation36_spill] sm:$0xff] }
 0x742   :  { %v2055_v10 = vmax.f32 %v2053_v49, %v2054_v54  ;;  %v2063_v57 = vrot.slane %v2062_v7, 1  ;;  %v2070_v19 = vrot.slane %v2069_v61, 2  ;;  %v2091_v58 = vunpack.c.l.b16 %v2075_v62  ;;  %v5529_v62 = vld [vmem:[#allocation40_spill] sm:$0xff] }
 0x743   :  { %v2078_v51 = vpack.c.bf16 %v2046_v55, %v2046_v55  ;;  %v2092_v21 = vunpack.c.l.b16 %v2076_v11  ;;  %v2093_v4 = vunpack.c.l.b16 %v2077_v3  ;;  %v1642_v8 = vmul.f32 %v4529_v20, %v4018_v46  ;;  %v5530_v11 = vld [vmem:[#allocation43_spill] sm:$0xff] }
 0x744   :  { %v2064_v59 = vmax.f32 %v2062_v7, %v2063_v57  ;;  %v2071_v41 = vmax.f32 %v2069_v61, %v2070_v19  ;;  %v2079_v15 = vpack.c.bf16 %v2055_v10, %v2055_v10  ;;  %v2098_v48 = vsel %vm659_vm5, %v2091_v58, %v2090_v6  ;;  %v5528_v7 = vld [vmem:[#allocation39_spill] sm:$0xff]  ;;  %v5531_v10 = vld [vmem:[#allocation44_spill] sm:$0xff] }
 0x745   :  { %v2094_v9 = vunpack.c.l.b16 %v2078_v51  ;;  %v2099_v36 = vsel %vm661_vm6, %v2092_v21, %v2098_v48  ;;  %v1643_v53 = vmul.f32 %v4557_v63, %v4020_v47  ;;  %v1644_v13 = vmul.f32 %v4529_v20, %v5524_v60  ;;  %v5532_v19 = vld [vmem:[#allocation47_spill] sm:$0xff]  ;;  %v5533_v51 = vld [vmem:[#allocation48_spill] sm:$0xff] }
 0x746   :  { %v2072_v2 = vrot.slane %v2071_v41, 1  ;;  %v2080_v33 = vpack.c.bf16 %v2064_v59, %v2064_v59  ;;  %v2095_v52 = vunpack.c.l.b16 %v2079_v15  ;;  %v2100_v16 = vsel %vm663_vm7, %v2093_v4, %v2099_v36  ;;  %v5534_v4 = vld [vmem:[#allocation51_spill] sm:$0xff]  ;;  %v5537_v36 = vld [vmem:[#allocation56_spill] sm:$0xff] }
 0x747   :  { %v2101_v0 = vsel %vm665_vm8, %v2094_v9, %v2100_v16  ;;  %v1645_v32 = vmul.f32 %v4557_v63, %v5525_v14  ;;  %v1646_v1 = vmul.f32 %v4529_v20, %v5526_v12  ;;  %v1647_v5 = vmul.f32 %v4557_v63, %v5527_v31  ;;  %v5536_v48 = vld [vmem:[#allocation55_spill] sm:$0xff]  ;;  %v5546_v12 = vld [vmem:[#allocation45_spill] sm:$0xff] }
 0x748   :  { %v2073_v18 = vmax.f32 %v2071_v41, %v2072_v2  ;;  %v2102_v17 = vsel %vm667_vm9, %v2095_v52, %v2101_v0  ;;  %v2096_v50 = vunpack.c.l.b16 %v2080_v33  ;;  %v1648_v61 = vmul.f32 %v4529_v20, %v5528_v7  ;;  %v5535_v41 = vld [vmem:[#allocation52_spill] sm:$0xff]  ;;  %v5538_v52 = vld [vmem:[#allocation31_spill] sm:$0xff] }
 0x749   :  { %v1649_v55 = vmul.f32 %v4557_v63, %v5529_v62  ;;  %v1650_v3 = vmul.f32 %v4529_v20, %v5530_v11  ;;  %v1651_v57 = vmul.f32 %v4557_v63, %v5531_v10  ;;  %v1652_v58 = vmul.f32 %v4529_v20, %v5532_v19  ;;  %v5539_v0 = vld [vmem:[#allocation32_spill] sm:$0xff] }
 0x74a   :  { %v2081_v49 = vpack.c.bf16 %v2073_v18, %v2073_v18  ;;  %v2103_v54 = vsel %vm669_vm10, %v2096_v50, %v2102_v17  ;;  %v1653_v21 = vmul.f32 %v4557_v63, %v5533_v51  ;;  %v1654_v59 = vmul.f32 %v4529_v20, %v5534_v4  ;;  %v5540_v17 = vld [vmem:[#allocation33_spill] sm:$0xff]  ;;  %v5545_v51 = vld [vmem:[#allocation42_spill] sm:$0xff] }
 0x74b   :  { %v1655_v15 = vmul.f32 %v4557_v63, %v5535_v41  ;;  %v1656_v9 = vmul.f32 %v4529_v20, %v5536_v48  ;;  %v1657_v2 = vmul.f32 %v4557_v63, %v5537_v36  ;;  %v4728_v16 = vmul.f32 %v4529_v20, %v5538_v52  ;;  %v5541_v41 = vld [vmem:[#allocation34_spill] sm:$0xff]  ;;  %v5542_v36 = vld [vmem:[#allocation37_spill] sm:$0xff] }
 0x74c   :  { %v2097_v6 = vunpack.c.l.b16 %v2081_v49  ;;  %v4732_v18 = vmul.f32 %v4557_v63, %v5539_v0  ;;  %v4736_v50 = vmul.f32 %v4529_v20, %v5540_v17  ;;  %v4740_v48 = vmul.f32 %v4557_v63, %v5541_v41  ;;  %v5544_v4 = vld [vmem:[#allocation41_spill] sm:$0xff] }
 0x74d   :  { %v4752_v0 = vmul.f32 %v4529_v20, %v5544_v4  ;;  %v4756_v17 = vmul.f32 %v4557_v63, %v5545_v51  ;;  %v1675_v41 = vsel %vm741_vm13, %v1643_v53, -inf  ;;  %v1683_v19 = vsel %vm741_vm13, %v1644_v13, -inf }
 0x74e   :  { %v2104_v33 = vsel %vm671_vm11, %v2097_v6, %v2103_v54  ;;  %v4744_v54 = vmul.f32 %v4529_v20, %v5542_v36  ;;  %v5543_v6 = vld [vmem:[#allocation38_spill] sm:$0xff]  ;;  %v1692_v10 = vsel %vm741_vm13, %v1646_v1, -inf  ;;  %v1693_v4 = vsel %vm741_vm13, %v1647_v5, -inf }
 0x74f   :  { %v2105_v49 = vpack.c.b16 %v2104_v33, %v2104_v33  ;;  %v4748_v52 = vmul.f32 %v4557_v63, %v5543_v6  ;;  %v1674_v33 = vsel %vm741_vm13, %v1642_v8, -inf  ;;  %v1684_v6 = vsel %vm741_vm13, %v1645_v32, -inf }
 0x750   :  { %v1676_v36 = vmax.f32 %v1674_v33, %v1675_v41  ;;  %v1685_v11 = vmax.f32 %v1683_v19, %v1684_v6  ;;  %v1701_v62 = vsel %vm741_vm13, %v1648_v61, -inf  ;;  %v1702_v51 = vsel %vm741_vm13, %v1649_v55, -inf }
 0x751   :  { %2106 = vrot.lane.b32.xlu1 %v2105_v49, %s3819_s3  ;;  %v1694_v8 = vmax.f32 %v1692_v10, %v1693_v4  ;;  %v1703_v31 = vmax.f32 %v1701_v62, %v1702_v51  ;;  %v1710_v53 = vsel %vm741_vm13, %v1650_v3, -inf  ;;  %v1711_v41 = vsel %vm741_vm13, %v1651_v57, -inf }
 0x752   :  { %v1677_v7 = vrot.slane %v1676_v36, 4  ;;  %v1686_v49 = vrot.slane %v1685_v11, 4  ;;  %v1719_v13 = vsel %vm741_vm13, %v1652_v58, -inf  ;;  %v1720_v32 = vsel %vm741_vm13, %v1653_v21, -inf }
 0x753   :  { %v1695_v19 = vrot.slane %v1694_v8, 4  ;;  %v1704_v6 = vrot.slane %v1703_v31, 4  ;;  %v1712_v5 = vmax.f32 %v1710_v53, %v1711_v41  ;;  %v1721_v61 = vmax.f32 %v1719_v13, %v1720_v32  ;;  %v5547_v32 = vld [vmem:[#allocation46_spill] sm:$0xff] }
 0x754   :  { %v1678_v1 = vmax.f32 %v1676_v36, %v1677_v7  ;;  %v1687_v33 = vmax.f32 %v1685_v11, %v1686_v49  ;;  %v1728_v55 = vsel %vm741_vm13, %v1654_v59, -inf  ;;  %v1729_v10 = vsel %vm741_vm13, %v1655_v15, -inf }
 0x755   :  { %v1696_v51 = vmax.f32 %v1694_v8, %v1695_v19  ;;  %v1705_v3 = vmax.f32 %v1703_v31, %v1704_v6  ;;  %v1713_v4 = vrot.slane %v1712_v5, 4  ;;  %v1666_v57 = vmul.f32 %v4529_v20, %v5546_v12 }
 0x756   :  { %v1679_v62 = vrot.slane %v1678_v1, 2  ;;  %v1688_v58 = vrot.slane %v1687_v33, 2  ;;  %v1722_v14 = vrot.slane %v1721_v61, 4  ;;  %v1730_v21 = vmax.f32 %v1728_v55, %v1729_v10 }
 0x757   :  { %v1697_v36 = vrot.slane %v1696_v51, 2  ;;  %v1706_v60 = vrot.slane %v1705_v3, 2  ;;  %v1714_v53 = vmax.f32 %v1712_v5, %v1713_v4  ;;  %v1738_v59 = vsel %vm741_vm13, %v1657_v2, -inf }
 0x758   :  { %v1680_v7 = vmax.f32 %v1678_v1, %v1679_v62  ;;  %v1689_v11 = vmax.f32 %v1687_v33, %v1688_v58  ;;  %v1723_v49 = vmax.f32 %v1721_v61, %v1722_v14  ;;  %v1731_v41 = vrot.slane %v1730_v21, 4  ;;  %v5548_v1 = vld [vmem:[#allocation49_spill] sm:$0xff]  ;;  %v5550_v58 = vld [vmem:[#allocation59_spill] sm:$0xff] }
 0x759   :  { %v1698_v13 = vmax.f32 %v1696_v51, %v1697_v36  ;;  %v1715_v8 = vrot.slane %v1714_v53, 2  ;;  %v1737_v31 = vsel %vm741_vm13, %v1656_v9, -inf  ;;  %v1667_v19 = vmul.f32 %v4557_v63, %v5547_v32  ;;  %v5549_v51 = vld [vmem:[#allocation57_spill] sm:$0xff] }
 0x75a   :  { %v1681_v15 = vrot.slane %v1680_v7, 1  ;;  %v1724_v6 = vrot.slane %v1723_v49, 2  ;;  %v1732_v12 = vmax.f32 %v1730_v21, %v1731_v41  ;;  %v1739_v55 = vmax.f32 %v1737_v31, %v1738_v59 }
 0x75b   :  { %v1668_v10 = vmul.f32 %v4529_v20, %v5548_v1  ;;  %v1669_v14 = vmul.f32 %v4557_v63, %v5494_v56  ;;  %v1670_v2 = vmul.f32 %v4529_v20, %v5495_v24  ;;  %v4785_v5 = vmax.f32 %v1705_v3, %v1706_v60 }
 0x75c   :  { %v1671_v9 = vmul.f32 %v4557_v63, %v5496_v27  ;;  %v1690_v33 = vrot.slane %v1689_v11, 1  ;;  %v1699_v61 = vrot.slane %v1698_v13, 1  ;;  %v4789_v62 = vmax.f32 %v1714_v53, %v1715_v8 }
 0x75d   :  { %v1672_v4 = vmul.f32 %v4529_v20, %v5549_v51  ;;  %v1673_v21 = vmul.f32 %v4557_v63, %v5550_v58  ;;  %v4795_v36 = vmax.f32 %v1680_v7, %v1681_v15  ;;  %v1740_v41 = vrot.slane %v1739_v55, 4 }
 0x75e   :  { %v4797_v59 = vmax.f32 %v1723_v49, %v1724_v6  ;;  %v1733_v60 = vrot.slane %v1732_v12, 2  ;;  %v1746_v3 = vsel %vm741_vm13, %v4728_v16, -inf  ;;  %v1747_v31 = vsel %vm741_vm13, %v4732_v18, -inf }
 0x75f   :  { %v1708_v53 = vrot.slane %v4785_v5, 1  ;;  %v1748_v8 = vmax.f32 %v1746_v3, %v1747_v31  ;;  %v1755_v20 = vsel %vm741_vm13, %v4736_v50, -inf  ;;  %v1756_v63 = vsel %vm741_vm13, %v4740_v48, -inf }
 0x760   :  { %v4808_v7 = vmax.f32 %v1689_v11, %v1690_v33  ;;  %v4810_v49 = vmax.f32 %v1698_v13, %v1699_v61  ;;  %v1717_v15 = vrot.slane %v4789_v62, 1  ;;  %v1757_v6 = vmax.f32 %v1755_v20, %v1756_v63 }
 0x761   :  { %v1741_v16 = vmax.f32 %v1739_v55, %v1740_v41  ;;  %v1749_v58 = vrot.slane %v1748_v8, 4  ;;  %v1764_v18 = vsel %vm741_vm13, %v4744_v54, -inf  ;;  %v1765_v3 = vsel %vm741_vm13, %v4748_v52, -inf }
 0x762   :  { %v1726_v50 = vrot.slane %v4797_v59, 1  ;;  %v1734_v31 = vmax.f32 %v1732_v12, %v1733_v60  ;;  %v1758_v51 = vrot.slane %v1757_v6, 4  ;;  %v1766_v48 = vmax.f32 %v1764_v18, %v1765_v3 }
 0x763   :  { %v1750_v11 = vmax.f32 %v1748_v8, %v1749_v58  ;;  %v1773_v13 = vsel %vm741_vm13, %v4752_v0, -inf  ;;  %v1774_v33 = vsel %vm741_vm13, %v4756_v17, -inf  ;;  %v1783_v55 = vsel %vm741_vm13, %v1667_v19, -inf }
 0x764   :  { %v1759_v61 = vmax.f32 %v1757_v6, %v1758_v51  ;;  %v1767_v41 = vrot.slane %v1766_v48, 4  ;;  %v1775_v54 = vmax.f32 %v1773_v13, %v1774_v33  ;;  %v1782_v20 = vsel %vm741_vm13, %v1666_v57, -inf }
 0x765   :  { %v1742_v52 = vrot.slane %v1741_v16, 2  ;;  %v1751_v63 = vrot.slane %v1750_v11, 2  ;;  %v1784_v27 = vmax.f32 %v1782_v20, %v1783_v55  ;;  %v1792_v12 = vsel %vm741_vm13, %v1669_v14, -inf }
 0x766   :  { %v1760_v60 = vrot.slane %v1759_v61, 2  ;;  %v1768_v58 = vmax.f32 %v1766_v48, %v1767_v41  ;;  %v1776_v8 = vrot.slane %v1775_v54, 4  ;;  %v1791_v0 = vsel %vm741_vm13, %v1668_v10, -inf }
 0x767   :  { %v1752_v18 = vmax.f32 %v1750_v11, %v1751_v63  ;;  %v1785_v3 = vrot.slane %v1784_v27, 4  ;;  %v1793_v17 = vmax.f32 %v1791_v0, %v1792_v12  ;;  %v1800_v19 = vsel %vm741_vm13, %v1670_v2, -inf }
 0x768   :  { %v1761_v51 = vmax.f32 %v1759_v61, %v1760_v60  ;;  %v1769_v6 = vrot.slane %v1768_v58, 2  ;;  %v1777_v13 = vmax.f32 %v1775_v54, %v1776_v8  ;;  %v1801_v57 = vsel %vm741_vm13, %v1671_v9, -inf }
 0x769   :  { %v1735_v33 = vrot.slane %v1734_v31, 1  ;;  %v1786_v24 = vmax.f32 %v1784_v27, %v1785_v3  ;;  %v1794_v55 = vrot.slane %v1793_v17, 4  ;;  %v1802_v20 = vmax.f32 %v1800_v19, %v1801_v57 }
 0x76a   :  { %v1743_v14 = vmax.f32 %v1741_v16, %v1742_v52  ;;  %v1753_v56 = vrot.slane %v1752_v18, 1  ;;  %v1770_v48 = vmax.f32 %v1768_v58, %v1769_v6  ;;  %v1778_v41 = vrot.slane %v1777_v13, 2 }
 0x76b   :  { %v1762_v1 = vrot.slane %v1761_v51, 1  ;;  %v1787_v10 = vrot.slane %v1786_v24, 2  ;;  %v1795_v11 = vmax.f32 %v1793_v17, %v1794_v55  ;;  %v1803_v63 = vrot.slane %v1802_v20, 4 }
 0x76c   :  { %v1771_v12 = vrot.slane %v1770_v48, 1  ;;  %v1779_v0 = vmax.f32 %v1777_v13, %v1778_v41  ;;  %v1809_v2 = vsel %vm741_vm13, %v1672_v4, -inf  ;;  %v1810_v61 = vsel %vm741_vm13, %v1673_v21, -inf }
 0x76d   :  { %v1788_v54 = vmax.f32 %v1786_v24, %v1787_v10  ;;  %v1796_v9 = vrot.slane %v1795_v11, 2  ;;  %v1804_v60 = vmax.f32 %v1802_v20, %v1803_v63  ;;  %v1811_v27 = vmax.f32 %v1809_v2, %v1810_v61 }
 0x76e   :  { %v1709_v8 = vmax.f32 %v4785_v5, %v1708_v53  ;;  %v1718_v16 = vmax.f32 %v4789_v62, %v1717_v15  ;;  %v1744_v52 = vrot.slane %v1743_v14, 1  ;;  %v1780_v58 = vrot.slane %v1779_v0, 1 }
 0x76f   :  { %v1789_v3 = vrot.slane %v1788_v54, 1  ;;  %v1797_v19 = vmax.f32 %v1795_v11, %v1796_v9  ;;  %v1805_v17 = vrot.slane %v1804_v60, 2  ;;  %v1812_v6 = vrot.slane %v1811_v27, 4 }
 0x770   :  { %v1727_v13 = vmax.f32 %v4797_v59, %v1726_v50  ;;  %v1754_v57 = vmax.f32 %v1752_v18, %v1753_v56  ;;  %v1763_v4 = vmax.f32 %v1761_v51, %v1762_v1  ;;  %v1772_v55 = vmax.f32 %v1770_v48, %v1771_v12 }
 0x771   :  { %v1736_v21 = vmax.f32 %v1734_v31, %v1735_v33  ;;  %v1798_v24 = vrot.slane %v1797_v19, 1  ;;  %v1806_v41 = vmax.f32 %v1804_v60, %v1805_v17  ;;  %v1813_v20 = vmax.f32 %v1811_v27, %v1812_v6 }
 0x772   :  { %v1745_v10 = vmax.f32 %v1743_v14, %v1744_v52  ;;  %v1781_v63 = vmax.f32 %v1779_v0, %v1780_v58  ;;  %v1818_v5 = vpack.c.bf16 %v4795_v36, %v4795_v36  ;;  %v1819_v62 = vpack.c.bf16 %v4808_v7, %v4808_v7 }
 0x773   :  { %v1790_v53 = vmax.f32 %v1788_v54, %v1789_v3  ;;  %v1807_v15 = vrot.slane %v1806_v41, 1  ;;  %v1814_v11 = vrot.slane %v1813_v20, 2  ;;  %v1820_v56 = vpack.c.bf16 %v4810_v49, %v4810_v49 }
 0x774   :  { %v1799_v1 = vmax.f32 %v1797_v19, %v1798_v24  ;;  %v1826_v59 = vpack.c.bf16 %v1754_v57, %v1754_v57  ;;  %v1827_v50 = vpack.c.bf16 %v1763_v4, %v1763_v4  ;;  %v1828_v31 = vpack.c.bf16 %v1772_v55, %v1772_v55 }
 0x775   :  { %v1808_v18 = vmax.f32 %v1806_v41, %v1807_v15  ;;  %v1815_v51 = vmax.f32 %v1813_v20, %v1814_v11  ;;  %v1821_v33 = vpack.c.bf16 %v1709_v8, %v1709_v8  ;;  %v1822_v14 = vpack.c.bf16 %v1718_v16, %v1718_v16 }
 0x776   :  { %v1823_v48 = vpack.c.bf16 %v1727_v13, %v1727_v13  ;;  %v1829_v12 = vpack.c.bf16 %v1781_v63, %v1781_v63  ;;  %v1850_v36 = vunpack.c.l.b16 %v1818_v5  ;;  %v1851_v0 = vunpack.c.l.b16 %v1819_v62 }
 0x777   :  { %v1816_v2 = vrot.slane %v1815_v51, 1  ;;  %v1824_v7 = vpack.c.bf16 %v1736_v21, %v1736_v21  ;;  %v1830_v61 = vpack.c.bf16 %v1790_v53, %v1790_v53  ;;  %v1852_v54 = vunpack.c.l.b16 %v1820_v56 }
 0x778   :  { %v1831_v9 = vpack.c.bf16 %v1799_v1, %v1799_v1  ;;  %v1858_v60 = vunpack.c.l.b16 %v1826_v59  ;;  %v1859_v27 = vunpack.c.l.b16 %v1827_v50  ;;  %v1860_v49 = vunpack.c.l.b16 %v1828_v31 }
 0x779   :  { %v1817_v52 = vmax.f32 %v1815_v51, %v1816_v2  ;;  %v1825_v58 = vpack.c.bf16 %v1745_v10, %v1745_v10  ;;  %v1832_v3 = vpack.c.bf16 %v1808_v18, %v1808_v18  ;;  %v1853_v19 = vunpack.c.l.b16 %v1821_v33  ;;  %v2382_v33 = vpop.permute.xlu1 %2381 }
 0x77a   :  { %v1854_v17 = vunpack.c.l.b16 %v1822_v14  ;;  %v1861_v6 = vunpack.c.l.b16 %v1829_v12  ;;  %v1866_v8 = vsel %vm659_vm5, %v1851_v0, %v1850_v36  ;;  %v1873_v16 = vsel %vm659_vm5, %v1859_v27, %v1858_v60 }
 0x77b   :  { %v1833_v13 = vpack.c.bf16 %v1817_v52, %v1817_v52  ;;  %v1862_v57 = vunpack.c.l.b16 %v1830_v61  ;;  %v1867_v4 = vsel %vm661_vm6, %v1852_v54, %v1866_v8  ;;  %v1874_v55 = vsel %vm661_vm6, %v1860_v49, %v1873_v16 }
 0x77c   :  { %v1855_v21 = vunpack.c.l.b16 %v1823_v48  ;;  %v1863_v24 = vunpack.c.l.b16 %v1831_v9  ;;  %v1868_v41 = vsel %vm663_vm7, %v1853_v19, %v1867_v4  ;;  %v1875_v20 = vsel %vm663_vm7, %v1861_v6, %v1874_v55  ;;  %v1631_v9 = vpop.f32.mrf.mxu0  ;;  %v5552_v19 = vld [vmem:[#allocation10_spill] sm:$0xff]  ;;  %v5553_v6 = vld [vmem:[#allocation60_spill] sm:$0xff] }
 0x77d   :  { %v1856_v10 = vunpack.c.l.b16 %v1824_v7  ;;  %v1864_v63 = vunpack.c.l.b16 %v1832_v3  ;;  %v1869_v5 = vsel %vm665_vm8, %v1854_v17, %v1868_v41  ;;  %v1876_v62 = vsel %vm665_vm8, %v1862_v57, %v1875_v20  ;;  %v4866_v3 = vld [vmem:[%s5325_s2] sm:$0xff]  ;;  %v5554_v41 = vld [vmem:[#allocation61_spill] sm:$0xff] }
 0x77e   :  { %v1857_v53 = vunpack.c.l.b16 %v1825_v58  ;;  %v1865_v15 = vunpack.c.l.b16 %v1833_v13  ;;  %v1870_v11 = vsel %vm667_vm9, %v1855_v21, %v1869_v5  ;;  %v1877_v56 = vsel %vm667_vm9, %v1863_v24, %v1876_v62 }
 0x77f   :  { %v1871_v1 = vsel %vm669_vm10, %v1856_v10, %v1870_v11  ;;  %v1878_v59 = vsel %vm669_vm10, %v1864_v63, %v1877_v56  ;;  %v5551_v51 = vmov 0.0   ;;  %v1942_v17 = vrot.slane %v4866_v3, %v5552_v19 }
 0x780   :  { %v1872_v50 = vsel %vm671_vm11, %v1857_v53, %v1871_v1  ;;  %v1879_v31 = vsel %vm671_vm11, %v1865_v15, %v1878_v59 }
 0x781   :  { %v1880_v18 = vpack.c.b16 %v1879_v31, %v1872_v50 }
 0x783   :  { %3672 = vmatmul.mubr.msk.bf16.vlgmr.msra.gmra.mxu1 %vm741_vm13, %v1880_v18 }
 0x784   :  { %3684 = vmatpush3.bf16.msra.mxu1 %v4570_v28  ;;  %3687 = vmatprep.mubr.msk.bf16.mxu1 %vm3821_vm3, %v5551_v51 }
 0x785   :  { %3685 = vmatprep.subr.bf16.mxu1 %v5551_v51 }
 0x788   :  { %3686 = vmatpush3.bf16.msra.mxu1 %v2382_v33 }
 0x7a4   :  { %v2380_v14 = vpop.permute.xlu1 %2379 }
 0x7a5   :  { %3688 = vmatmul.mubr.msk.bf16.vlgmr.msra.gmra.mxu1 %vm741_vm13, %v2380_v14 }
 0x7c3   :  { %v2107_v48 = vpop.permute.xlu1 %2106 }
 0x7c4   :  { %3680 = vmatmul.mubr.msk.bf16.vlgmr.msra.gmra.mxu0 %vm741_vm13, %v2107_v48 }
 0x843   :  { %v1930_v12 = vpop.f32.mrf.mxu1 }
 0x845   :  { %v3673_v36 = vpop.f32.mrf.mxu1 }
 0x846   :  { %v1937_v36 = vadd.f32 %v1930_v12, %v5553_v6 }
 0x847   :  { %v1933_v0 = vpop.f32.mrf.mxu1 }
 0x849   :  { %v3674_v2 = vpop.f32.mrf.mxu1 }
 0x84a   :  { %v1943_v2 = vadd.f32 %v1942_v17, %v1937_v36  ;;  %v5556_v36 = vld [vmem:[#allocation12_spill] sm:$0xff] }
 0x865   :  { %v2424_v7 = vpop.f32.mrf.mxu1 }
 0x866   :  { %2433 = vrot.lane.b32.xlu0 %v2424_v7, %s3817_s18 }
 0x867   :  { %v3689_v28 = vpop.f32.mrf.mxu1 }
 0x869   :  { %v2427_v61 = vpop.f32.mrf.mxu1 }
 0x86a   :  { %2435 = vrot.lane.b32.xlu1 %v2427_v61, %s3817_s18  ;;  %v1945_v61 = vmax.f32 %v1943_v2, 0.0  ;;  %v1982_v2 = vrot.slane %v4866_v3, %v5556_v36 }
 0x86b   :  { %v3690_v54 = vpop.f32.mrf.mxu1 }
 0x884   :  { %v2151_v60 = vpop.f32.mrf.mxu0 }
 0x885   :  { %2158 = vrot.lane.b32.xlu0 %v2151_v60, %s3823_s11 }
 0x886   :  { %v3681_v27 = vpop.f32.mrf.mxu0 }
 0x887   :  { %v1947_v27 = vsel %vm741_vm13, %v1945_v61, 0.0 }
 0x888   :  { %v2154_v49 = vpop.f32.mrf.mxu0 }
 0x889   :  { %v1938_v49 = vadd.f32 %v1933_v0, %v1631_v9 }
 0x88a   :  { %v3682_v52 = vpop.f32.mrf.mxu0 }
 0x88b   :  { %v1944_v52 = vadd.f32 %v1942_v17, %v1938_v49 }
 0x8d8   :  { %v2434_v58 = vpop.permute.xlu0 %2433 }
 0x8d9   :  { %v2439_v8 = vadd.f32 %v2434_v58, %v5553_v6  ;;  %v1946_v58 = vmax.f32 %v1944_v52, 0.0 }
 0x8db   :  { %v2441_v16 = vadd.f32 %v2439_v8, %v1942_v17  ;;  %v1950_v19 = vsel %vm741_vm13, %v1946_v58, 0.0 }
 0x8dc   :  { %v2436_v13 = vpop.permute.xlu1 %2435 }
 0x8dd   :  { %v2443_v57 = vmax.f32 %v2441_v16, 0.0  ;;  %v2440_v4 = vadd.f32 %v2436_v13, %v1631_v9 }
 0x8df   :  { %v2442_v55 = vadd.f32 %v2440_v4, %v1942_v17  ;;  %2447 = vrot.lane.b32.xlu1 %v2443_v57, %s3817_s18 }
 0x8e1   :  { %v2444_v21 = vmax.f32 %v2442_v55, 0.0 }
 0x8e3   :  { %2449 = vrot.lane.b32.xlu0 %v2444_v21, %s3817_s18 }
 0x8f7   :  { %v2159_v24 = vpop.permute.xlu0 %2158 }
 0x8f8   :  { %v2161_v20 = vadd.f32 %v5554_v41, %v2159_v24 }
 0x8fa   :  { %v2162_v10 = vadd.f32 %v2161_v20, %v1942_v17 }
 0x8fc   :  { %v2163_v63 = vmax.f32 %v2162_v10, 0.0 }
 0x8fe   :  { %2165 = vrot.lane.b32.xlu1 %v2163_v63, %s3819_s3 }
 0x951   :  { %v2448_v5 = vpop.permute.xlu1 %2447 }
 0x952   :  { %v2453_v62 = vsel %vm741_vm13, %v2448_v5, 0.0 }
 0x953   :  { %2454 = vadd.xlane.f32.xlu0 %v2453_v62 }
 0x955   :  { %v2450_v53 = vpop.permute.xlu0 %2449 }
 0x956   :  { %v2456_v15 = vsel %vm741_vm13, %v2450_v53, 0.0 }
 0x957   :  { %2457 = vadd.xlane.f32.xlu1 %v2456_v15 }
 0x970   :  { %v2166_v11 = vpop.permute.xlu1 %2165 }
 0x971   :  { %v2168_v56 = vsel %vm741_vm13, %v2166_v11, 0.0 }
 0x972   :  { %2169 = vadd.xlane.f32.xlu0 %v2168_v56  ;;  %v3755_v56 = vld [vmem:[#allocation2 + $0x64] sm:$0xff]  }
 0x973   :  { %3691 = vmatprep.subr.bf16.mxu0 %v3755_v56 }
 0x974   :  { %3692 = vmatpush3.bf16.msra.mxu0 %v3755_v56 }
 0x9dc   :  { %v2455_v1 = vpop.xlane.xlu0 %2454 }
 0x9dd   :  { %v2459_v59 = vmul.f32 0.03125, %v2455_v1  ;;  %v3756_v1 = vld [vmem:[#allocation2 + $0x74] sm:$0xff]  }
 0x9de   :  { %3699 = vmatprep.subr.bf16.mxu1 %v3756_v1 }
 0x9df   :  { %v4878_v50 = vsub.f32 %v2443_v57, %v2459_v59  ;;  %3700 = vmatpush3.bf16.msra.mxu1 %v3756_v1  ;;  %v5555_v59 = vld [vmem:[#allocation11_spill] sm:$0xff] }
 0x9e0   :  { %v2458_v31 = vpop.xlane.xlu1 %2457 }
 0x9e1   :  { %v2460_v18 = vmul.f32 0.03125, %v2458_v31  ;;  %v2463_v33 = vmul.f32 %v4878_v50, %v4878_v50  ;;  %v1976_v31 = vrot.slane %v4866_v3, %v5555_v59  ;;  %v33_v59 = vld [vmem:[%s5325_s2 + $0x8] sm:$0xf] }
 0x9e3   :  { %v4882_v14 = vsub.f32 %v2444_v21, %v2460_v18  ;;  %2467 = vrot.lane.b32.xlu0 %v2463_v33, %s3817_s18  ;;  %v3757_v33 = vld [vmem:[#allocation2 + $0x5c] sm:$0xff]  }
 0x9e4   :  { %3693 = vmatprep.subr.bf16.mxu0 %v3757_v33 }
 0x9e5   :  { %v2464_v48 = vmul.f32 %v4882_v14, %v4882_v14  ;;  %3694 = vmatpush3.bf16.msra.mxu0 %v3757_v33 }
 0x9e6   :  { %3707 = vmatprep.subr.bf16.mxu0 %v5551_v51 }
 0x9e7   :  { %2469 = vrot.lane.b32.xlu1 %v2464_v48, %s3817_s18  ;;  %v3758_v48 = vld [vmem:[#allocation2 + $0x6c] sm:$0xff]  }
 0x9e8   :  { %3701 = vmatprep.subr.bf16.mxu1 %v3758_v48 }
 0x9e9   :  { %3702 = vmatpush3.bf16.msra.mxu1 %v3758_v48 }
 0x9ea   :  { %3715 = vmatprep.subr.bf16.mxu1 %v5551_v51 }
 0x9fb   :  { %v2170_v7 = vpop.xlane.xlu0 %2169 }
 0x9fc   :  { %v2171_v28 = vmul.f32 0.03125, %v2170_v7 }
 0x9fe   :  { %v4889_v54 = vsub.f32 %v2163_v63, %v2171_v28 }
 0xa00   :  { %v2173_v60 = vmul.f32 %v4889_v54, %v4889_v54 }
 0xa02   :  { %2175 = vrot.lane.b32.xlu1 %v2173_v60, %s3819_s3  ;;  %1948 = vadd.xlane.f32.xlu0 %v1947_v27 }
 0xa26   :  { %1951 = vadd.xlane.f32.xlu1 %v1950_v19 }
 0xa55   :  { %v2468_v12 = vpop.permute.xlu0 %2467 }
 0xa56   :  { %v2473_v6 = vsel %vm741_vm13, %v2468_v12, 0.0 }
 0xa57   :  { %2474 = vadd.xlane.f32.xlu0 %v2473_v6 }
 0xa59   :  { %v2470_v8 = vpop.permute.xlu1 %2469 }
 0xa5a   :  { %v2476_v16 = vsel %vm741_vm13, %v2470_v8, 0.0 }
 0xa5b   :  { %2477 = vadd.xlane.f32.xlu0 %v2476_v16 }
 0xa74   :  { %v2176_v13 = vpop.permute.xlu1 %2175 }
 0xa75   :  { %v2178_v57 = vsel %vm741_vm13, %v2176_v13, 0.0 }
 0xa76   :  { %2179 = vadd.xlane.f32.xlu1 %v2178_v57 }
 0xa8b   :  { %v1949_v4 = vpop.xlane.xlu0 %1948 }
 0xa8c   :  { %v1953_v55 = vmul.f32 0.03125, %v1949_v4 }
 0xa8e   :  { %v4899_v0 = vsub.f32 %v1945_v61, %v1953_v55 }
 0xa90   :  { %v1957_v9 = vmul.f32 %v4899_v0, %v4899_v0 }
 0xa92   :  { %v1959_v17 = vsel %vm741_vm13, %v1957_v9, 0.0 }
 0xa93   :  { %1960 = vadd.xlane.f32.xlu0 %v1959_v17 }
 0xaaf   :  { %v1952_v21 = vpop.xlane.xlu1 %1951 }
 0xab0   :  { %v1954_v24 = vmul.f32 0.03125, %v1952_v21 }
 0xab2   :  { %v1956_v41 = vsub.f32 %v1946_v58, %v1954_v24 }
 0xab4   :  { %v1958_v20 = vmul.f32 %v1956_v41, %v1956_v41 }
 0xab6   :  { %v1962_v10 = vsel %vm741_vm13, %v1958_v20, 0.0 }
 0xab7   :  { %1963 = vadd.xlane.f32.xlu1 %v1962_v10 }
 0xae0   :  { %v2475_v63 = vpop.xlane.xlu0 %2474 }
 0xae1   :  { %v2479_v5 = vmul.f32 0.03125, %v2475_v63 }
 0xae3   :  { %v2481_v62 = vadd.f32 1e-05, %v2479_v5 }
 0xae4   :  { %v2478_v53 = vpop.xlane.xlu0 %2477 }
 0xae5   :  { %3771 = vrsqrt.f32 %v2481_v62  ;;  %v2480_v15 = vmul.f32 0.03125, %v2478_v53 }
 0xae7   :  { %v2482_v11 = vadd.f32 1e-05, %v2480_v15 }
 0xae9   :  { %3773 = vrsqrt.f32 %v2482_v11 }
 0xaf2   :  { %v3772_v18 = vpop.eup %3771 }
 0xaf3   :  { %v2485_v7 = vmul.f32 %v3772_v18, %v4878_v50 }
 0xaf5   :  { %v2487_v28 = vmul.f32 %v2485_v7, %v1976_v31 }
 0xaf6   :  { %v3774_v61 = vpop.eup %3773 }
 0xaf7   :  { %v2489_v60 = vadd.f32 %v2487_v28, %v1982_v2  ;;  %v2486_v27 = vmul.f32 %v3774_v61, %v4882_v14 }
 0xaf9   :  { %2493 = vrot.lane.b32.xlu0 %v2489_v60, %s3817_s18  ;;  %v2488_v49 = vmul.f32 %v2486_v27, %v1976_v31 }
 0xafb   :  { %v2490_v52 = vadd.f32 %v2488_v49, %v1982_v2 }
 0xafd   :  { %2495 = vrot.lane.b32.xlu1 %v2490_v52, %s3817_s18  ;;  %v5559_v52 = vld [vmem:[#allocation13_spill] sm:$0xff] }
 0xaff   :  { %v2180_v3 = vpop.xlane.xlu1 %2179 }
 0xb00   :  { %v2181_v50 = vmul.f32 0.03125, %v2180_v3 }
 0xb02   :  { %v2182_v58 = vadd.f32 1e-05, %v2181_v50  ;;  %v5560_v50 = vld [vmem:[#allocation15_spill] sm:$0xff] }
 0xb04   :  { %3775 = vrsqrt.f32 %v2182_v58 }
 0xb11   :  { %v3776_v19 = vpop.eup %3775 }
 0xb12   :  { %v2184_v12 = vmul.f32 %v3776_v19, %v4889_v54  ;;  %v5561_v19 = vld [vmem:[#allocation17_spill] sm:$0xff] }
 0xb14   :  { %v2185_v6 = vmul.f32 %v2184_v12, %v1976_v31 }
 0xb16   :  { %v2186_v8 = vadd.f32 %v2185_v6, %v1982_v2 }
 0xb18   :  { %2502 = vrot.lane.b32.xlu1 %v2186_v8, %s3819_s3  ;;  %v5562_v8 = vld [vmem:[#allocation19_spill] sm:$0xff] }
 0xb1c   :  { %v1961_v16 = vpop.xlane.xlu0 %1960 }
 0xb1d   :  { %v1965_v14 = vmul.f32 0.03125, %v1961_v16 }
 0xb1f   :  { %v1967_v4 = vadd.f32 1e-05, %v1965_v14 }
 0xb21   :  { %3777 = vrsqrt.f32 %v1967_v4 }
 0xb2e   :  { %v3778_v9 = vpop.eup %3777 }
 0xb2f   :  { %v1971_v21 = vmul.f32 %v3778_v9, %v4899_v0  ;;  %v3759_v0 = vld [vmem:[#allocation2 + $0x84] sm:$0xff]  }
 0xb30   :  { %3389 = vrot.lane.b32.xlu0 %v3759_v0, %s3819_s3 }
 0xb31   :  { %v1977_v20 = vmul.f32 %v1976_v31, %v1971_v21  ;;  %v5566_v21 = vld [vmem:[#allocation27_spill] sm:$0xff] }
 0xb33   :  { %v1983_v63 = vadd.f32 %v1982_v2, %v1977_v20  ;;  %v5567_v20 = vld [vmem:[#allocation14_spill] sm:$0xff] }
 0xb34   :  { %3118 = vrot.lane.b32.xlu0 %v3759_v0, %s3822_s10 }
 0xb40   :  { %v1964_v13 = vpop.xlane.xlu1 %1963 }
 0xb41   :  { %v1966_v57 = vmul.f32 0.03125, %v1964_v13  ;;  %v5563_v13 = vld [vmem:[#allocation21_spill] sm:$0xff] }
 0xb43   :  { %v1968_v55 = vadd.f32 1e-05, %v1966_v57  ;;  %v5564_v57 = vld [vmem:[#allocation23_spill] sm:$0xff] }
 0xb45   :  { %3779 = vrsqrt.f32 %v1968_v55  ;;  %v5565_v55 = vld [vmem:[#allocation25_spill] sm:$0xff] }
 0xb52   :  { %v3780_v17 = vpop.eup %3779 }
 0xb53   :  { %v1972_v24 = vmul.f32 %v3780_v17, %v1956_v41  ;;  %v3760_v41 = vld [vmem:[#allocation2 + $0x7c] sm:$0xff]  }
 0xb54   :  { %3387 = vrot.lane.b32.xlu1 %v3760_v41, %s3819_s3  ;;  %3116 = vrot.lane.b32.xlu0 %v3760_v41, %s3822_s10 }
 0xb55   :  { %v1978_v10 = vmul.f32 %v1976_v31, %v1972_v24  ;;  %v5557_v31 = vld [vmem:[#allocation5_spill] sm:$0xff] }
 0xb56   :  { %v2522_v18 = vrot.slane %v33_v59, %v5557_v31  ;;  %v5573_v59 = vld [vmem:[#allocation26_spill] sm:$0xff] }
 0xb57   :  { %v1984_v5 = vadd.f32 %v1982_v2, %v1978_v10 }
 0xb6b   :  { %v2494_v54 = vpop.permute.xlu0 %2493 }
 0xb6c   :  { %v2499_v53 = vadd.f32 %v2494_v54, %v1983_v63  ;;  %v5568_v54 = vld [vmem:[#allocation16_spill] sm:$0xff] }
 0xb6f   :  { %v2496_v62 = vpop.permute.xlu1 %2495 }
 0xb70   :  { %v2500_v15 = vadd.f32 %v2496_v62, %v1984_v5  ;;  %v5569_v5 = vld [vmem:[#allocation18_spill] sm:$0xff] }
 0xb72   :  { %v2505_v11 = vpack.c.bf16 %v2500_v15, %v2499_v53  ;;  %v5570_v53 = vld [vmem:[#allocation20_spill] sm:$0xff] }
 0xb74   :  { %3695 = vmatprep.mubr.msk.bf16.mxu0 %vm741_vm13, %v2505_v11  ;;  %3703 = vmatprep.mubr.msk.bf16.mxu1 %vm741_vm13, %v2505_v11  ;;  %v5571_v11 = vld [vmem:[#allocation22_spill] sm:$0xff] }
 0xb8a   :  { %v2503_v56 = vpop.permute.xlu1 %2502 }
 0xb8b   :  { %v2506_v1 = vpack.c.bf16 %v2503_v56, %v2503_v56 }
 0xb8d   :  { %3696 = vmatmul.mubr.msk.bf16.vlgmr.msra.gmra.mxu0 %vm741_vm13, %v2506_v1  ;;  %3704 = vmatmul.mubr.msk.bf16.vlgmr.msra.gmra.mxu1 %vm741_vm13, %v2506_v1  ;;  %v5572_v1 = vld [vmem:[#allocation24_spill] sm:$0xff] }
 0xb8e   :  { %3711 = vmatprep.mubr.msk.bf16.mxu0 %vm3821_vm3, %v5551_v51  ;;  %3719 = vmatprep.mubr.msk.bf16.mxu1 %vm3821_vm3, %v5551_v51 }
 0xb8f   :  { %3708 = vmatpush3.bf16.msra.mxu0 %v3759_v0 }
 0xb90   :  { %3709 = vmatprep.subr.bf16.mxu0 %v5551_v51 }
 0xb93   :  { %3710 = vmatpush3.bf16.msra.mxu0 %v3760_v41 }
 0xb94   :  { %3723 = vmatprep.subr.bf16.mxu0 %v5551_v51 }
 0xc4d   :  { %v3697_v33 = vpop.f32.mrf.mxu0  ;;  %v4936_v48 = vpop.f32.mrf.mxu1 }
 0xc4e   :  { %5558 = vst [vmem:[#allocation58_spill] sm:$0xff] %v4936_v48  ;;  %v2584_v36 = vadd.f32 %v3697_v33, %v2522_v18 }
 0xc4f   :  { %v2575_v2 = vpop.f32.mrf.mxu0  ;;  %v4938_v7 = vpop.f32.mrf.mxu1 }
 0xc50   :  { %v2591_v28 = vmax.f32 %v2584_v36, 0.0  ;;  %v2576_v61 = vadd.f32 %v2575_v2, %v2522_v18 }
 0xc51   :  { %v3698_v60 = vpop.f32.mrf.mxu0  ;;  %v3706_v27 = vpop.f32.mrf.mxu1 }
 0xc52   :  { %v4940_v49 = vmax.f32 %v2576_v61, 0.0  ;;  %v3194_v3 = vmul.f32 %v2591_v28, %v5559_v52  ;;  %v3195_v58 = vmul.f32 %v2591_v28, %v5560_v50  ;;  %v3196_v12 = vmul.f32 %v2591_v28, %v5561_v19 }
 0xc53   :  { %v2578_v6 = vpop.f32.mrf.mxu0  ;;  %v3197_v16 = vmul.f32 %v2591_v28, %v5562_v8  ;;  %v3198_v14 = vmul.f32 %v2591_v28, %v5563_v13  ;;  %v3199_v4 = vmul.f32 %v2591_v28, %v5564_v57  ;;  %v3200_v9 = vmul.f32 %v2591_v28, %v5565_v55  ;;  %v4981_v8 = vpop.permute.xlu0 %3389 }
 0xc54   :  { %v2579_v17 = vadd.f32 %v2578_v6, %v2522_v18  ;;  %v3201_v24 = vmul.f32 %v2591_v28, %v5566_v21  ;;  %v4951_v10 = vmul.f32 %v2591_v28, %v5567_v20  ;;  %v4954_v63 = vmul.f32 %v2591_v28, %v5568_v54  ;;  %v5574_v18 = vld [vmem:[#allocation28_spill] sm:$0xff] }
 0xc55   :  { %v4957_v62 = vmul.f32 %v2591_v28, %v5569_v5  ;;  %v4960_v15 = vmul.f32 %v2591_v28, %v5570_v53  ;;  %v4963_v56 = vmul.f32 %v2591_v28, %v5571_v11  ;;  %v4966_v0 = vmul.f32 %v2591_v28, %v5572_v1 }
 0xc56   :  { %v4968_v41 = vmax.f32 %v2579_v17, 0.0  ;;  %v4971_v31 = vmul.f32 %v2591_v28, %v5573_v59  ;;  %v4974_v33 = vmul.f32 %v2591_v28, %v5574_v18  ;;  %v3210_v36 = vsel %vm2203_vm14, %v3194_v3, -inf }
 0xc57   :  { %v3211_v2 = vrot.slane %v3210_v36, 4  ;;  %v3217_v61 = vsel %vm2203_vm14, %v3195_v58, -inf  ;;  %v3224_v60 = vsel %vm2203_vm14, %v3196_v12, -inf  ;;  %v3231_v27 = vsel %vm2203_vm14, %v3197_v16, -inf  ;;  %v3119_v1 = vpop.permute.xlu0 %3118 }
 0xc58   :  { %v3218_v52 = vrot.slane %v3217_v61, 4  ;;  %v3225_v50 = vrot.slane %v3224_v60, 4  ;;  %v3232_v19 = vrot.slane %v3231_v27, 4  ;;  %v3238_v6 = vsel %vm2203_vm14, %v3198_v14, -inf  ;;  %3716 = vmatpush3.bf16.msra.mxu1 %v3119_v1 }
 0xc59   :  { %v3212_v13 = vmax.f32 %v3210_v36, %v3211_v2  ;;  %v3239_v57 = vrot.slane %v3238_v6, 4  ;;  %v3245_v28 = vsel %vm2203_vm14, %v3199_v4, -inf  ;;  %v3252_v3 = vsel %vm2203_vm14, %v3200_v9, -inf  ;;  %3717 = vmatprep.subr.bf16.mxu1 %v5551_v51 }
 0xc5a   :  { %v3219_v55 = vmax.f32 %v3217_v61, %v3218_v52  ;;  %v3226_v17 = vmax.f32 %v3224_v60, %v3225_v50  ;;  %v3233_v58 = vmax.f32 %v3231_v27, %v3232_v19  ;;  %v3246_v21 = vrot.slane %v3245_v28, 4 }
 0xc5b   :  { %v3213_v12 = vrot.slane %v3212_v13, 2  ;;  %v3240_v20 = vmax.f32 %v3238_v6, %v3239_v57  ;;  %v3253_v16 = vrot.slane %v3252_v3, 4  ;;  %v3259_v54 = vsel %vm2203_vm14, %v3201_v24, -inf }
 0xc5c   :  { %v3220_v5 = vrot.slane %v3219_v55, 2  ;;  %v3227_v53 = vrot.slane %v3226_v17, 2  ;;  %v3234_v14 = vrot.slane %v3233_v58, 2  ;;  %v3247_v11 = vmax.f32 %v3245_v28, %v3246_v21 }
 0xc5d   :  { %v3214_v59 = vmax.f32 %v3212_v13, %v3213_v12  ;;  %v3241_v18 = vrot.slane %v3240_v20, 2  ;;  %v3254_v36 = vmax.f32 %v3252_v3, %v3253_v16  ;;  %v3260_v4 = vrot.slane %v3259_v54, 4 }
 0xc5e   :  { %v3221_v9 = vmax.f32 %v3219_v55, %v3220_v5  ;;  %v3228_v2 = vmax.f32 %v3226_v17, %v3227_v53  ;;  %v3235_v61 = vmax.f32 %v3233_v58, %v3234_v14  ;;  %v3248_v60 = vrot.slane %v3247_v11, 2 }
 0xc5f   :  { %v3215_v27 = vrot.slane %v3214_v59, 1  ;;  %v3242_v52 = vmax.f32 %v3240_v20, %v3241_v18  ;;  %v3255_v50 = vrot.slane %v3254_v36, 2  ;;  %v3261_v24 = vmax.f32 %v3259_v54, %v3260_v4 }
 0xc60   :  { %v3222_v19 = vrot.slane %v3221_v9, 1  ;;  %v3229_v6 = vrot.slane %v3228_v2, 1  ;;  %v3236_v57 = vrot.slane %v3235_v61, 1  ;;  %v3249_v28 = vmax.f32 %v3247_v11, %v3248_v60 }
 0xc61   :  { %v4987_v21 = vmax.f32 %v3214_v59, %v3215_v27  ;;  %v3243_v13 = vrot.slane %v3242_v52, 1  ;;  %v3256_v3 = vmax.f32 %v3254_v36, %v3255_v50  ;;  %v3262_v12 = vrot.slane %v3261_v24, 2 }
 0xc62   :  { %v4989_v16 = vmax.f32 %v3221_v9, %v3222_v19  ;;  %v4991_v55 = vmax.f32 %v3228_v2, %v3229_v6  ;;  %v4993_v17 = vmax.f32 %v3235_v61, %v3236_v57  ;;  %v3250_v58 = vrot.slane %v3249_v28, 1 }
 0xc63   :  { %v4995_v5 = vmax.f32 %v3242_v52, %v3243_v13  ;;  %v3257_v20 = vrot.slane %v3256_v3, 1  ;;  %v3263_v54 = vmax.f32 %v3261_v24, %v3262_v12  ;;  %v3266_v53 = vsel %vm2203_vm14, %v4951_v10, -inf }
 0xc64   :  { %v4999_v14 = vmax.f32 %v3249_v28, %v3250_v58  ;;  %v3267_v11 = vrot.slane %v3266_v53, 4  ;;  %v3273_v1 = vsel %vm2203_vm14, %v4954_v63, -inf  ;;  %v3280_v59 = vsel %vm2203_vm14, %v4957_v62, -inf }
 0xc65   :  { %v5005_v18 = vmax.f32 %v3256_v3, %v3257_v20  ;;  %v3264_v36 = vrot.slane %v3263_v54, 1  ;;  %v3274_v4 = vrot.slane %v3273_v1, 4  ;;  %v3281_v9 = vrot.slane %v3280_v59, 4 }
 0xc66   :  { %v3268_v2 = vmax.f32 %v3266_v53, %v3267_v11  ;;  %v3287_v61 = vsel %vm2203_vm14, %v4960_v15, -inf  ;;  %v3294_v10 = vsel %vm2203_vm14, %v4963_v56, -inf  ;;  %v3301_v60 = vsel %vm2203_vm14, %v4966_v0, -inf }
 0xc67   :  { %v5013_v27 = vmax.f32 %v3263_v54, %v3264_v36  ;;  %v3275_v63 = vmax.f32 %v3273_v1, %v3274_v4  ;;  %v3282_v52 = vmax.f32 %v3280_v59, %v3281_v9  ;;  %v3288_v62 = vrot.slane %v3287_v61, 4 }
 0xc68   :  { %v3269_v50 = vrot.slane %v3268_v2, 2  ;;  %v3295_v24 = vrot.slane %v3294_v10, 4  ;;  %v3302_v19 = vrot.slane %v3301_v60, 4  ;;  %v3308_v6 = vsel %vm2203_vm14, %v4971_v31, -inf }
 0xc69   :  { %v3276_v57 = vrot.slane %v3275_v63, 2  ;;  %v3283_v28 = vrot.slane %v3282_v52, 2  ;;  %v3289_v15 = vmax.f32 %v3287_v61, %v3288_v62  ;;  %v3309_v13 = vrot.slane %v3308_v6, 4 }
 0xc6a   :  { %v3270_v3 = vmax.f32 %v3268_v2, %v3269_v50  ;;  %v3296_v56 = vmax.f32 %v3294_v10, %v3295_v24  ;;  %v3303_v12 = vmax.f32 %v3301_v60, %v3302_v19  ;;  %v3315_v0 = vsel %vm2203_vm14, %v4974_v33, -inf }
 0xc6b   :  { %v3277_v58 = vmax.f32 %v3275_v63, %v3276_v57  ;;  %v3284_v20 = vmax.f32 %v3282_v52, %v3283_v28  ;;  %v3290_v54 = vrot.slane %v3289_v15, 2  ;;  %v3310_v53 = vmax.f32 %v3308_v6, %v3309_v13 }
 0xc6c   :  { %v3271_v11 = vrot.slane %v3270_v3, 1  ;;  %v3297_v1 = vrot.slane %v3296_v56, 2  ;;  %v3304_v59 = vrot.slane %v3303_v12, 2  ;;  %v3316_v36 = vrot.slane %v3315_v0, 4 }
 0xc6d   :  { %v3278_v4 = vrot.slane %v3277_v58, 1  ;;  %v3285_v31 = vrot.slane %v3284_v20, 1  ;;  %v3291_v9 = vmax.f32 %v3289_v15, %v3290_v54  ;;  %v3311_v48 = vrot.slane %v3310_v53, 2 }
 0xc6e   :  { %v3272_v61 = vmax.f32 %v3270_v3, %v3271_v11  ;;  %v3298_v62 = vmax.f32 %v3296_v56, %v3297_v1  ;;  %v3305_v2 = vmax.f32 %v3303_v12, %v3304_v59  ;;  %v3317_v10 = vmax.f32 %v3315_v0, %v3316_v36 }
 0xc6f   :  { %v3279_v60 = vmax.f32 %v3277_v58, %v3278_v4  ;;  %v3286_v50 = vmax.f32 %v3284_v20, %v3285_v31  ;;  %v3292_v24 = vrot.slane %v3291_v9, 1  ;;  %v3312_v33 = vmax.f32 %v3310_v53, %v3311_v48 }
 0xc70   :  { %v3299_v63 = vrot.slane %v3298_v62, 1  ;;  %v3306_v52 = vrot.slane %v3305_v2, 1  ;;  %v3318_v19 = vrot.slane %v3317_v10, 2  ;;  %v3322_v6 = vpack.c.bf16 %v4987_v21, %v4987_v21 }
 0xc71   :  { %v3293_v57 = vmax.f32 %v3291_v9, %v3292_v24  ;;  %v3313_v28 = vrot.slane %v3312_v33, 1  ;;  %v3323_v15 = vpack.c.bf16 %v4989_v16, %v4989_v16  ;;  %v3324_v13 = vpack.c.bf16 %v4991_v55, %v4991_v55 }
 0xc72   :  { %v3300_v3 = vmax.f32 %v3298_v62, %v3299_v63  ;;  %v3307_v56 = vmax.f32 %v3305_v2, %v3306_v52  ;;  %v3319_v12 = vmax.f32 %v3317_v10, %v3318_v19  ;;  %v3325_v48 = vpack.c.bf16 %v4993_v17, %v4993_v17  ;;  %v3117_v10 = vpop.permute.xlu0 %3116 }
 0xc73   :  { %v3314_v0 = vmax.f32 %v3312_v33, %v3313_v28  ;;  %v3326_v58 = vpack.c.bf16 %v4995_v5, %v4995_v5  ;;  %v3327_v21 = vpack.c.bf16 %v4999_v14, %v4999_v14  ;;  %v3328_v20 = vpack.c.bf16 %v5005_v18, %v5005_v18  ;;  %3718 = vmatpush3.bf16.msra.mxu1 %v3117_v10 }
 0xc74   :  { %v3320_v16 = vrot.slane %v3319_v12, 1  ;;  %v3329_v55 = vpack.c.bf16 %v5013_v27, %v5013_v27  ;;  %v3330_v54 = vpack.c.bf16 %v3272_v61, %v3272_v61  ;;  %v3331_v53 = vpack.c.bf16 %v3279_v60, %v3279_v60 }
 0xc75   :  { %v3332_v11 = vpack.c.bf16 %v3286_v50, %v3286_v50  ;;  %v3333_v1 = vpack.c.bf16 %v3293_v57, %v3293_v57  ;;  %v3334_v59 = vpack.c.bf16 %v3300_v3, %v3300_v3  ;;  %v3335_v17 = vpack.c.bf16 %v3307_v56, %v3307_v56 }
 0xc76   :  { %v3321_v36 = vmax.f32 %v3319_v12, %v3320_v16  ;;  %v3336_v4 = vpack.c.bf16 %v3314_v0, %v3314_v0  ;;  %v3354_v31 = vunpack.c.l.b16 %v3322_v6  ;;  %v3355_v5 = vunpack.c.l.b16 %v3323_v15 }
 0xc77   :  { %v3356_v9 = vunpack.c.l.b16 %v3324_v13  ;;  %v3357_v62 = vunpack.c.l.b16 %v3325_v48  ;;  %v3358_v14 = vunpack.c.l.b16 %v3326_v58  ;;  %v3359_v2 = vunpack.c.l.b16 %v3327_v21 }
 0xc78   :  { %v3337_v18 = vpack.c.bf16 %v3321_v36, %v3321_v36  ;;  %v3360_v24 = vunpack.c.l.b16 %v3328_v20  ;;  %v3361_v33 = vunpack.c.l.b16 %v3329_v55  ;;  %v3362_v63 = vunpack.c.l.b16 %v3330_v54 }
 0xc79   :  { %v3363_v27 = vunpack.c.l.b16 %v3331_v53  ;;  %v3364_v61 = vunpack.c.l.b16 %v3332_v11  ;;  %v3365_v60 = vunpack.c.l.b16 %v3333_v1  ;;  %v3366_v50 = vunpack.c.l.b16 %v3334_v59 }
 0xc7a   :  { %v3367_v52 = vunpack.c.l.b16 %v3335_v17  ;;  %v3368_v19 = vunpack.c.l.b16 %v3336_v4  ;;  %v3369_v57 = vunpack.c.l.b16 %v3337_v18  ;;  %v3370_v6 = vsel %vm659_vm5, %v3355_v5, %v3354_v31 }
 0xc7b   :  { %v3371_v28 = vsel %vm661_vm6, %v3356_v9, %v3370_v6  ;;  %v3377_v15 = vsel %vm659_vm5, %v3363_v27, %v3362_v63  ;;  %v2994_v13 = vmul.f32 %v4940_v49, %v3976_v22  ;;  %v2995_v3 = vmul.f32 %v4968_v41, %v3978_v23 }
 0xc7c   :  { %v3372_v56 = vsel %vm663_vm7, %v3357_v62, %v3371_v28  ;;  %v3378_v12 = vsel %vm661_vm6, %v3364_v61, %v3377_v15  ;;  %v2996_v48 = vmul.f32 %v4940_v49, %v3980_v25  ;;  %v2997_v0 = vmul.f32 %v4968_v41, %v3982_v26 }
 0xc7d   :  { %v3373_v58 = vsel %vm665_vm8, %v3358_v14, %v3372_v56  ;;  %v3379_v21 = vsel %vm663_vm7, %v3365_v60, %v3378_v12  ;;  %v2998_v22 = vmul.f32 %v4940_v49, %v3988_v29  ;;  %v2999_v23 = vmul.f32 %v4968_v41, %v3990_v30 }
 0xc7e   :  { %v3374_v20 = vsel %vm667_vm9, %v3359_v2, %v3373_v58  ;;  %v3380_v16 = vsel %vm665_vm8, %v3366_v50, %v3379_v21  ;;  %v3000_v25 = vmul.f32 %v4940_v49, %v3996_v34  ;;  %v3001_v26 = vmul.f32 %v4968_v41, %v3998_v35 }
 0xc7f   :  { %v3375_v55 = vsel %vm669_vm10, %v3360_v24, %v3374_v20  ;;  %v3381_v54 = vsel %vm667_vm9, %v3367_v52, %v3380_v16  ;;  %v3002_v29 = vmul.f32 %v4940_v49, %v4000_v37  ;;  %v3003_v30 = vmul.f32 %v4968_v41, %v4002_v38 }
 0xc80   :  { %v3376_v53 = vsel %vm671_vm11, %v3361_v33, %v3375_v55  ;;  %v3382_v11 = vsel %vm669_vm10, %v3368_v19, %v3381_v54  ;;  %v3004_v34 = vmul.f32 %v4940_v49, %v4004_v39  ;;  %v3005_v35 = vmul.f32 %v4968_v41, %v4006_v40 }
 0xc81   :  { %v3383_v1 = vsel %vm671_vm11, %v3369_v57, %v3382_v11  ;;  %v3006_v59 = vmul.f32 %v4940_v49, %v4008_v42  ;;  %v3007_v37 = vmul.f32 %v4968_v41, %v4011_v43  ;;  %v3008_v38 = vmul.f32 %v4940_v49, %v4014_v44 }
 0xc82   :  { %v3384_v17 = vpack.c.b16 %v3383_v1, %v3376_v53  ;;  %v3009_v36 = vmul.f32 %v4968_v41, %v4016_v45  ;;  %v3010_v39 = vsel %vm2001_vm15, %v2994_v13, -inf  ;;  %v3011_v4 = vsel %vm2001_vm15, %v2995_v3, -inf }
 0xc83   :  { %v3012_v40 = vmax.f32 %v3010_v39, %v3011_v4  ;;  %v3019_v31 = vsel %vm2001_vm15, %v2996_v48, -inf  ;;  %v3020_v5 = vsel %vm2001_vm15, %v2997_v0, -inf  ;;  %v3028_v42 = vsel %vm2001_vm15, %v2998_v22, -inf }
 0xc84   :  { %3385 = vrot.lane.b32.xlu1 %v3384_v17, %s3817_s18  ;;  %v3021_v43 = vmax.f32 %v3019_v31, %v3020_v5  ;;  %v3029_v44 = vsel %vm2001_vm15, %v2999_v23, -inf  ;;  %v3037_v9 = vsel %vm2001_vm15, %v3000_v25, -inf  ;;  %v3038_v45 = vsel %vm2001_vm15, %v3001_v26, -inf  ;;  %s3824_s18 = smov 16  }
 0xc85   :  { %v3013_v62 = vrot.slane %v3012_v40, 4  ;;  %v3030_v14 = vmax.f32 %v3028_v42, %v3029_v44  ;;  %v3039_v2 = vmax.f32 %v3037_v9, %v3038_v45  ;;  %v3046_v10 = vsel %vm2001_vm15, %v3002_v29, -inf }
 0xc86   :  { %v3022_v18 = vrot.slane %v3021_v43, 4  ;;  %v3047_v24 = vsel %vm2001_vm15, %v3003_v30, -inf  ;;  %v3055_v33 = vsel %vm2001_vm15, %v3004_v34, -inf  ;;  %v3056_v63 = vsel %vm2001_vm15, %v3005_v35, -inf }
 0xc87   :  { %v3014_v27 = vmax.f32 %v3012_v40, %v3013_v62  ;;  %v3031_v61 = vrot.slane %v3030_v14, 4  ;;  %v3040_v60 = vrot.slane %v3039_v2, 4  ;;  %v3048_v50 = vmax.f32 %v3046_v10, %v3047_v24 }
 0xc88   :  { %v3023_v52 = vmax.f32 %v3021_v43, %v3022_v18  ;;  %v3057_v19 = vmax.f32 %v3055_v33, %v3056_v63  ;;  %v3064_v57 = vsel %vm2001_vm15, %v3006_v59, -inf  ;;  %v3065_v6 = vsel %vm2001_vm15, %v3007_v37, -inf }
 0xc89   :  { %v3015_v28 = vrot.slane %v3014_v27, 2  ;;  %v3032_v15 = vmax.f32 %v3030_v14, %v3031_v61  ;;  %v3041_v13 = vmax.f32 %v3039_v2, %v3040_v60  ;;  %v3049_v3 = vrot.slane %v3048_v50, 4 }
 0xc8a   :  { %v3024_v56 = vrot.slane %v3023_v52, 2  ;;  %v3058_v12 = vrot.slane %v3057_v19, 4  ;;  %v3066_v48 = vmax.f32 %v3064_v57, %v3065_v6  ;;  %v3073_v0 = vsel %vm2001_vm15, %v3008_v38, -inf }
 0xc8b   :  { %v3016_v58 = vmax.f32 %v3014_v27, %v3015_v28  ;;  %v3033_v21 = vrot.slane %v3032_v15, 2  ;;  %v3042_v22 = vrot.slane %v3041_v13, 2  ;;  %v3050_v23 = vmax.f32 %v3048_v50, %v3049_v3 }
 0xc8c   :  { %v3025_v20 = vmax.f32 %v3023_v52, %v3024_v56  ;;  %v3059_v16 = vmax.f32 %v3057_v19, %v3058_v12  ;;  %v3067_v25 = vrot.slane %v3066_v48, 4  ;;  %v3074_v26 = vsel %vm2001_vm15, %v3009_v36, -inf }
 0xc8d   :  { %v3017_v55 = vrot.slane %v3016_v58, 1  ;;  %v3034_v54 = vmax.f32 %v3032_v15, %v3033_v21  ;;  %v3043_v29 = vmax.f32 %v3041_v13, %v3042_v22  ;;  %v3051_v30 = vrot.slane %v3050_v23, 2 }
 0xc8e   :  { %v3026_v53 = vrot.slane %v3025_v20, 1  ;;  %v3060_v11 = vrot.slane %v3059_v16, 2  ;;  %v3068_v34 = vmax.f32 %v3066_v48, %v3067_v25  ;;  %v3075_v35 = vmax.f32 %v3073_v0, %v3074_v26  ;;  %v5576_v25 = vld [vmem:[#allocation30_spill] sm:$0xff] }
 0xc8f   :  { %v3018_v1 = vmax.f32 %v3016_v58, %v3017_v55  ;;  %v3035_v59 = vrot.slane %v3034_v54, 1  ;;  %v3044_v37 = vrot.slane %v3043_v29, 1  ;;  %v3052_v38 = vmax.f32 %v3050_v23, %v3051_v30  ;;  %v5575_v23 = vld [vmem:[#allocation29_spill] sm:$0xff]  ;;  %v5577_v55 = vld [vmem:[#allocation35_spill] sm:$0xff] }
 0xc90   :  { %v3027_v17 = vmax.f32 %v3025_v20, %v3026_v53  ;;  %v3061_v39 = vmax.f32 %v3059_v16, %v3060_v11  ;;  %v3069_v4 = vrot.slane %v3068_v34, 2  ;;  %v3076_v40 = vrot.slane %v3075_v35, 4  ;;  %v5579_v11 = vld [vmem:[#allocation39_spill] sm:$0xff] }
 0xc91   :  { %v3036_v31 = vmax.f32 %v3034_v54, %v3035_v59  ;;  %v3045_v5 = vmax.f32 %v3043_v29, %v3044_v37  ;;  %v3053_v42 = vrot.slane %v3052_v38, 1  ;;  %v3082_v36 = vpack.c.bf16 %v3018_v1, %v3018_v1  ;;  %v5578_v29 = vld [vmem:[#allocation36_spill] sm:$0xff] }
 0xc92   :  { %v3062_v43 = vrot.slane %v3061_v39, 1  ;;  %v3070_v44 = vmax.f32 %v3068_v34, %v3069_v4  ;;  %v3077_v9 = vmax.f32 %v3075_v35, %v3076_v40  ;;  %v3083_v45 = vpack.c.bf16 %v3027_v17, %v3027_v17  ;;  %v5580_v34 = vld [vmem:[#allocation40_spill] sm:$0xff]  ;;  %v5581_v35 = vld [vmem:[#allocation43_spill] sm:$0xff] }
 0xc93   :  { %v3054_v62 = vmax.f32 %v3052_v38, %v3053_v42  ;;  %v3084_v14 = vpack.c.bf16 %v3036_v31, %v3036_v31  ;;  %v3085_v2 = vpack.c.bf16 %v3045_v5, %v3045_v5  ;;  %v3098_v10 = vunpack.c.l.b16 %v3082_v36  ;;  %v5582_v37 = vld [vmem:[#allocation44_spill] sm:$0xff]  ;;  %v5583_v17 = vld [vmem:[#allocation47_spill] sm:$0xff] }
 0xc94   :  { %v3063_v18 = vmax.f32 %v3061_v39, %v3062_v43  ;;  %v3071_v24 = vrot.slane %v3070_v44, 1  ;;  %v3078_v33 = vrot.slane %v3077_v9, 2  ;;  %v3099_v63 = vunpack.c.l.b16 %v3083_v45  ;;  %v5584_v4 = vld [vmem:[#allocation48_spill] sm:$0xff]  ;;  %v5585_v31 = vld [vmem:[#allocation51_spill] sm:$0xff] }
 0xc95   :  { %v3086_v27 = vpack.c.bf16 %v3054_v62, %v3054_v62  ;;  %v3100_v61 = vunpack.c.l.b16 %v3084_v14  ;;  %v3101_v60 = vunpack.c.l.b16 %v3085_v2  ;;  %v2652_v21 = vmul.f32 %v4940_v49, %v4018_v46  ;;  %v5586_v42 = vld [vmem:[#allocation52_spill] sm:$0xff]  ;;  %v5587_v43 = vld [vmem:[#allocation55_spill] sm:$0xff] }
 0xc96   :  { %v3072_v50 = vmax.f32 %v3070_v44, %v3071_v24  ;;  %v3079_v52 = vmax.f32 %v3077_v9, %v3078_v33  ;;  %v3087_v19 = vpack.c.bf16 %v3063_v18, %v3063_v18  ;;  %v3106_v57 = vsel %vm659_vm5, %v3099_v63, %v3098_v10  ;;  %v5588_v9 = vld [vmem:[#allocation56_spill] sm:$0xff]  ;;  %v5589_v14 = vld [vmem:[#allocation31_spill] sm:$0xff]  ;;  %v5591_v24 = vld [vmem:[#allocation33_spill] sm:$0xff] }
 0xc97   :  { %v3102_v6 = vunpack.c.l.b16 %v3086_v27  ;;  %v3107_v28 = vsel %vm661_vm6, %v3100_v61, %v3106_v57  ;;  %v2653_v22 = vmul.f32 %v4968_v41, %v4020_v47  ;;  %v2654_v20 = vmul.f32 %v4940_v49, %v5575_v23  ;;  %v5590_v10 = vld [vmem:[#allocation32_spill] sm:$0xff]  ;;  %v5592_v27 = vld [vmem:[#allocation34_spill] sm:$0xff]  ;;  %v5595_v57 = vld [vmem:[#allocation41_spill] sm:$0xff] }
 0xc98   :  { %v3080_v15 = vrot.slane %v3079_v52, 1  ;;  %v3088_v13 = vpack.c.bf16 %v3072_v50, %v3072_v50  ;;  %v3103_v3 = vunpack.c.l.b16 %v3087_v19  ;;  %v3108_v56 = vsel %vm663_vm7, %v3101_v60, %v3107_v28  ;;  %v5593_v60 = vld [vmem:[#allocation37_spill] sm:$0xff]  ;;  %v5596_v28 = vld [vmem:[#allocation42_spill] sm:$0xff] }
 0xc99   :  { %v3109_v12 = vsel %vm665_vm8, %v3102_v6, %v3108_v56  ;;  %v2655_v26 = vmul.f32 %v4968_v41, %v5576_v25  ;;  %v2656_v54 = vmul.f32 %v4940_v49, %v5577_v55  ;;  %v2657_v30 = vmul.f32 %v4968_v41, %v5578_v29 }
 0xc9a   :  { %v3081_v48 = vmax.f32 %v3079_v52, %v3080_v15  ;;  %v3110_v0 = vsel %vm667_vm9, %v3103_v3, %v3109_v12  ;;  %v3104_v58 = vunpack.c.l.b16 %v3088_v13  ;;  %v2658_v46 = vmul.f32 %v4940_v49, %v5579_v11  ;;  %v5594_v52 = vld [vmem:[#allocation38_spill] sm:$0xff] }
 0xc9b   :  { %v2659_v47 = vmul.f32 %v4968_v41, %v5580_v34  ;;  %v2660_v1 = vmul.f32 %v4940_v49, %v5581_v35  ;;  %v2661_v38 = vmul.f32 %v4968_v41, %v5582_v37  ;;  %v2662_v39 = vmul.f32 %v4940_v49, %v5583_v17 }
 0xc9c   :  { %v3089_v16 = vpack.c.bf16 %v3081_v48, %v3081_v48  ;;  %v3111_v53 = vsel %vm669_vm10, %v3104_v58, %v3110_v0  ;;  %v2663_v40 = vmul.f32 %v4968_v41, %v5584_v4  ;;  %v2664_v5 = vmul.f32 %v4940_v49, %v5585_v31 }
 0xc9d   :  { %v2665_v36 = vmul.f32 %v4968_v41, %v5586_v42  ;;  %v2666_v44 = vmul.f32 %v4940_v49, %v5587_v43  ;;  %v2667_v45 = vmul.f32 %v4968_v41, %v5588_v9  ;;  %v5139_v2 = vmul.f32 %v4940_v49, %v5589_v14  ;;  %v5597_v42 = vld [vmem:[#allocation45_spill] sm:$0xff] }
 0xc9e   :  { %v3105_v59 = vunpack.c.l.b16 %v3089_v16  ;;  %v5143_v18 = vmul.f32 %v4968_v41, %v5590_v10  ;;  %v5147_v33 = vmul.f32 %v4940_v49, %v5591_v24  ;;  %v5151_v61 = vmul.f32 %v4968_v41, %v5592_v27 }
 0xc9f   :  { %v5155_v50 = vmul.f32 %v4940_v49, %v5593_v60  ;;  %v5159_v19 = vmul.f32 %v4968_v41, %v5594_v52  ;;  %v5163_v6 = vmul.f32 %v4940_v49, %v5595_v57  ;;  %v5167_v15 = vmul.f32 %v4968_v41, %v5596_v28 }
 0xca0   :  { %v3112_v62 = vsel %vm671_vm11, %v3105_v59, %v3111_v53  ;;  %v2684_v13 = vsel %vm741_vm13, %v2652_v21, -inf  ;;  %v2685_v3 = vsel %vm741_vm13, %v2653_v22, -inf  ;;  %v2693_v12 = vsel %vm741_vm13, %v2654_v20, -inf }
 0xca1   :  { %v3113_v63 = vpack.c.b16 %v3112_v62, %v3112_v62  ;;  %v2686_v56 = vmax.f32 %v2684_v13, %v2685_v3  ;;  %v2694_v48 = vsel %vm741_vm13, %v2655_v26, -inf  ;;  %v2702_v0 = vsel %vm741_vm13, %v2656_v54, -inf }
 0xca2   :  { %v2695_v58 = vmax.f32 %v2693_v12, %v2694_v48  ;;  %v2703_v23 = vsel %vm741_vm13, %v2657_v30, -inf  ;;  %v2711_v16 = vsel %vm741_vm13, %v2658_v46, -inf  ;;  %v2712_v25 = vsel %vm741_vm13, %v2659_v47, -inf  ;;  %v5598_v12 = vld [vmem:[#allocation49_spill] sm:$0xff] }
 0xca3   :  { %3114 = vrot.lane.b32.xlu1 %v3113_v63, %s3819_s3  ;;  %v2687_v55 = vrot.slane %v2686_v56, 4  ;;  %v2704_v21 = vmax.f32 %v2702_v0, %v2703_v23  ;;  %v2713_v29 = vmax.f32 %v2711_v16, %v2712_v25  ;;  %v2720_v22 = vsel %vm741_vm13, %v2660_v1, -inf  ;;  %v5599_v0 = vld [vmem:[#allocation50_spill] sm:$0xff]  ;;  %v5600_v23 = vld [vmem:[#allocation53_spill] sm:$0xff] }
 0xca4   :  { %v2696_v53 = vrot.slane %v2695_v58, 4  ;;  %v2721_v11 = vsel %vm741_vm13, %v2661_v38, -inf  ;;  %v2729_v20 = vsel %vm741_vm13, %v2662_v39, -inf  ;;  %v2730_v26 = vsel %vm741_vm13, %v2663_v40, -inf  ;;  %v5601_v25 = vld [vmem:[#allocation54_spill] sm:$0xff] }
 0xca5   :  { %v2688_v54 = vmax.f32 %v2686_v56, %v2687_v55  ;;  %v2705_v34 = vrot.slane %v2704_v21, 4  ;;  %v2714_v35 = vrot.slane %v2713_v29, 4  ;;  %v2722_v30 = vmax.f32 %v2720_v22, %v2721_v11 }
 0xca6   :  { %v2697_v59 = vmax.f32 %v2695_v58, %v2696_v53  ;;  %v2731_v46 = vmax.f32 %v2729_v20, %v2730_v26  ;;  %v2738_v47 = vsel %vm741_vm13, %v2664_v5, -inf  ;;  %v2739_v37 = vsel %vm741_vm13, %v2665_v36, -inf  ;;  %v5603_v53 = vld [vmem:[#allocation59_spill] sm:$0xff] }
 0xca7   :  { %v2689_v17 = vrot.slane %v2688_v54, 2  ;;  %v2706_v4 = vmax.f32 %v2704_v21, %v2705_v34  ;;  %v2715_v1 = vmax.f32 %v2713_v29, %v2714_v35  ;;  %v2723_v31 = vrot.slane %v2722_v30, 4  ;;  %v5602_v29 = vld [vmem:[#allocation57_spill] sm:$0xff] }
 0xca8   :  { %v2676_v38 = vmul.f32 %v4940_v49, %v5597_v42  ;;  %v2698_v39 = vrot.slane %v2697_v59, 2  ;;  %v2732_v43 = vrot.slane %v2731_v46, 4  ;;  %v2740_v40 = vmax.f32 %v2738_v47, %v2739_v37 }
 0xca9   :  { %v2690_v9 = vmax.f32 %v2688_v54, %v2689_v17  ;;  %v2707_v62 = vrot.slane %v2706_v4, 2  ;;  %v2716_v14 = vrot.slane %v2715_v1, 2  ;;  %v2724_v10 = vmax.f32 %v2722_v30, %v2723_v31 }
 0xcaa   :  { %v2699_v24 = vmax.f32 %v2697_v59, %v2698_v39  ;;  %v2733_v63 = vmax.f32 %v2731_v46, %v2732_v43  ;;  %v2741_v27 = vrot.slane %v2740_v40, 4  ;;  %v2748_v5 = vsel %vm741_vm13, %v2667_v45, -inf }
 0xcab   :  { %v2691_v36 = vrot.slane %v2690_v9, 1  ;;  %v2708_v60 = vmax.f32 %v2706_v4, %v2707_v62  ;;  %v2725_v52 = vrot.slane %v2724_v10, 2  ;;  %v2747_v57 = vsel %vm741_vm13, %v2666_v44, -inf }
 0xcac   :  { %v2677_v28 = vmul.f32 %v4968_v41, %v5547_v32  ;;  %v2734_v13 = vrot.slane %v2733_v63, 2  ;;  %v2742_v3 = vmax.f32 %v2740_v40, %v2741_v27  ;;  %v2749_v56 = vmax.f32 %v2747_v57, %v2748_v5 }
 0xcad   :  { %v2678_v48 = vmul.f32 %v4940_v49, %v5598_v12  ;;  %v2679_v58 = vmul.f32 %v4968_v41, %v5599_v0  ;;  %v2680_v45 = vmul.f32 %v4940_v49, %v5600_v23  ;;  %v5196_v16 = vmax.f32 %v2715_v1, %v2716_v14 }
 0xcae   :  { %v2681_v44 = vmul.f32 %v4968_v41, %v5601_v25  ;;  %v2700_v55 = vrot.slane %v2699_v24, 1  ;;  %v2709_v21 = vrot.slane %v2708_v60, 1  ;;  %v5200_v32 = vmax.f32 %v2724_v10, %v2725_v52 }
 0xcaf   :  { %v2682_v22 = vmul.f32 %v4940_v49, %v5602_v29  ;;  %v2683_v11 = vmul.f32 %v4968_v41, %v5603_v53  ;;  %v5206_v20 = vmax.f32 %v2690_v9, %v2691_v36  ;;  %v2750_v26 = vrot.slane %v2749_v56, 4 }
 0xcb0   :  { %v5208_v54 = vmax.f32 %v2733_v63, %v2734_v13  ;;  %v2743_v34 = vrot.slane %v2742_v3, 2  ;;  %v2756_v35 = vsel %vm741_vm13, %v5139_v2, -inf  ;;  %v2757_v30 = vsel %vm741_vm13, %v5143_v18, -inf }
 0xcb1   :  { %v2718_v59 = vrot.slane %v5196_v16, 1  ;;  %v2758_v46 = vmax.f32 %v2756_v35, %v2757_v30  ;;  %v2765_v49 = vsel %vm741_vm13, %v5147_v33, -inf  ;;  %v2766_v41 = vsel %vm741_vm13, %v5151_v61, -inf }
 0xcb2   :  { %v5219_v47 = vmax.f32 %v2699_v24, %v2700_v55  ;;  %v5221_v37 = vmax.f32 %v2708_v60, %v2709_v21  ;;  %v2727_v17 = vrot.slane %v5200_v32, 1  ;;  %v2767_v4 = vmax.f32 %v2765_v49, %v2766_v41 }
 0xcb3   :  { %v2751_v2 = vmax.f32 %v2749_v56, %v2750_v26  ;;  %v2759_v1 = vrot.slane %v2758_v46, 4  ;;  %v2774_v18 = vsel %vm741_vm13, %v5155_v50, -inf  ;;  %v2775_v31 = vsel %vm741_vm13, %v5159_v19, -inf }
 0xcb4   :  { %v2736_v33 = vrot.slane %v5208_v54, 1  ;;  %v2744_v42 = vmax.f32 %v2742_v3, %v2743_v34  ;;  %v2768_v39 = vrot.slane %v2767_v4, 4  ;;  %v2776_v61 = vmax.f32 %v2774_v18, %v2775_v31 }
 0xcb5   :  { %v2760_v43 = vmax.f32 %v2758_v46, %v2759_v1  ;;  %v2783_v40 = vsel %vm741_vm13, %v5163_v6, -inf  ;;  %v2784_v9 = vsel %vm741_vm13, %v5167_v15, -inf  ;;  %v2793_v62 = vsel %vm741_vm13, %v2677_v28, -inf }
 0xcb6   :  { %v2769_v14 = vmax.f32 %v2767_v4, %v2768_v39  ;;  %v2777_v10 = vrot.slane %v2776_v61, 4  ;;  %v2785_v50 = vmax.f32 %v2783_v40, %v2784_v9  ;;  %v2792_v24 = vsel %vm741_vm13, %v2676_v38, -inf }
 0xcb7   :  { %v2752_v19 = vrot.slane %v2751_v2, 2  ;;  %v2761_v63 = vrot.slane %v2760_v43, 2  ;;  %v2794_v27 = vmax.f32 %v2792_v24, %v2793_v62  ;;  %v2802_v5 = vsel %vm741_vm13, %v2679_v58, -inf }
 0xcb8   :  { %v2770_v36 = vrot.slane %v2769_v14, 2  ;;  %v2778_v60 = vmax.f32 %v2776_v61, %v2777_v10  ;;  %v2786_v52 = vrot.slane %v2785_v50, 4  ;;  %v2801_v6 = vsel %vm741_vm13, %v2678_v48, -inf }
 0xcb9   :  { %v2762_v57 = vmax.f32 %v2760_v43, %v2761_v63  ;;  %v2795_v13 = vrot.slane %v2794_v27, 4  ;;  %v2803_v15 = vmax.f32 %v2801_v6, %v2802_v5  ;;  %v2810_v28 = vsel %vm741_vm13, %v2680_v45, -inf }
 0xcba   :  { %v2771_v3 = vmax.f32 %v2769_v14, %v2770_v36  ;;  %v2779_v56 = vrot.slane %v2778_v60, 2  ;;  %v2787_v12 = vmax.f32 %v2785_v50, %v2786_v52  ;;  %v2811_v38 = vsel %vm741_vm13, %v2681_v44, -inf }
 0xcbb   :  { %v2745_v0 = vrot.slane %v2744_v42, 1  ;;  %v2796_v23 = vmax.f32 %v2794_v27, %v2795_v13  ;;  %v2804_v25 = vrot.slane %v2803_v15, 4  ;;  %v2812_v55 = vmax.f32 %v2810_v28, %v2811_v38 }
 0xcbc   :  { %v2753_v58 = vmax.f32 %v2751_v2, %v2752_v19  ;;  %v2763_v21 = vrot.slane %v2762_v57, 1  ;;  %v2780_v29 = vmax.f32 %v2778_v60, %v2779_v56  ;;  %v2788_v53 = vrot.slane %v2787_v12, 2 }
 0xcbd   :  { %v2772_v26 = vrot.slane %v2771_v3, 1  ;;  %v2797_v48 = vrot.slane %v2796_v23, 2  ;;  %v2805_v34 = vmax.f32 %v2803_v15, %v2804_v25  ;;  %v2813_v35 = vrot.slane %v2812_v55, 4 }
 0xcbe   :  { %v2781_v30 = vrot.slane %v2780_v29, 1  ;;  %v2789_v46 = vmax.f32 %v2787_v12, %v2788_v53  ;;  %v2819_v45 = vsel %vm741_vm13, %v2682_v22, -inf  ;;  %v2820_v49 = vsel %vm741_vm13, %v2683_v11, -inf }
 0xcbf   :  { %v2798_v41 = vmax.f32 %v2796_v23, %v2797_v48  ;;  %v2806_v44 = vrot.slane %v2805_v34, 2  ;;  %v2814_v4 = vmax.f32 %v2812_v55, %v2813_v35  ;;  %v2821_v1 = vmax.f32 %v2819_v45, %v2820_v49 }
 0xcc0   :  { %v2719_v18 = vmax.f32 %v5196_v16, %v2718_v59  ;;  %v2728_v2 = vmax.f32 %v5200_v32, %v2727_v17  ;;  %v2754_v31 = vrot.slane %v2753_v58, 1  ;;  %v2790_v39 = vrot.slane %v2789_v46, 1 }
 0xcc1   :  { %v2799_v61 = vrot.slane %v2798_v41, 1  ;;  %v2807_v43 = vmax.f32 %v2805_v34, %v2806_v44  ;;  %v2815_v40 = vrot.slane %v2814_v4, 2  ;;  %v2822_v9 = vrot.slane %v2821_v1, 4 }
 0xcc2   :  { %v2737_v62 = vmax.f32 %v5208_v54, %v2736_v33  ;;  %v2764_v14 = vmax.f32 %v2762_v57, %v2763_v21  ;;  %v2773_v22 = vmax.f32 %v2771_v3, %v2772_v26  ;;  %v2782_v10 = vmax.f32 %v2780_v29, %v2781_v30 }
 0xcc3   :  { %v2746_v11 = vmax.f32 %v2744_v42, %v2745_v0  ;;  %v2808_v50 = vrot.slane %v2807_v43, 1  ;;  %v2816_v24 = vmax.f32 %v2814_v4, %v2815_v40  ;;  %v2823_v19 = vmax.f32 %v2821_v1, %v2822_v9 }
 0xcc4   :  { %v2755_v63 = vmax.f32 %v2753_v58, %v2754_v31  ;;  %v2791_v27 = vmax.f32 %v2789_v46, %v2790_v39  ;;  %v2828_v16 = vpack.c.bf16 %v5206_v20, %v5206_v20  ;;  %v2829_v32 = vpack.c.bf16 %v5219_v47, %v5219_v47 }
 0xcc5   :  { %v2800_v59 = vmax.f32 %v2798_v41, %v2799_v61  ;;  %v2817_v17 = vrot.slane %v2816_v24, 1  ;;  %v2824_v5 = vrot.slane %v2823_v19, 2  ;;  %v2830_v54 = vpack.c.bf16 %v5221_v37, %v5221_v37 }
 0xcc6   :  { %v2809_v33 = vmax.f32 %v2807_v43, %v2808_v50  ;;  %v2836_v36 = vpack.c.bf16 %v2764_v14, %v2764_v14  ;;  %v2837_v42 = vpack.c.bf16 %v2773_v22, %v2773_v22  ;;  %v2838_v60 = vpack.c.bf16 %v2782_v10, %v2782_v10 }
 0xcc7   :  { %v2818_v52 = vmax.f32 %v2816_v24, %v2817_v17  ;;  %v2825_v6 = vmax.f32 %v2823_v19, %v2824_v5  ;;  %v2831_v57 = vpack.c.bf16 %v2719_v18, %v2719_v18  ;;  %v2832_v13 = vpack.c.bf16 %v2728_v2, %v2728_v2 }
 0xcc8   :  { %v2833_v15 = vpack.c.bf16 %v2737_v62, %v2737_v62  ;;  %v2839_v28 = vpack.c.bf16 %v2791_v27, %v2791_v27  ;;  %v2860_v20 = vunpack.c.l.b16 %v2828_v16  ;;  %v2861_v3 = vunpack.c.l.b16 %v2829_v32 }
 0xcc9   :  { %v2826_v56 = vrot.slane %v2825_v6, 1  ;;  %v2834_v47 = vpack.c.bf16 %v2746_v11, %v2746_v11  ;;  %v2840_v12 = vpack.c.bf16 %v2800_v59, %v2800_v59  ;;  %v2862_v38 = vunpack.c.l.b16 %v2830_v54  ;;  %v3388_v11 = vpop.permute.xlu1 %3387 }
 0xcca   :  { %v2841_v0 = vpack.c.bf16 %v2809_v33, %v2809_v33  ;;  %v2868_v23 = vunpack.c.l.b16 %v2836_v36  ;;  %v2869_v25 = vunpack.c.l.b16 %v2837_v42  ;;  %v2870_v37 = vunpack.c.l.b16 %v2838_v60  ;;  %v5276_v60 = vld [vmem:[%s5325_s2 + $0x8] sm:$0xf] }
 0xccb   :  { %v2827_v55 = vmax.f32 %v2825_v6, %v2826_v56  ;;  %v2835_v58 = vpack.c.bf16 %v2755_v63, %v2755_v63  ;;  %v2842_v21 = vpack.c.bf16 %v2818_v52, %v2818_v52  ;;  %v2863_v29 = vunpack.c.l.b16 %v2831_v57  ;;  %v5604_v52 = vld [vmem:[#allocation6_spill] sm:$0xff] }
 0xccc   :  { %v2864_v53 = vunpack.c.l.b16 %v2832_v13  ;;  %v2871_v26 = vunpack.c.l.b16 %v2839_v28  ;;  %v2876_v48 = vsel %vm659_vm5, %v2861_v3, %v2860_v20  ;;  %v2883_v34 = vsel %vm659_vm5, %v2869_v25, %v2868_v23  ;;  %v5605_v56 = vld [vmem:[#allocation58_spill] sm:$0xff] }
 0xccd   :  { %v2843_v35 = vpack.c.bf16 %v2827_v55, %v2827_v55  ;;  %v2872_v30 = vunpack.c.l.b16 %v2840_v12  ;;  %v2877_v46 = vsel %vm661_vm6, %v2862_v38, %v2876_v48  ;;  %v2884_v45 = vsel %vm661_vm6, %v2870_v37, %v2883_v34 }
 0xcce   :  { %v2865_v49 = vunpack.c.l.b16 %v2833_v15  ;;  %v2873_v41 = vunpack.c.l.b16 %v2841_v0  ;;  %v2878_v44 = vsel %vm663_vm7, %v2863_v29, %v2877_v46  ;;  %v2885_v4 = vsel %vm663_vm7, %v2871_v26, %v2884_v45 }
 0xccf   :  { %v2866_v1 = vunpack.c.l.b16 %v2834_v47  ;;  %v2874_v18 = vunpack.c.l.b16 %v2842_v21  ;;  %v2879_v2 = vsel %vm665_vm8, %v2864_v53, %v2878_v44  ;;  %v2886_v31 = vsel %vm665_vm8, %v2872_v30, %v2885_v4 }
 0xcd0   :  { %v2867_v39 = vunpack.c.l.b16 %v2835_v58  ;;  %v2875_v61 = vunpack.c.l.b16 %v2843_v35  ;;  %v2880_v43 = vsel %vm667_vm9, %v2865_v49, %v2879_v2  ;;  %v2887_v40 = vsel %vm667_vm9, %v2873_v41, %v2886_v31 }
 0xcd1   :  { %v2881_v9 = vsel %vm669_vm10, %v2866_v1, %v2880_v43  ;;  %v2888_v62 = vsel %vm669_vm10, %v2874_v18, %v2887_v40  ;;  %v2952_v6 = vrot.slane %v5276_v60, %v5604_v52 }
 0xcd2   :  { %v2882_v14 = vsel %vm671_vm11, %v2867_v39, %v2881_v9  ;;  %v2889_v22 = vsel %vm671_vm11, %v2875_v61, %v2888_v62 }
 0xcd3   :  { %v2890_v10 = vpack.c.b16 %v2889_v22, %v2882_v14 }
 0xcd5   :  { %3712 = vmatmul.mubr.msk.bf16.vlgmr.msra.gmra.mxu0 %vm741_vm13, %v2890_v10 }
 0xcd6   :  { %3724 = vmatpush3.bf16.msra.mxu0 %v4981_v8  ;;  %3727 = vmatprep.mubr.msk.bf16.mxu0 %vm3821_vm3, %v5551_v51 }
 0xcd7   :  { %3725 = vmatprep.subr.bf16.mxu0 %v5551_v51  ;;  %v2641_v51 = vpop.f32.mrf.mxu1 }
 0xcda   :  { %3726 = vmatpush3.bf16.msra.mxu0 %v3388_v11 }
 0xcf6   :  { %v3386_v50 = vpop.permute.xlu1 %3385 }
 0xcf7   :  { %3728 = vmatmul.mubr.msk.bf16.vlgmr.msra.gmra.mxu0 %vm741_vm13, %v3386_v50 }
 0xd15   :  { %v3115_v24 = vpop.permute.xlu1 %3114 }
 0xd16   :  { %3720 = vmatmul.mubr.msk.bf16.vlgmr.msra.gmra.mxu1 %vm741_vm13, %v3115_v24 }
 0xd95   :  { %v2940_v19 = vpop.f32.mrf.mxu0 }
 0xd96   :  { %v2947_v21 = vadd.f32 %v2940_v19, %v4938_v7 }
 0xd97   :  { %v3713_v63 = vpop.f32.mrf.mxu0 }
 0xd98   :  { %v2953_v53 = vadd.f32 %v2952_v6, %v2947_v21 }
 0xd99   :  { %v2943_v27 = vpop.f32.mrf.mxu0 }
 0xd9a   :  { %v2948_v0 = vadd.f32 %v2943_v27, %v2641_v51  ;;  %v2955_v48 = vsel %vm147_vm2, %v2953_v53, 0.0 }
 0xd9b   :  { %v3714_v16 = vpop.f32.mrf.mxu0 }
 0xd9c   :  { %v2954_v37 = vadd.f32 %v2952_v6, %v2948_v0 }
 0xd9e   :  { %v2958_v58 = vsel %vm147_vm2, %v2954_v37, 0.0 }
 0xdb7   :  { %v3430_v32 = vpop.f32.mrf.mxu0 }
 0xdb8   :  { %3439 = vrot.lane.b32.xlu0 %v3430_v32, %s3823_s11 }
 0xdb9   :  { %v3729_v8 = vpop.f32.mrf.mxu0 }
 0xdbb   :  { %v3433_v59 = vpop.f32.mrf.mxu0 }
 0xdbc   :  { %3441 = vrot.lane.b32.xlu1 %v3433_v59, %s3823_s11 }
 0xdbd   :  { %v3730_v17 = vpop.f32.mrf.mxu0 }
 0xdd6   :  { %v3159_v5 = vpop.f32.mrf.mxu1 }
 0xdd7   :  { %3166 = vrot.lane.b32.xlu0 %v3159_v5, %s3824_s18 }
 0xdd8   :  { %v3721_v54 = vpop.f32.mrf.mxu1 }
 0xdda   :  { %v3162_v33 = vpop.f32.mrf.mxu1 }
 0xddc   :  { %v3722_v36 = vpop.f32.mrf.mxu1 }
 0xe2a   :  { %v3440_v42 = vpop.permute.xlu0 %3439 }
 0xe2b   :  { %v3445_v57 = vadd.f32 %v3440_v42, %v4938_v7 }
 0xe2d   :  { %v3447_v13 = vadd.f32 %v3445_v57, %v2952_v6  ;;  %v5606_v57 = vld [vmem:[#allocation7_spill] sm:$0xff] }
 0xe2e   :  { %v3442_v15 = vpop.permute.xlu1 %3441 }
 0xe2f   :  { %v3446_v28 = vadd.f32 %v3442_v15, %v2641_v51  ;;  %3451 = vrot.lane.b32.xlu1 %v3447_v13, %s3819_s3 }
 0xe31   :  { %v3448_v20 = vadd.f32 %v3446_v28, %v2952_v6 }
 0xe33   :  { %3453 = vrot.lane.b32.xlu0 %v3448_v20, %s3819_s3 }
 0xe49   :  { %v3167_v3 = vpop.permute.xlu0 %3166 }
 0xe4a   :  { %v3169_v47 = vadd.f32 %v5605_v56, %v3167_v3  ;;  %v5607_v3 = vld [vmem:[#allocation8_spill] sm:$0xff] }
 0xe4b   :  { %v2991_v56 = vrot.slane %v5276_v60, %v5607_v3 }
 0xe4c   :  { %v3170_v12 = vadd.f32 %v3169_v47, %v2952_v6 }
 0xe4e   :  { %3172 = vrot.lane.b32.xlu1 %v3170_v12, %s3822_s10 }
 0xea1   :  { %v3452_v38 = vpop.permute.xlu1 %3451 }
 0xea2   :  { %v3457_v23 = vsel %vm147_vm2, %v3452_v38, 0.0 }
 0xea3   :  { %3458 = vadd.xlane.f32.xlu0 %v3457_v23 }
 0xea5   :  { %v3454_v25 = vpop.permute.xlu0 %3453 }
 0xea6   :  { %v3460_v55 = vsel %vm147_vm2, %v3454_v25, 0.0 }
 0xea7   :  { %3461 = vadd.xlane.f32.xlu1 %v3460_v55 }
 0xeab   :  { %2959 = vadd.xlane.f32.xlu1 %v2958_v58 }
 0xec0   :  { %v3173_v29 = vpop.permute.xlu1 %3172 }
 0xec1   :  { %v3175_v26 = vsel %vm147_vm2, %v3173_v29, 0.0 }
 0xec2   :  { %3176 = vadd.xlane.f32.xlu0 %v3175_v26 }
 0xec6   :  { %2956 = vadd.xlane.f32.xlu0 %v2955_v48 }
 0xf2c   :  { %v3459_v7 = vpop.xlane.xlu0 %3458 }
 0xf2d   :  { %v3463_v41 = vmul.f32 0.0625, %v3459_v7 }
 0xf2f   :  { %v3465_v44 = vsub.f32 %v3447_v13, %v3463_v41  ;;  %v2985_v13 = vrot.slane %v5276_v60, %v5606_v57 }
 0xf30   :  { %v3462_v34 = vpop.xlane.xlu1 %3461 }
 0xf31   :  { %v3467_v4 = vmul.f32 %v3465_v44, %v3465_v44  ;;  %v3464_v40 = vmul.f32 0.0625, %v3462_v34 }
 0xf33   :  { %v3466_v62 = vsub.f32 %v3448_v20, %v3464_v40 }
 0xf34   :  { %v2960_v35 = vpop.xlane.xlu1 %2959 }
 0xf35   :  { %v2963_v30 = vmul.f32 0.0625, %v2960_v35  ;;  %v3468_v22 = vmul.f32 %v3466_v62, %v3466_v62 }
 0xf37   :  { %v5291_v46 = vsub.f32 %v2954_v37, %v2963_v30 }
 0xf39   :  { %v2967_v45 = vmul.f32 %v5291_v46, %v5291_v46 }
 0xf3b   :  { %v2971_v49 = vsel %vm147_vm2, %v2967_v45, 0.0 }
 0xf3c   :  { %2972 = vadd.xlane.f32.xlu1 %v2971_v49 }
 0xf4b   :  { %v3177_v1 = vpop.xlane.xlu0 %3176 }
 0xf4c   :  { %v3178_v43 = vmul.f32 0.0625, %v3177_v1 }
 0xf4d   :  { %3471 = vrot.lane.b32.xlu1 %v3467_v4, %s3819_s3 }
 0xf4e   :  { %v3179_v9 = vsub.f32 %v3170_v12, %v3178_v43 }
 0xf4f   :  { %v2957_v18 = vpop.xlane.xlu0 %2956 }
 0xf50   :  { %v2962_v2 = vmul.f32 0.0625, %v2957_v18  ;;  %v3180_v14 = vmul.f32 %v3179_v9, %v3179_v9 }
 0xf52   :  { %v2964_v31 = vsub.f32 %v2953_v53, %v2962_v2 }
 0xf54   :  { %v2966_v39 = vmul.f32 %v2964_v31, %v2964_v31 }
 0xf56   :  { %v2968_v61 = vsel %vm147_vm2, %v2966_v39, 0.0 }
 0xf57   :  { %2969 = vadd.xlane.f32.xlu0 %v2968_v61 }
 0xf6d   :  { %3182 = vrot.lane.b32.xlu0 %v3180_v14, %s3822_s10 }
 0xf71   :  { %3473 = vrot.lane.b32.xlu0 %v3468_v22, %s3819_s3 }
 0xfc5   :  { %v2973_v10 = vpop.xlane.xlu1 %2972 }
 0xfc6   :  { %v2975_v37 = vmul.f32 0.0625, %v2973_v10 }
 0xfc8   :  { %v2977_v58 = vadd.f32 1e-05, %v2975_v37 }
 0xfc9   :  { %v3472_v19 = vpop.permute.xlu1 %3471 }
 0xfca   :  { %v3477_v27 = vsel %vm147_vm2, %v3472_v19, 0.0 }
 0xfe0   :  { %v2970_v11 = vpop.xlane.xlu0 %2969 }
 0xfe1   :  { %v2974_v55 = vmul.f32 0.0625, %v2970_v11 }
 0xfe3   :  { %v2976_v21 = vadd.f32 1e-05, %v2974_v55 }
 0xfe4   :  { %v3183_v50 = vpop.permute.xlu0 %3182 }
 0xfe5   :  { %v3185_v24 = vsel %vm147_vm2, %v3183_v50, 0.0 }
 0xfe6   :  { %3186 = vadd.xlane.f32.xlu1 %v3185_v24 }
 0xfe8   :  { %v3474_v63 = vpop.permute.xlu0 %3473 }
 0xfe9   :  { %v3480_v16 = vsel %vm147_vm2, %v3474_v63, 0.0 }
 0xfea   :  { %3481 = vadd.xlane.f32.xlu0 %v3480_v16  ;;  %3478 = vadd.xlane.f32.xlu1 %v3477_v27 }
0x106f   :  { %v3187_v32 = vpop.xlane.xlu1 %3186 }
0x1070   :  { %v3188_v8 = vmul.f32 0.0625, %v3187_v32 }
0x1072   :  { %v3189_v59 = vadd.f32 1e-05, %v3188_v8 }
0x1073   :  { %v3482_v17 = vpop.xlane.xlu0 %3481  ;;  %v3479_v51 = vpop.xlane.xlu1 %3478 }
0x1074   :  { %v3484_v5 = vmul.f32 0.0625, %v3482_v17  ;;  %v3483_v54 = vmul.f32 0.0625, %v3479_v51  ;;  %3781 = vrsqrt.f32 %v3189_v59 }
0x1076   :  { %v3486_v33 = vadd.f32 1e-05, %v3484_v5  ;;  %v3485_v36 = vadd.f32 1e-05, %v3483_v54 }
0x1078   :  { %3783 = vrsqrt.f32 %v3486_v33 }
0x1079   :  { %3785 = vrsqrt.f32 %v3485_v36 }
0x107a   :  { %3787 = vrsqrt.f32 %v2977_v58 }
0x107b   :  { %3789 = vrsqrt.f32 %v2976_v21 }
0x1081   :  { %v3782_v42 = vpop.eup %3781 }
0x1082   :  { %v3191_v28 = vmul.f32 %v3782_v42, %v3179_v9 }
0x1084   :  { %v3192_v0 = vmul.f32 %v3191_v28, %v2985_v13 }
0x1085   :  { %v3784_v52 = vpop.eup %3783 }
0x1086   :  { %v3786_v6 = vpop.eup %3785  ;;  %v3490_v15 = vmul.f32 %v3784_v52, %v3466_v62  ;;  %v3193_v25 = vadd.f32 %v3192_v0, %v2991_v56 }
0x1087   :  { %v3489_v20 = vmul.f32 %v3786_v6, %v3465_v44  ;;  %v3788_v29 = vpop.eup %3787 }
0x1088   :  { %v3492_v47 = vmul.f32 %v3490_v15, %v2985_v13  ;;  %v3790_v60 = vpop.eup %3789  ;;  %v2981_v53 = vmul.f32 %v3788_v29, %v5291_v46 }
0x1089   :  { %v3491_v12 = vmul.f32 %v3489_v20, %v2985_v13  ;;  %v2980_v26 = vmul.f32 %v3790_v60, %v2964_v31 }
0x108a   :  { %v3494_v38 = vadd.f32 %v3492_v47, %v2991_v56  ;;  %v2987_v48 = vmul.f32 %v2985_v13, %v2981_v53 }
0x108b   :  { %v3493_v23 = vadd.f32 %v3491_v12, %v2991_v56  ;;  %v2986_v34 = vmul.f32 %v2985_v13, %v2980_v26 }
0x108c   :  { %3499 = vrot.lane.b32.xlu1 %v3494_v38, %s3819_s3  ;;  %v2993_v35 = vadd.f32 %v2991_v56, %v2987_v48 }
0x108d   :  { %3497 = vrot.lane.b32.xlu0 %v3493_v23, %s3819_s3  ;;  %v2992_v30 = vadd.f32 %v2991_v56, %v2986_v34 }
0x1090   :  { %3506 = vrot.lane.b32.xlu1 %v3193_v25, %s3822_s10 }
0x10fe   :  { %v3500_v45 = vpop.permute.xlu1 %3499 }
0x10ff   :  { %v3498_v49 = vpop.permute.xlu0 %3497  ;;  %v3504_v7 = vadd.f32 %v3500_v45, %v2993_v35 }
0x1100   :  { %v3503_v41 = vadd.f32 %v3498_v49, %v2992_v30 }
0x1101   :  { %3510 = vst.msk [vmem:[%s5327_s4 + $0x8] sm:$0xff] %vm147_vm2, %v3504_v7 }
0x1102   :  { %3509 = vst.msk [vmem:[%s5327_s4] sm:$0xff] %vm147_vm2, %v3503_v41  ;;  %v3507_v46 = vpop.permute.xlu1 %3506 }
0x1103   :  { %3511 = vst.msk [vmem:[%s5327_s4 + $0x10] sm:$0xff] %vm147_vm2, %v3507_v46 }
0x1104   :  { %3516 = vsyncpa [#allocation3], 1 }

</bundles_post_ra>
